<compile_context>
chip_gen: v7x
topology: tpu7x:2x2x1
jax: 0.10.0
libtpu: 0.0.40
codegen_flags: <defaults>
</compile_context>

<pallas_src>
import functools

import jax
import jax.numpy as jnp
import numpy as np
from jax import lax
from jax.experimental import pallas as pl
from jax.experimental.pallas import tpu as pltpu


def _embedder_kernel(pts_ref, w_ref, bias_ref,
                     pfeat_ref, vslab_ref,
                     *, grid_xyz, voxel_size, pc_range_min, v_tile):
    X, Y, Z = grid_xyz
    V = X * Y * Z
    VT = v_tile
    n_chunks = V // VT
    unroll = n_chunks <= 8

    pts = pts_ref[...]                                  # (8, N): rows 0-2 xyz, 3-7 zero
    N = pts.shape[1]
    C = pfeat_ref.shape[0]

    vx, vy, vz = float(voxel_size[0]), float(voxel_size[1]), float(voxel_size[2])
    rx, ry, rz = float(pc_range_min[0]), float(pc_range_min[1]), float(pc_range_min[2])

    row8 = lax.broadcasted_iota(jnp.int32, (8, N), 0)

    # ---- DynamicVoxelizer: voxel coords + in-range mask (lane-oriented rows) -------
    px, py, pz = pts[0:1, :], pts[1:2, :], pts[2:3, :]
    cxf = jnp.floor((px - rx) * (1.0 / vx))
    cyf = jnp.floor((py - ry) * (1.0 / vy))
    czf = jnp.floor((pz - rz) * (1.0 / vz))
    valid = ((cxf >= 0.0) & (cxf < X) & (cyf >= 0.0) & (cyf < Y)
             & (czf >= 0.0) & (czf < Z))                # (1, N)
    vf = valid.astype(jnp.float32)

    # voxel centres and centre-relative offsets (PFN f_center; also the scatter data)
    cenx = cxf * vx + (rx + 0.5 * vx)
    ceny = cyf * vy + (ry + 0.5 * vy)
    cenz = czf * vz + (rz + 0.5 * vz)
    centers8 = jnp.where(row8 == 0, cenx,
                         jnp.where(row8 == 1, ceny,
                                   jnp.where(row8 == 2, cenz, pts)))
    f_center = (pts - centers8) * vf                    # (8, N), rows 3-7 = 0

    # one small relayout per grid step: move (coords, validf) from lanes to sublanes
    # so the per-point voxel id becomes an (N, 1) column for the (N, VT) one-hot.
    coords_pack = jnp.where(row8 == 0, cxf,
                            jnp.where(row8 == 1, cyf,
                                      jnp.where(row8 == 2, czf,
                                                jnp.where(row8 == 3, vf, 0.0))))
    coords_t = jnp.transpose(coords_pack, (1, 0))       # (N, 8)
    cx_c = coords_t[:, 0:1].astype(jnp.int32)
    cy_c = coords_t[:, 1:2].astype(jnp.int32)
    cz_c = coords_t[:, 2:3].astype(jnp.int32)
    vid_col = jnp.where(coords_t[:, 3:4] > 0.5,
                        cx_c * (Y * Z) + cy_c * Z + cz_c, -1)   # (N, 1); -1 = invalid

    # scatter operand: rows 0-2 centre-relative xyz (bf16-friendly magnitudes),
    # row 3 = validf so exact per-voxel counts fall out of the same MXU pass.
    scat_in = jnp.where(row8 == 3, vf, f_center).astype(jnp.bfloat16)   # (8, N)

    iota_nv = lax.broadcasted_iota(jnp.int32, (N, VT), 1)    # hoisted, loop-invariant

    # ---- pass 1 over V-chunks: per-voxel mean of centre offsets, gathered back -----
    def cluster_chunk(c, acc):
        base = pl.multiple_of(c * VT, VT)
        oh = (iota_nv == (vid_col - base)).astype(jnp.bfloat16)          # (N, VT)
        vsum = jnp.dot(scat_in, oh, preferred_element_type=jnp.float32)  # (8, VT)
        cnt = vsum[3:4, :]                                               # exact counts
        inv = pl.reciprocal(jnp.maximum(cnt, 1.0), approx=True)          # EUP, (1, VT)
        mean_rel = (vsum * inv).astype(jnp.bfloat16)                     # (8, VT)
        # gather back to points: (8, VT) x (N, VT) contracted over VT -> (8, N)
        acc = acc + lax.dot_general(mean_rel, oh, (((1,), (1,)), ((), ())),
                                    preferred_element_type=jnp.float32)
        return acc

    g_rel = lax.fori_loop(0, n_chunks, cluster_chunk, pts * 0.0, unroll=unroll)

    # f_cluster = p - cluster_mean = f_center - mean(f_center over the voxel).
    # Row 3 is ~ -validf; it only ever meets the zero rows of the embedded weight.
    f_cluster = (f_center - g_rel) * vf

    # ---- DynamicPillarFeatureNet: Linear(9->C) (BN scale folded) + bias + ReLU -----
    xyz = pts * vf
    feat24 = jnp.concatenate([xyz, f_cluster, f_center], axis=0)         # (24, N)
    x = jnp.dot(w_ref[...], feat24, preferred_element_type=jnp.float32) + bias_ref[...]
    point_feats = jnp.maximum(x, 0.0) * vf                               # (C, N)
    pfeat_ref[...] = point_feats

    # ---- pass 2 over V-chunks: DynamicScatter(mode='avg') of point features --------
    pf_aug = jnp.concatenate([point_feats, vf], axis=0).astype(jnp.bfloat16)  # (C+1,N)
    rowc = lax.broadcasted_iota(jnp.int32, (C + 1, VT), 0)

    def scatter_chunk(c, carry):
        base = pl.multiple_of(c * VT, VT)
        oh = (iota_nv == (vid_col - base)).astype(jnp.bfloat16)          # (N, VT)
        vsum = jnp.dot(pf_aug, oh, preferred_element_type=jnp.float32)   # (C+1, VT)
        cnt = vsum[C:C + 1, :]
        inv = pl.reciprocal(jnp.maximum(cnt, 1.0), approx=True)
        # rows 0..C-1: per-voxel mean features; row C: raw (exact) point count
        vslab_ref[:, pl.ds(base, VT)] = jnp.where(rowc == C, vsum, vsum * inv)
        return carry

    lax.fori_loop(0, n_chunks, scatter_chunk, 0, unroll=unroll)


def _pick_v_tile(V):
    # VT = 256 keeps the (N, VT) one-hot and per-chunk slabs well inside vregs/VMEM.
    for vt in (256, 512, 128):
        if V % vt == 0:
            return vt
    return V   # TODO(synk): pad V up to a multiple of 128 for unaligned voxel grids.


def _pillar_kernel_call(pts8, w_t, bias_c, *, grid_xyz, voxel_size,
                        pc_range_min, feat_channels, v_tile=None):
    G, R, N = pts8.shape
    assert R == 8 and N % 128 == 0
    X, Y, Z = grid_xyz
    V = X * Y * Z
    C = feat_channels
    if v_tile is None:
        v_tile = _pick_v_tile(V)
    assert V % v_tile == 0

    kernel = functools.partial(
        _embedder_kernel, grid_xyz=(X, Y, Z), voxel_size=tuple(voxel_size),
        pc_range_min=tuple(pc_range_min), v_tile=v_tile)

    flops = G * (2 * N * V * (8 + 8 + (C + 1)) + 2 * 24 * C * N)
    bytes_accessed = 4 * (G * (8 * N + C * N + (C + 1) * V) + 24 * C + C)

    # TODO(synk): at realistic grids (V ~ 1e5, C >= 64) the (C+1, V) output block
    # should get its own V-chunk grid axis so it never lives whole in VMEM (v7x).
    return pl.pallas_call(
        kernel,
        out_shape=(jax.ShapeDtypeStruct((G, C, N), jnp.float32),
                   jax.ShapeDtypeStruct((G, C + 1, V), jnp.float32)),
        grid_spec=pltpu.PrefetchScalarGridSpec(
            num_scalar_prefetch=0,
            grid=(G,),
            in_specs=[pl.BlockSpec((None, 8, N), lambda g: (g, 0, 0)),
                      pl.BlockSpec((C, 24), lambda g: (0, 0)),
                      pl.BlockSpec((C, 1), lambda g: (0, 0))],
            out_specs=[pl.BlockSpec((None, C, N), lambda g: (g, 0, 0)),
                       pl.BlockSpec((None, C + 1, V), lambda g: (g, 0, 0))]),
        compiler_params=pltpu.CompilerParams(
            dimension_semantics=("parallel",),
            vmem_limit_bytes=32 * 1024 * 1024),
        cost_estimate=pl.CostEstimate(flops=flops, transcendentals=2 * G * V,
                                      bytes_accessed=bytes_accessed),
    )(pts8, w_t, bias_c)


_ZERO_WEIGHT_ROWS = np.r_[3:8, 11:16, 19:24]


def _check_weight_embedding(w24):
    """The kernel relies on the padded rows of the embedded (24, C) weight being 0."""
    try:
        w = np.asarray(w24)
    except Exception:            # traced under jit -- skip the static check
        return
    assert not np.any(w[_ZERO_WEIGHT_ROWS]), \
        "rows 3-7 / 11-15 / 19-23 of the embedded (24, C) PFN weight must be zero"


def _voxel_infos(points_b, voxel_size, point_cloud_range, grid_xyz):
    """Plain-JAX glue mirroring the voxelizer info dicts (static shapes + mask)."""
    rmin = jnp.asarray(point_cloud_range[:3], jnp.float32)
    vs = jnp.asarray(voxel_size, jnp.float32)
    dims = jnp.asarray(grid_xyz, jnp.int32)
    coor = jnp.floor((points_b - rmin) / vs).astype(jnp.int32)      # (B, N, 3) (x,y,z)
    mask = jnp.all((coor >= 0) & (coor < dims), axis=-1)
    return [{'points': points_b[b],
             'voxel_coords': coor[b, :, ::-1],                      # (z, y, x) order
             'point_mask': mask[b]} for b in range(points_b.shape[0])]


def dynamic_embedder_4d_forward(points, w24, bn_scale, bn_bias, *,
                                voxel_size, point_cloud_range,
                                pseudo_image_dims, feat_channels):
    """points: (T, B, N, 3) float32 with frames ordered [pch1s, pc0s, pc1s]."""
    T, B, N, _ = points.shape
    X, Y, Z, Tdim = pseudo_image_dims
    assert Tdim == T
    C = feat_channels
    G = T * B

    _check_weight_embedding(w24)

    # channels-major (lane-dense) kernel inputs: one contiguous (8, N) slab per cloud
    pts_cm = jnp.zeros((G, 8, N), jnp.float32).at[:, :3, :].set(
        jnp.transpose(points.reshape(G, N, 3), (0, 2, 1)))
    w_t = jnp.transpose(w24 * bn_scale, (1, 0))         # (C, 24), BN scale folded in
    bias_c = jnp.reshape(bn_bias, (C, 1))

    pfeat_cn, vslab = _pillar_kernel_call(
        pts_cm, w_t, bias_c,
        grid_xyz=(X, Y, Z), voxel_size=voxel_size,
        pc_range_min=tuple(point_cloud_range[:3]), feat_channels=C)

    pfeat = jnp.transpose(pfeat_cn.reshape(T, B, C, N), (0, 1, 3, 2))   # (T, B, N, C)
    vfeat_cv = vslab[:, :C, :].reshape(T, B, C, X, Y, Z)
    cnt = vslab[:, C, :].reshape(T, B, X, Y, Z)
    occ = cnt > 0

    # TODO(synk): spconv.SparseConvTensor has no Pallas/JAX equivalent; return the
    # equivalent dense (B, X, Y, Z, T, C) feature grid plus an occupancy mask.
    dense_4d = jnp.transpose(vfeat_cv, (1, 3, 4, 5, 0, 2))
    occ_4d = jnp.transpose(occ, (1, 2, 3, 4, 0))

    t_pc0, t_pc1 = T - 2, T - 1
    out = {
        '4d_tensor_dense': dense_4d,
        '4d_tensor_occupancy': occ_4d,
        'pch1_3dvoxel_infos_lst': (_voxel_infos(points[0], voxel_size,
                                                point_cloud_range, (X, Y, Z))
                                   if T > 2 else None),
        'pc0_3dvoxel_infos_lst': _voxel_infos(points[t_pc0], voxel_size,
                                              point_cloud_range, (X, Y, Z)),
        'pc1_3dvoxel_infos_lst': _voxel_infos(points[t_pc1], voxel_size,
                                              point_cloud_range, (X, Y, Z)),
        'pc0_point_feats_lst': [pfeat[t_pc0, b] for b in range(B)],
        'pc1_point_feats_lst': [pfeat[t_pc1, b] for b in range(B)],
        'pc0_num_voxels': jnp.sum(occ[t_pc0]).astype(jnp.int32),
        'pc1_num_voxels': jnp.sum(occ[t_pc1]).astype(jnp.int32),
    }
    return out


def _pillar_reference(pts8_rm, w24, scale, bias, *, grid_xyz, voxel_size, pc_range_min):
    """Pure-JAX f32 mirror of the module math for a correctness check."""
    X, Y, Z = grid_xyz
    V = X * Y * Z
    vsize = jnp.asarray(list(voxel_size) + [0.0] * 5, jnp.float32)
    inv_vs = jnp.asarray([1.0 / voxel_size[0], 1.0 / voxel_size[1],
                          1.0 / voxel_size[2], 0., 0., 0., 0., 0.], jnp.float32)
    rmin = jnp.asarray(list(pc_range_min) + [0.0] * 5, jnp.float32)

    def one(pts):
        coor = jnp.floor((pts - rmin) * inv_vs)
        cx, cy, cz = coor[:, 0:1], coor[:, 1:2], coor[:, 2:3]
        valid = ((cx >= 0) & (cx < X) & (cy >= 0) & (cy < Y)
                 & (cz >= 0) & (cz < Z))
        vf = valid.astype(jnp.float32)
        vid = jnp.where(valid, cx.astype(jnp.int32) * (Y * Z)
                        + cy.astype(jnp.int32) * Z + cz.astype(jnp.int32), -1)
        oh = (vid == jnp.arange(V)[None, :]).astype(jnp.float32)   # (N, V)
        cnt = oh.sum(0)[:, None]
        safe = jnp.maximum(cnt, 1.0)
        vmean = (oh.T @ pts) / safe
        f_cluster = (pts - oh @ vmean) * vf
        centers = coor * vsize + rmin + 0.5 * vsize
        f_center = (pts - centers) * vf
        x = ((pts * vf) @ w24[0:8] + f_cluster @ w24[8:16] + f_center @ w24[16:24])
        x = jnp.maximum(x * scale + bias, 0.0) * vf
        vfeat = (oh.T @ x) / safe
        return x, vfeat, cnt

    return jax.vmap(one)(pts8_rm)


if __name__ == "__main__":
    # module configuration (small, consistent with the forward pass)
    voxel_size = (0.4, 0.4, 0.5)
    point_cloud_range = (-3.2, -3.2, -1.0, 3.2, 3.2, 1.0)
    pseudo_image_dims = (16, 16, 4, 3)        # (X, Y, Z, T) -> V = 1024 voxels, 3 frames
    feat_channels = 32
    B, N = 2, 256
    T = pseudo_image_dims[3]
    C = feat_channels
    G = T * B

    key = jax.random.PRNGKey(0)
    kp, kz, kw, kg, kb, km, kv = jax.random.split(key, 7)
    # frames ordered [pch1s, pc0s, pc1s]; some points intentionally out of range
    xy = jax.random.uniform(kp, (T, B, N, 2), minval=-3.5, maxval=3.5)
    zz = jax.random.uniform(kz, (T, B, N, 1), minval=-1.2, maxval=1.2)
    points = jnp.concatenate([xy, zz], axis=-1).astype(jnp.float32)

    # deterministic parameters: Linear(9, C, bias=False) + BatchNorm1d(C) (eval, folded)
    w9 = 0.1 * jax.random.normal(kw, (9, C), jnp.float32)
    w24 = jnp.zeros((24, C), jnp.float32).at[
        jnp.array([0, 1, 2, 8, 9, 10, 16, 17, 18])].set(w9)
    gamma = 1.0 + 0.1 * jax.random.normal(kg, (C,), jnp.float32)
    beta = 0.1 * jax.random.normal(kb, (C,), jnp.float32)
    running_mean = 0.05 * jax.random.normal(km, (C,), jnp.float32)
    running_var = jax.random.uniform(kv, (C,), minval=0.5, maxval=1.5)
    eps = 1e-3
    inv_std = gamma / jnp.sqrt(running_var + eps)
    bn_scale = inv_std.reshape(1, C)
    bn_bias = (beta - running_mean * inv_std).reshape(1, C)

    out = dynamic_embedder_4d_forward(
        points, w24, bn_scale, bn_bias,
        voxel_size=voxel_size, point_cloud_range=point_cloud_range,
        pseudo_image_dims=pseudo_image_dims, feat_channels=C)
    jax.block_until_ready(out)

    # correctness check of the Pallas hot path vs a plain-JAX f32 mirror
    pts_cm = jnp.zeros((G, 8, N), jnp.float32).at[:, :3, :].set(
        jnp.transpose(points.reshape(G, N, 3), (0, 2, 1)))
    w_t = jnp.transpose(w24 * bn_scale, (1, 0))
    bias_c = jnp.reshape(bn_bias, (C, 1))
    pf_k, slab_k = _pillar_kernel_call(
        pts_cm, w_t, bias_c,
        grid_xyz=pseudo_image_dims[:3], voxel_size=voxel_size,
        pc_range_min=point_cloud_range[:3], feat_channels=C)

    pts_rm = jnp.zeros((G, N, 8), jnp.float32).at[:, :, :3].set(points.reshape(G, N, 3))
    pf_r, vf_r, cnt_r = _pillar_reference(
        pts_rm, w24, bn_scale, bn_bias,
        grid_xyz=pseudo_image_dims[:3], voxel_size=voxel_size,
        pc_range_min=point_cloud_range[:3])

    np.testing.assert_allclose(np.asarray(slab_k[:, C, :]),
                               np.asarray(cnt_r)[..., 0], atol=1e-3)
    np.testing.assert_allclose(np.asarray(jnp.transpose(pf_k, (0, 2, 1))),
                               np.asarray(pf_r), rtol=5e-2, atol=5e-2)
    np.testing.assert_allclose(np.asarray(jnp.transpose(slab_k[:, :C, :], (0, 2, 1))),
                               np.asarray(vf_r), rtol=5e-2, atol=5e-2)

    print("KERNEL_OK")
</pallas_src>

<mosaic_0001>
module attributes {stable_mosaic.version = 11 : i64} {
  func.func @_embedder_kernel(%arg0: i32, %arg1: memref<1x8x256xf32, #tpu.memory_space<vmem>>, %arg2: memref<32x24xf32, #tpu.memory_space<vmem>>, %arg3: memref<32x1xf32, #tpu.memory_space<vmem>>, %arg4: memref<1x32x256xf32, #tpu.memory_space<vmem>>, %arg5: memref<1x33x1024xf32, #tpu.memory_space<vmem>>) attributes {dimension_semantics = [#tpu.dimension_semantics<parallel>], iteration_bounds = array<i64: 6>, scalar_prefetch = 0 : i64, scratch_operands = 0 : i64, tpu.core_type = #tpu.core_type<tc>, window_params = [{transform_indices = @transform_0, window_bounds = array<i64: 1, 8, 256>}, {pipeline_mode = #tpu.pipeline_mode<synchronous>, transform_indices = @transform_1, window_bounds = array<i64: 32, 24>}, {pipeline_mode = #tpu.pipeline_mode<synchronous>, transform_indices = @transform_2, window_bounds = array<i64: 32, 1>}, {transform_indices = @transform_3, window_bounds = array<i64: 1, 32, 256>}, {transform_indices = @transform_4, window_bounds = array<i64: 1, 33, 1024>}]} {
    %c0 = arith.constant 0 : index
    %c0_0 = arith.constant 0 : index
    %c0_1 = arith.constant 0 : index
    %0 = vector.load %arg1[%c0, %c0_0, %c0_1] : memref<1x8x256xf32, #tpu.memory_space<vmem>>, vector<1x8x256xf32>
    %1 = vector.shape_cast %0 : vector<1x8x256xf32> to vector<8x256xf32>
    %2 = tpu.iota {dimensions = array<i32: 0>} : vector<8x256xi32>
    %3 = vector.extract_strided_slice %1 {offsets = [0, 0], sizes = [1, 256], strides = [1, 1]} : vector<8x256xf32> to vector<1x256xf32>
    %4 = vector.extract_strided_slice %1 {offsets = [1, 0], sizes = [1, 256], strides = [1, 1]} : vector<8x256xf32> to vector<1x256xf32>
    %5 = vector.extract_strided_slice %1 {offsets = [2, 0], sizes = [1, 256], strides = [1, 1]} : vector<8x256xf32> to vector<1x256xf32>
    %cst = arith.constant -3.200000e+00 : f32
    %6 = vector.broadcast %cst : f32 to vector<1x256xf32>
    %7 = arith.subf %3, %6 : vector<1x256xf32>
    %cst_2 = arith.constant 2.500000e+00 : f32
    %8 = vector.broadcast %cst_2 : f32 to vector<1x256xf32>
    %9 = arith.mulf %7, %8 : vector<1x256xf32>
    %10 = math.floor %9 : vector<1x256xf32>
    %cst_3 = arith.constant -3.200000e+00 : f32
    %11 = vector.broadcast %cst_3 : f32 to vector<1x256xf32>
    %12 = arith.subf %4, %11 : vector<1x256xf32>
    %cst_4 = arith.constant 2.500000e+00 : f32
    %13 = vector.broadcast %cst_4 : f32 to vector<1x256xf32>
    %14 = arith.mulf %12, %13 : vector<1x256xf32>
    %15 = math.floor %14 : vector<1x256xf32>
    %cst_5 = arith.constant -1.000000e+00 : f32
    %16 = vector.broadcast %cst_5 : f32 to vector<1x256xf32>
    %17 = arith.subf %5, %16 : vector<1x256xf32>
    %cst_6 = arith.constant 2.000000e+00 : f32
    %18 = vector.broadcast %cst_6 : f32 to vector<1x256xf32>
    %19 = arith.mulf %17, %18 : vector<1x256xf32>
    %20 = math.floor %19 : vector<1x256xf32>
    %cst_7 = arith.constant 0.000000e+00 : f32
    %21 = vector.broadcast %cst_7 : f32 to vector<1x256xf32>
    %22 = arith.cmpf oge, %10, %21 : vector<1x256xf32>
    %cst_8 = arith.constant 1.600000e+01 : f32
    %23 = vector.broadcast %cst_8 : f32 to vector<1x256xf32>
    %24 = arith.cmpf olt, %10, %23 : vector<1x256xf32>
    %25 = arith.andi %22, %24 : vector<1x256xi1>
    %cst_9 = arith.constant 0.000000e+00 : f32
    %26 = vector.broadcast %cst_9 : f32 to vector<1x256xf32>
    %27 = arith.cmpf oge, %15, %26 : vector<1x256xf32>
    %28 = arith.andi %25, %27 : vector<1x256xi1>
    %cst_10 = arith.constant 1.600000e+01 : f32
    %29 = vector.broadcast %cst_10 : f32 to vector<1x256xf32>
    %30 = arith.cmpf olt, %15, %29 : vector<1x256xf32>
    %31 = arith.andi %28, %30 : vector<1x256xi1>
    %cst_11 = arith.constant 0.000000e+00 : f32
    %32 = vector.broadcast %cst_11 : f32 to vector<1x256xf32>
    %33 = arith.cmpf oge, %20, %32 : vector<1x256xf32>
    %34 = arith.andi %31, %33 : vector<1x256xi1>
    %cst_12 = arith.constant 4.000000e+00 : f32
    %35 = vector.broadcast %cst_12 : f32 to vector<1x256xf32>
    %36 = arith.cmpf olt, %20, %35 : vector<1x256xf32>
    %37 = arith.andi %34, %36 : vector<1x256xi1>
    %38 = arith.extui %37 : vector<1x256xi1> to vector<1x256xi32>
    %39 = arith.sitofp %38 : vector<1x256xi32> to vector<1x256xf32>
    %cst_13 = arith.constant 4.000000e-01 : f32
    %40 = vector.broadcast %cst_13 : f32 to vector<1x256xf32>
    %41 = arith.mulf %10, %40 : vector<1x256xf32>
    %cst_14 = arith.constant -3.000000e+00 : f32
    %42 = vector.broadcast %cst_14 : f32 to vector<1x256xf32>
    %43 = arith.addf %41, %42 : vector<1x256xf32>
    %cst_15 = arith.constant 4.000000e-01 : f32
    %44 = vector.broadcast %cst_15 : f32 to vector<1x256xf32>
    %45 = arith.mulf %15, %44 : vector<1x256xf32>
    %cst_16 = arith.constant -3.000000e+00 : f32
    %46 = vector.broadcast %cst_16 : f32 to vector<1x256xf32>
    %47 = arith.addf %45, %46 : vector<1x256xf32>
    %cst_17 = arith.constant 5.000000e-01 : f32
    %48 = vector.broadcast %cst_17 : f32 to vector<1x256xf32>
    %49 = arith.mulf %20, %48 : vector<1x256xf32>
    %cst_18 = arith.constant -7.500000e-01 : f32
    %50 = vector.broadcast %cst_18 : f32 to vector<1x256xf32>
    %51 = arith.addf %49, %50 : vector<1x256xf32>
    %c0_i32 = arith.constant 0 : i32
    %52 = vector.broadcast %c0_i32 : i32 to vector<8x256xi32>
    %53 = arith.cmpi eq, %2, %52 : vector<8x256xi32>
    %c1_i32 = arith.constant 1 : i32
    %54 = vector.broadcast %c1_i32 : i32 to vector<8x256xi32>
    %55 = arith.cmpi eq, %2, %54 : vector<8x256xi32>
    %c2_i32 = arith.constant 2 : i32
    %56 = vector.broadcast %c2_i32 : i32 to vector<8x256xi32>
    %57 = arith.cmpi eq, %2, %56 : vector<8x256xi32>
    %58 = vector.shape_cast %51 : vector<1x256xf32> to vector<1x256xf32>
    %59 = vector.broadcast %58 : vector<1x256xf32> to vector<8x256xf32>
    %60 = arith.select %57, %59, %1 : vector<8x256xi1>, vector<8x256xf32>
    %61 = vector.shape_cast %47 : vector<1x256xf32> to vector<1x256xf32>
    %62 = vector.broadcast %61 : vector<1x256xf32> to vector<8x256xf32>
    %63 = arith.select %55, %62, %60 : vector<8x256xi1>, vector<8x256xf32>
    %64 = vector.shape_cast %43 : vector<1x256xf32> to vector<1x256xf32>
    %65 = vector.broadcast %64 : vector<1x256xf32> to vector<8x256xf32>
    %66 = arith.select %53, %65, %63 : vector<8x256xi1>, vector<8x256xf32>
    %67 = arith.subf %1, %66 : vector<8x256xf32>
    %68 = vector.broadcast %39 : vector<1x256xf32> to vector<8x256xf32>
    %69 = arith.mulf %67, %68 : vector<8x256xf32>
    %c0_i32_19 = arith.constant 0 : i32
    %70 = vector.broadcast %c0_i32_19 : i32 to vector<8x256xi32>
    %71 = arith.cmpi eq, %2, %70 : vector<8x256xi32>
    %c1_i32_20 = arith.constant 1 : i32
    %72 = vector.broadcast %c1_i32_20 : i32 to vector<8x256xi32>
    %73 = arith.cmpi eq, %2, %72 : vector<8x256xi32>
    %c2_i32_21 = arith.constant 2 : i32
    %74 = vector.broadcast %c2_i32_21 : i32 to vector<8x256xi32>
    %75 = arith.cmpi eq, %2, %74 : vector<8x256xi32>
    %c3_i32 = arith.constant 3 : i32
    %76 = vector.broadcast %c3_i32 : i32 to vector<8x256xi32>
    %77 = arith.cmpi eq, %2, %76 : vector<8x256xi32>
    %cst_22 = arith.constant 0.000000e+00 : f32
    %78 = vector.shape_cast %39 : vector<1x256xf32> to vector<1x256xf32>
    %79 = vector.broadcast %78 : vector<1x256xf32> to vector<8x256xf32>
    %80 = vector.broadcast %cst_22 : f32 to vector<8x256xf32>
    %81 = arith.select %77, %79, %80 : vector<8x256xi1>, vector<8x256xf32>
    %82 = vector.shape_cast %20 : vector<1x256xf32> to vector<1x256xf32>
    %83 = vector.broadcast %82 : vector<1x256xf32> to vector<8x256xf32>
    %84 = arith.select %75, %83, %81 : vector<8x256xi1>, vector<8x256xf32>
    %85 = vector.shape_cast %15 : vector<1x256xf32> to vector<1x256xf32>
    %86 = vector.broadcast %85 : vector<1x256xf32> to vector<8x256xf32>
    %87 = arith.select %73, %86, %84 : vector<8x256xi1>, vector<8x256xf32>
    %88 = vector.shape_cast %10 : vector<1x256xf32> to vector<1x256xf32>
    %89 = vector.broadcast %88 : vector<1x256xf32> to vector<8x256xf32>
    %90 = arith.select %71, %89, %87 : vector<8x256xi1>, vector<8x256xf32>
    %91 = tpu.transpose %90, [1, 0] : vector<8x256xf32> -> vector<256x8xf32>
    %92 = vector.extract_strided_slice %91 {offsets = [0, 0], sizes = [256, 1], strides = [1, 1]} : vector<256x8xf32> to vector<256x1xf32>
    %93 = arith.fptosi %92 : vector<256x1xf32> to vector<256x1xi32>
    %94 = vector.extract_strided_slice %91 {offsets = [0, 1], sizes = [256, 1], strides = [1, 1]} : vector<256x8xf32> to vector<256x1xf32>
    %95 = arith.fptosi %94 : vector<256x1xf32> to vector<256x1xi32>
    %96 = vector.extract_strided_slice %91 {offsets = [0, 2], sizes = [256, 1], strides = [1, 1]} : vector<256x8xf32> to vector<256x1xf32>
    %97 = arith.fptosi %96 : vector<256x1xf32> to vector<256x1xi32>
    %98 = vector.extract_strided_slice %91 {offsets = [0, 3], sizes = [256, 1], strides = [1, 1]} : vector<256x8xf32> to vector<256x1xf32>
    %cst_23 = arith.constant 5.000000e-01 : f32
    %99 = vector.broadcast %cst_23 : f32 to vector<256x1xf32>
    %100 = arith.cmpf ogt, %98, %99 : vector<256x1xf32>
    %c64_i32 = arith.constant 64 : i32
    %101 = vector.broadcast %c64_i32 : i32 to vector<256x1xi32>
    %102 = arith.muli %93, %101 : vector<256x1xi32>
    %c4_i32 = arith.constant 4 : i32
    %103 = vector.broadcast %c4_i32 : i32 to vector<256x1xi32>
    %104 = arith.muli %95, %103 : vector<256x1xi32>
    %105 = arith.addi %102, %104 : vector<256x1xi32>
    %106 = arith.addi %105, %97 : vector<256x1xi32>
    %c-1_i32 = arith.constant -1 : i32
    %107 = vector.broadcast %c-1_i32 : i32 to vector<256x1xi32>
    %108 = arith.select %100, %106, %107 : vector<256x1xi1>, vector<256x1xi32>
    %c3_i32_24 = arith.constant 3 : i32
    %109 = vector.broadcast %c3_i32_24 : i32 to vector<8x256xi32>
    %110 = arith.cmpi eq, %2, %109 : vector<8x256xi32>
    %111 = vector.shape_cast %39 : vector<1x256xf32> to vector<1x256xf32>
    %112 = vector.broadcast %111 : vector<1x256xf32> to vector<8x256xf32>
    %113 = arith.select %110, %112, %69 : vector<8x256xi1>, vector<8x256xf32>
    %114 = arith.truncf %113 : vector<8x256xf32> to vector<8x256xbf16>
    %115 = tpu.iota {dimensions = array<i32: 1>} : vector<256x256xi32>
    %cst_25 = arith.constant 0.000000e+00 : f32
    %116 = vector.broadcast %cst_25 : f32 to vector<8x256xf32>
    %117 = arith.mulf %1, %116 : vector<8x256xf32>
    %c0_i32_26 = arith.constant 0 : i32
    %c256_i32 = arith.constant 256 : i32
    %118 = arith.muli %c0_i32_26, %c256_i32 : i32
    %119 = tpu.assume_multiple %118, 256 : i32
    %120 = vector.broadcast %119 : i32 to vector<256x1xi32>
    %121 = arith.subi %108, %120 : vector<256x1xi32>
    %122 = vector.broadcast %121 : vector<256x1xi32> to vector<256x256xi32>
    %123 = arith.cmpi eq, %115, %122 : vector<256x256xi32>
    %124 = arith.extui %123 : vector<256x256xi1> to vector<256x256xi32>
    %125 = arith.sitofp %124 : vector<256x256xi32> to vector<256x256xf32>
    %126 = arith.truncf %125 : vector<256x256xf32> to vector<256x256xbf16>
    %cst_27 = arith.constant dense<0.000000e+00> : vector<8x256xf32>
    %127 = tpu.matmul %114, %126, %cst_27 {dimension_numbers = #tpu.dot_dimension_numbers<[1], [0], [0], [1], [0, 0, 1, 1], [], []>} : vector<8x256xbf16>, vector<256x256xbf16>, vector<8x256xf32> -> vector<8x256xf32>
    %128 = vector.extract_strided_slice %127 {offsets = [3, 0], sizes = [1, 256], strides = [1, 1]} : vector<8x256xf32> to vector<1x256xf32>
    %cst_28 = arith.constant 1.000000e+00 : f32
    %129 = vector.broadcast %cst_28 : f32 to vector<1x256xf32>
    %130 = arith.maximumf %128, %129 : vector<1x256xf32>
    %131 = tpu.reciprocal %130 {approx = true} : vector<1x256xf32> -> vector<1x256xf32>
    %132 = vector.broadcast %131 : vector<1x256xf32> to vector<8x256xf32>
    %133 = arith.mulf %127, %132 : vector<8x256xf32>
    %134 = arith.truncf %133 : vector<8x256xf32> to vector<8x256xbf16>
    %cst_29 = arith.constant dense<0.000000e+00> : vector<8x256xf32>
    %135 = tpu.matmul %134, %126, %cst_29 {dimension_numbers = #tpu.dot_dimension_numbers<[1], [1], [0], [0], [0, 0, 1, 0], [], []>} : vector<8x256xbf16>, vector<256x256xbf16>, vector<8x256xf32> -> vector<8x256xf32>
    %136 = arith.addf %117, %135 : vector<8x256xf32>
    %c1_i32_30 = arith.constant 1 : i32
    %c256_i32_31 = arith.constant 256 : i32
    %137 = arith.muli %c1_i32_30, %c256_i32_31 : i32
    %138 = tpu.assume_multiple %137, 256 : i32
    %139 = vector.broadcast %138 : i32 to vector<256x1xi32>
    %140 = arith.subi %108, %139 : vector<256x1xi32>
    %141 = vector.broadcast %140 : vector<256x1xi32> to vector<256x256xi32>
    %142 = arith.cmpi eq, %115, %141 : vector<256x256xi32>
    %143 = arith.extui %142 : vector<256x256xi1> to vector<256x256xi32>
    %144 = arith.sitofp %143 : vector<256x256xi32> to vector<256x256xf32>
    %145 = arith.truncf %144 : vector<256x256xf32> to vector<256x256xbf16>
    %cst_32 = arith.constant dense<0.000000e+00> : vector<8x256xf32>
    %146 = tpu.matmul %114, %145, %cst_32 {dimension_numbers = #tpu.dot_dimension_numbers<[1], [0], [0], [1], [0, 0, 1, 1], [], []>} : vector<8x256xbf16>, vector<256x256xbf16>, vector<8x256xf32> -> vector<8x256xf32>
    %147 = vector.extract_strided_slice %146 {offsets = [3, 0], sizes = [1, 256], strides = [1, 1]} : vector<8x256xf32> to vector<1x256xf32>
    %cst_33 = arith.constant 1.000000e+00 : f32
    %148 = vector.broadcast %cst_33 : f32 to vector<1x256xf32>
    %149 = arith.maximumf %147, %148 : vector<1x256xf32>
    %150 = tpu.reciprocal %149 {approx = true} : vector<1x256xf32> -> vector<1x256xf32>
    %151 = vector.broadcast %150 : vector<1x256xf32> to vector<8x256xf32>
    %152 = arith.mulf %146, %151 : vector<8x256xf32>
    %153 = arith.truncf %152 : vector<8x256xf32> to vector<8x256xbf16>
    %cst_34 = arith.constant dense<0.000000e+00> : vector<8x256xf32>
    %154 = tpu.matmul %153, %145, %cst_34 {dimension_numbers = #tpu.dot_dimension_numbers<[1], [1], [0], [0], [0, 0, 1, 0], [], []>} : vector<8x256xbf16>, vector<256x256xbf16>, vector<8x256xf32> -> vector<8x256xf32>
    %155 = arith.addf %136, %154 : vector<8x256xf32>
    %c2_i32_35 = arith.constant 2 : i32
    %c256_i32_36 = arith.constant 256 : i32
    %156 = arith.muli %c2_i32_35, %c256_i32_36 : i32
    %157 = tpu.assume_multiple %156, 256 : i32
    %158 = vector.broadcast %157 : i32 to vector<256x1xi32>
    %159 = arith.subi %108, %158 : vector<256x1xi32>
    %160 = vector.broadcast %159 : vector<256x1xi32> to vector<256x256xi32>
    %161 = arith.cmpi eq, %115, %160 : vector<256x256xi32>
    %162 = arith.extui %161 : vector<256x256xi1> to vector<256x256xi32>
    %163 = arith.sitofp %162 : vector<256x256xi32> to vector<256x256xf32>
    %164 = arith.truncf %163 : vector<256x256xf32> to vector<256x256xbf16>
    %cst_37 = arith.constant dense<0.000000e+00> : vector<8x256xf32>
    %165 = tpu.matmul %114, %164, %cst_37 {dimension_numbers = #tpu.dot_dimension_numbers<[1], [0], [0], [1], [0, 0, 1, 1], [], []>} : vector<8x256xbf16>, vector<256x256xbf16>, vector<8x256xf32> -> vector<8x256xf32>
    %166 = vector.extract_strided_slice %165 {offsets = [3, 0], sizes = [1, 256], strides = [1, 1]} : vector<8x256xf32> to vector<1x256xf32>
    %cst_38 = arith.constant 1.000000e+00 : f32
    %167 = vector.broadcast %cst_38 : f32 to vector<1x256xf32>
    %168 = arith.maximumf %166, %167 : vector<1x256xf32>
    %169 = tpu.reciprocal %168 {approx = true} : vector<1x256xf32> -> vector<1x256xf32>
    %170 = vector.broadcast %169 : vector<1x256xf32> to vector<8x256xf32>
    %171 = arith.mulf %165, %170 : vector<8x256xf32>
    %172 = arith.truncf %171 : vector<8x256xf32> to vector<8x256xbf16>
    %cst_39 = arith.constant dense<0.000000e+00> : vector<8x256xf32>
    %173 = tpu.matmul %172, %164, %cst_39 {dimension_numbers = #tpu.dot_dimension_numbers<[1], [1], [0], [0], [0, 0, 1, 0], [], []>} : vector<8x256xbf16>, vector<256x256xbf16>, vector<8x256xf32> -> vector<8x256xf32>
    %174 = arith.addf %155, %173 : vector<8x256xf32>
    %c3_i32_40 = arith.constant 3 : i32
    %c256_i32_41 = arith.constant 256 : i32
    %175 = arith.muli %c3_i32_40, %c256_i32_41 : i32
    %176 = tpu.assume_multiple %175, 256 : i32
    %177 = vector.broadcast %176 : i32 to vector<256x1xi32>
    %178 = arith.subi %108, %177 : vector<256x1xi32>
    %179 = vector.broadcast %178 : vector<256x1xi32> to vector<256x256xi32>
    %180 = arith.cmpi eq, %115, %179 : vector<256x256xi32>
    %181 = arith.extui %180 : vector<256x256xi1> to vector<256x256xi32>
    %182 = arith.sitofp %181 : vector<256x256xi32> to vector<256x256xf32>
    %183 = arith.truncf %182 : vector<256x256xf32> to vector<256x256xbf16>
    %cst_42 = arith.constant dense<0.000000e+00> : vector<8x256xf32>
    %184 = tpu.matmul %114, %183, %cst_42 {dimension_numbers = #tpu.dot_dimension_numbers<[1], [0], [0], [1], [0, 0, 1, 1], [], []>} : vector<8x256xbf16>, vector<256x256xbf16>, vector<8x256xf32> -> vector<8x256xf32>
    %185 = vector.extract_strided_slice %184 {offsets = [3, 0], sizes = [1, 256], strides = [1, 1]} : vector<8x256xf32> to vector<1x256xf32>
    %cst_43 = arith.constant 1.000000e+00 : f32
    %186 = vector.broadcast %cst_43 : f32 to vector<1x256xf32>
    %187 = arith.maximumf %185, %186 : vector<1x256xf32>
    %188 = tpu.reciprocal %187 {approx = true} : vector<1x256xf32> -> vector<1x256xf32>
    %189 = vector.broadcast %188 : vector<1x256xf32> to vector<8x256xf32>
    %190 = arith.mulf %184, %189 : vector<8x256xf32>
    %191 = arith.truncf %190 : vector<8x256xf32> to vector<8x256xbf16>
    %cst_44 = arith.constant dense<0.000000e+00> : vector<8x256xf32>
    %192 = tpu.matmul %191, %183, %cst_44 {dimension_numbers = #tpu.dot_dimension_numbers<[1], [1], [0], [0], [0, 0, 1, 0], [], []>} : vector<8x256xbf16>, vector<256x256xbf16>, vector<8x256xf32> -> vector<8x256xf32>
    %193 = arith.addf %174, %192 : vector<8x256xf32>
    %c4_i32_45 = arith.constant 4 : i32
    %194 = arith.subf %69, %193 : vector<8x256xf32>
    %195 = vector.broadcast %39 : vector<1x256xf32> to vector<8x256xf32>
    %196 = arith.mulf %194, %195 : vector<8x256xf32>
    %197 = vector.broadcast %39 : vector<1x256xf32> to vector<8x256xf32>
    %198 = arith.mulf %1, %197 : vector<8x256xf32>
    %199 = tpu.concatenate %198, %196, %69 in 0 : vector<8x256xf32>, vector<8x256xf32>, vector<8x256xf32> -> vector<24x256xf32>
    %c0_46 = arith.constant 0 : index
    %c0_47 = arith.constant 0 : index
    %200 = vector.load %arg2[%c0_46, %c0_47] : memref<32x24xf32, #tpu.memory_space<vmem>>, vector<32x24xf32>
    %cst_48 = arith.constant dense<0.000000e+00> : vector<32x256xf32>
    %201 = tpu.matmul %200, %199, %cst_48 {dimension_numbers = #tpu.dot_dimension_numbers<[1], [0], [0], [1], [0, 0, 1, 1], [], []>} : vector<32x24xf32>, vector<24x256xf32>, vector<32x256xf32> -> vector<32x256xf32>
    %c0_49 = arith.constant 0 : index
    %c0_50 = arith.constant 0 : index
    %202 = vector.load %arg3[%c0_49, %c0_50] : memref<32x1xf32, #tpu.memory_space<vmem>>, vector<32x1xf32>
    %203 = vector.broadcast %202 : vector<32x1xf32> to vector<32x256xf32>
    %204 = arith.addf %201, %203 : vector<32x256xf32>
    %cst_51 = arith.constant 0.000000e+00 : f32
    %205 = vector.broadcast %cst_51 : f32 to vector<32x256xf32>
    %206 = arith.maximumf %204, %205 : vector<32x256xf32>
    %207 = vector.broadcast %39 : vector<1x256xf32> to vector<32x256xf32>
    %208 = arith.mulf %206, %207 : vector<32x256xf32>
    %c0_52 = arith.constant 0 : index
    %c0_53 = arith.constant 0 : index
    %c0_54 = arith.constant 0 : index
    %209 = vector.load %arg4[%c0_52, %c0_53, %c0_54] : memref<1x32x256xf32, #tpu.memory_space<vmem>>, vector<1x32x256xf32>
    %210 = vector.shape_cast %209 : vector<1x32x256xf32> to vector<32x256xf32>
    %211 = vector.shape_cast %208 : vector<32x256xf32> to vector<1x32x256xf32>
    tpu.vector_store %arg4[%c0_52, %c0_53, %c0_54], %211 {strides = array<i32>} : memref<1x32x256xf32, #tpu.memory_space<vmem>>, vector<1x32x256xf32>,
    %212 = tpu.concatenate %208, %39 in 0 : vector<32x256xf32>, vector<1x256xf32> -> vector<33x256xf32>
    %213 = arith.truncf %212 : vector<33x256xf32> to vector<33x256xbf16>
    %214 = tpu.iota {dimensions = array<i32: 0>} : vector<33x256xi32>
    %c0_i32_55 = arith.constant 0 : i32
    %c256_i32_56 = arith.constant 256 : i32
    %215 = arith.muli %c0_i32_55, %c256_i32_56 : i32
    %216 = tpu.assume_multiple %215, 256 : i32
    %217 = vector.broadcast %216 : i32 to vector<256x1xi32>
    %218 = arith.subi %108, %217 : vector<256x1xi32>
    %219 = vector.broadcast %218 : vector<256x1xi32> to vector<256x256xi32>
    %220 = arith.cmpi eq, %115, %219 : vector<256x256xi32>
    %221 = arith.extui %220 : vector<256x256xi1> to vector<256x256xi32>
    %222 = arith.sitofp %221 : vector<256x256xi32> to vector<256x256xf32>
    %223 = arith.truncf %222 : vector<256x256xf32> to vector<256x256xbf16>
    %cst_57 = arith.constant dense<0.000000e+00> : vector<33x256xf32>
    %224 = tpu.matmul %213, %223, %cst_57 {dimension_numbers = #tpu.dot_dimension_numbers<[1], [0], [0], [1], [0, 0, 1, 1], [], []>} : vector<33x256xbf16>, vector<256x256xbf16>, vector<33x256xf32> -> vector<33x256xf32>
    %225 = vector.extract_strided_slice %224 {offsets = [32, 0], sizes = [1, 256], strides = [1, 1]} : vector<33x256xf32> to vector<1x256xf32>
    %cst_58 = arith.constant 1.000000e+00 : f32
    %226 = vector.broadcast %cst_58 : f32 to vector<1x256xf32>
    %227 = arith.maximumf %225, %226 : vector<1x256xf32>
    %228 = tpu.reciprocal %227 {approx = true} : vector<1x256xf32> -> vector<1x256xf32>
    %c32_i32 = arith.constant 32 : i32
    %229 = vector.broadcast %c32_i32 : i32 to vector<33x256xi32>
    %230 = arith.cmpi eq, %214, %229 : vector<33x256xi32>
    %231 = vector.broadcast %228 : vector<1x256xf32> to vector<33x256xf32>
    %232 = arith.mulf %224, %231 : vector<33x256xf32>
    %233 = arith.select %230, %224, %232 : vector<33x256xi1>, vector<33x256xf32>
    %c0_59 = arith.constant 0 : index
    %c0_60 = arith.constant 0 : index
    %234 = arith.index_cast %216 : i32 to index
    %235 = vector.load %arg5[%c0_59, %c0_60, %234] : memref<1x33x1024xf32, #tpu.memory_space<vmem>>, vector<1x33x256xf32>
    %236 = vector.shape_cast %235 : vector<1x33x256xf32> to vector<33x256xf32>
    %237 = vector.shape_cast %233 : vector<33x256xf32> to vector<1x33x256xf32>
    tpu.vector_store %arg5[%c0_59, %c0_60, %234], %237 {strides = array<i32>} : memref<1x33x1024xf32, #tpu.memory_space<vmem>>, vector<1x33x256xf32>,
    %c1_i32_61 = arith.constant 1 : i32
    %c256_i32_62 = arith.constant 256 : i32
    %238 = arith.muli %c1_i32_61, %c256_i32_62 : i32
    %239 = tpu.assume_multiple %238, 256 : i32
    %240 = vector.broadcast %239 : i32 to vector<256x1xi32>
    %241 = arith.subi %108, %240 : vector<256x1xi32>
    %242 = vector.broadcast %241 : vector<256x1xi32> to vector<256x256xi32>
    %243 = arith.cmpi eq, %115, %242 : vector<256x256xi32>
    %244 = arith.extui %243 : vector<256x256xi1> to vector<256x256xi32>
    %245 = arith.sitofp %244 : vector<256x256xi32> to vector<256x256xf32>
    %246 = arith.truncf %245 : vector<256x256xf32> to vector<256x256xbf16>
    %cst_63 = arith.constant dense<0.000000e+00> : vector<33x256xf32>
    %247 = tpu.matmul %213, %246, %cst_63 {dimension_numbers = #tpu.dot_dimension_numbers<[1], [0], [0], [1], [0, 0, 1, 1], [], []>} : vector<33x256xbf16>, vector<256x256xbf16>, vector<33x256xf32> -> vector<33x256xf32>
    %248 = vector.extract_strided_slice %247 {offsets = [32, 0], sizes = [1, 256], strides = [1, 1]} : vector<33x256xf32> to vector<1x256xf32>
    %cst_64 = arith.constant 1.000000e+00 : f32
    %249 = vector.broadcast %cst_64 : f32 to vector<1x256xf32>
    %250 = arith.maximumf %248, %249 : vector<1x256xf32>
    %251 = tpu.reciprocal %250 {approx = true} : vector<1x256xf32> -> vector<1x256xf32>
    %c32_i32_65 = arith.constant 32 : i32
    %252 = vector.broadcast %c32_i32_65 : i32 to vector<33x256xi32>
    %253 = arith.cmpi eq, %214, %252 : vector<33x256xi32>
    %254 = vector.broadcast %251 : vector<1x256xf32> to vector<33x256xf32>
    %255 = arith.mulf %247, %254 : vector<33x256xf32>
    %256 = arith.select %253, %247, %255 : vector<33x256xi1>, vector<33x256xf32>
    %c0_66 = arith.constant 0 : index
    %c0_67 = arith.constant 0 : index
    %257 = arith.index_cast %239 : i32 to index
    %258 = vector.load %arg5[%c0_66, %c0_67, %257] : memref<1x33x1024xf32, #tpu.memory_space<vmem>>, vector<1x33x256xf32>
    %259 = vector.shape_cast %258 : vector<1x33x256xf32> to vector<33x256xf32>
    %260 = vector.shape_cast %256 : vector<33x256xf32> to vector<1x33x256xf32>
    tpu.vector_store %arg5[%c0_66, %c0_67, %257], %260 {strides = array<i32>} : memref<1x33x1024xf32, #tpu.memory_space<vmem>>, vector<1x33x256xf32>,
    %c2_i32_68 = arith.constant 2 : i32
    %c256_i32_69 = arith.constant 256 : i32
    %261 = arith.muli %c2_i32_68, %c256_i32_69 : i32
    %262 = tpu.assume_multiple %261, 256 : i32
    %263 = vector.broadcast %262 : i32 to vector<256x1xi32>
    %264 = arith.subi %108, %263 : vector<256x1xi32>
    %265 = vector.broadcast %264 : vector<256x1xi32> to vector<256x256xi32>
    %266 = arith.cmpi eq, %115, %265 : vector<256x256xi32>
    %267 = arith.extui %266 : vector<256x256xi1> to vector<256x256xi32>
    %268 = arith.sitofp %267 : vector<256x256xi32> to vector<256x256xf32>
    %269 = arith.truncf %268 : vector<256x256xf32> to vector<256x256xbf16>
    %cst_70 = arith.constant dense<0.000000e+00> : vector<33x256xf32>
    %270 = tpu.matmul %213, %269, %cst_70 {dimension_numbers = #tpu.dot_dimension_numbers<[1], [0], [0], [1], [0, 0, 1, 1], [], []>} : vector<33x256xbf16>, vector<256x256xbf16>, vector<33x256xf32> -> vector<33x256xf32>
    %271 = vector.extract_strided_slice %270 {offsets = [32, 0], sizes = [1, 256], strides = [1, 1]} : vector<33x256xf32> to vector<1x256xf32>
    %cst_71 = arith.constant 1.000000e+00 : f32
    %272 = vector.broadcast %cst_71 : f32 to vector<1x256xf32>
    %273 = arith.maximumf %271, %272 : vector<1x256xf32>
    %274 = tpu.reciprocal %273 {approx = true} : vector<1x256xf32> -> vector<1x256xf32>
    %c32_i32_72 = arith.constant 32 : i32
    %275 = vector.broadcast %c32_i32_72 : i32 to vector<33x256xi32>
    %276 = arith.cmpi eq, %214, %275 : vector<33x256xi32>
    %277 = vector.broadcast %274 : vector<1x256xf32> to vector<33x256xf32>
    %278 = arith.mulf %270, %277 : vector<33x256xf32>
    %279 = arith.select %276, %270, %278 : vector<33x256xi1>, vector<33x256xf32>
    %c0_73 = arith.constant 0 : index
    %c0_74 = arith.constant 0 : index
    %280 = arith.index_cast %262 : i32 to index
    %281 = vector.load %arg5[%c0_73, %c0_74, %280] : memref<1x33x1024xf32, #tpu.memory_space<vmem>>, vector<1x33x256xf32>
    %282 = vector.shape_cast %281 : vector<1x33x256xf32> to vector<33x256xf32>
    %283 = vector.shape_cast %279 : vector<33x256xf32> to vector<1x33x256xf32>
    tpu.vector_store %arg5[%c0_73, %c0_74, %280], %283 {strides = array<i32>} : memref<1x33x1024xf32, #tpu.memory_space<vmem>>, vector<1x33x256xf32>,
    %c3_i32_75 = arith.constant 3 : i32
    %c256_i32_76 = arith.constant 256 : i32
    %284 = arith.muli %c3_i32_75, %c256_i32_76 : i32
    %285 = tpu.assume_multiple %284, 256 : i32
    %286 = vector.broadcast %285 : i32 to vector<256x1xi32>
    %287 = arith.subi %108, %286 : vector<256x1xi32>
    %288 = vector.broadcast %287 : vector<256x1xi32> to vector<256x256xi32>
    %289 = arith.cmpi eq, %115, %288 : vector<256x256xi32>
    %290 = arith.extui %289 : vector<256x256xi1> to vector<256x256xi32>
    %291 = arith.sitofp %290 : vector<256x256xi32> to vector<256x256xf32>
    %292 = arith.truncf %291 : vector<256x256xf32> to vector<256x256xbf16>
    %cst_77 = arith.constant dense<0.000000e+00> : vector<33x256xf32>
    %293 = tpu.matmul %213, %292, %cst_77 {dimension_numbers = #tpu.dot_dimension_numbers<[1], [0], [0], [1], [0, 0, 1, 1], [], []>} : vector<33x256xbf16>, vector<256x256xbf16>, vector<33x256xf32> -> vector<33x256xf32>
    %294 = vector.extract_strided_slice %293 {offsets = [32, 0], sizes = [1, 256], strides = [1, 1]} : vector<33x256xf32> to vector<1x256xf32>
    %cst_78 = arith.constant 1.000000e+00 : f32
    %295 = vector.broadcast %cst_78 : f32 to vector<1x256xf32>
    %296 = arith.maximumf %294, %295 : vector<1x256xf32>
    %297 = tpu.reciprocal %296 {approx = true} : vector<1x256xf32> -> vector<1x256xf32>
    %c32_i32_79 = arith.constant 32 : i32
    %298 = vector.broadcast %c32_i32_79 : i32 to vector<33x256xi32>
    %299 = arith.cmpi eq, %214, %298 : vector<33x256xi32>
    %300 = vector.broadcast %297 : vector<1x256xf32> to vector<33x256xf32>
    %301 = arith.mulf %293, %300 : vector<33x256xf32>
    %302 = arith.select %299, %293, %301 : vector<33x256xi1>, vector<33x256xf32>
    %c0_80 = arith.constant 0 : index
    %c0_81 = arith.constant 0 : index
    %303 = arith.index_cast %285 : i32 to index
    %304 = vector.load %arg5[%c0_80, %c0_81, %303] : memref<1x33x1024xf32, #tpu.memory_space<vmem>>, vector<1x33x256xf32>
    %305 = vector.shape_cast %304 : vector<1x33x256xf32> to vector<33x256xf32>
    %306 = vector.shape_cast %302 : vector<33x256xf32> to vector<1x33x256xf32>
    tpu.vector_store %arg5[%c0_80, %c0_81, %303], %306 {strides = array<i32>} : memref<1x33x1024xf32, #tpu.memory_space<vmem>>, vector<1x33x256xf32>,
    %c4_i32_82 = arith.constant 4 : i32
    return
  }
  func.func @transform_0(%arg0: i32) -> (i32, i32, i32) {
    %c0_i32 = arith.constant 0 : i32
    %c0_i32_0 = arith.constant 0 : i32
    %c0_i32_1 = arith.constant 0 : i32
    return %arg0, %c0_i32, %c0_i32_0 : i32, i32, i32
  }
  func.func @transform_1(%arg0: i32) -> (i32, i32) {
    %c0_i32 = arith.constant 0 : i32
    %c0_i32_0 = arith.constant 0 : i32
    %c0_i32_1 = arith.constant 0 : i32
    return %c0_i32, %c0_i32_0 : i32, i32
  }
  func.func @transform_2(%arg0: i32) -> (i32, i32) {
    %c0_i32 = arith.constant 0 : i32
    %c0_i32_0 = arith.constant 0 : i32
    %c0_i32_1 = arith.constant 0 : i32
    return %c0_i32, %c0_i32_0 : i32, i32
  }
  func.func @transform_3(%arg0: i32) -> (i32, i32, i32) {
    %c0_i32 = arith.constant 0 : i32
    %c0_i32_0 = arith.constant 0 : i32
    %c0_i32_1 = arith.constant 0 : i32
    return %arg0, %c0_i32, %c0_i32_0 : i32, i32, i32
  }
  func.func @transform_4(%arg0: i32) -> (i32, i32, i32) {
    %c0_i32 = arith.constant 0 : i32
    %c0_i32_0 = arith.constant 0 : i32
    %c0_i32_1 = arith.constant 0 : i32
    return %arg0, %c0_i32, %c0_i32_0 : i32, i32, i32
  }
}

</mosaic_0001>

<bundles_post_ra>
// kernel: tpu_custom_call.1
= control target key start
LH: loop header
LB: loop body
LE: loop exit
PB: predicated region body
PF: predicated region fallthrough
CT: control target
= control target key end

     0   :  { %10 = vsyncpa [#allocation3], 0  ;;  %s8020_s0 = inlined_call_operand.hbm [shape: f32[6,8,256], index: 0, kind: input, shape index: {}]   ;;  %s8021_s1 = inlined_call_operand.vmem [shape: f32[32,24], index: 1, kind: input, shape index: {}]   ;;  %s8022_s2 = inlined_call_operand.vmem [shape: f32[32,1], index: 2, kind: input, shape index: {}]   ;;  %s8023_s3 = inlined_call_operand.hbm [shape: f32[6,32,256], index: 3, kind: output, shape index: {0}]   ;;  %s8024_s4 = inlined_call_operand.hbm [shape: f32[6,33,1024], index: 4, kind: output, shape index: {1}]  }
   0x1   :  { %12 = vsyncpa [#allocation3 + $0x1], 0 }
   0x2   :  { %13 = vsyncpa [#allocation4], 0 }
   0x3   :  { %15 = vsyncpa [#allocation4 + $0x1], 0 }
   0x4   :  { %16 = vsyncpa [#allocation7], 0 }
   0x5   :  { %18 = vsyncpa [#allocation7 + $0x1], 0  ;;  %s4936_s15 = smov 0   ;;  %s4938_s16 = smov 0  }
   0x6   :  { %s4940_s17 = smov 0   ;;  %s4942_s18 = smov 0  }
   0x7 LB: > { %s4957_s19 = sadd.s32 4294967295, %s4895_s18   ;;  %s3404_s20 = sadd.s32 4294967294, %s4895_s18   ;;  %s4895_s18 = sphi %s4942_s18, %s9144_s18   ;;  %s4891_s17 = sphi %s4940_s17, %s9143_s17   ;;  %s4887_s16 = sphi %s4938_s16, %s9142_s16   ;;  %s4883_s15 = sphi %s4936_s15, %s9141_s15  }
   0x8   : > { %s4961_s21 = sadd.s32 1, %s4895_s18   ;;  %s31_s22 = sadd.s32 1, %s4891_s17 }
   0x9   : > { %s28_s23 = ssub.s32 %s4895_s18, %s4961_s21  ;;  %p38_p0 = scmp.ne.s32.totalorder %s4891_s17, %s4887_s16 }
   0xa   : > { %p29_p1 = scmp.eq.s32.totalorder %s28_s23, 0  ;;  %p39_p2 = scmp.eq.s32.totalorder %s4895_s18, 0 }
   0xb   : > { %p44_p3 = scmp.ne.s32.totalorder %s4887_s16, %s4883_s15  ;;  %p45_p4 = scmp.eq.s32.totalorder %s4957_s19, 0 }
   0xc   : > { %s4973_s24 = scalar_select %p29_p1, %s4891_s17, %s31_s22  }
   0xd   : > { %p4975_p5 = por %p39_p2, %p38_p0  ;;  %p4979_p6 = por %p45_p4, %p44_p3 }
   0xe   : > { %p110_p7 = scmp.eq.s32.totalorder %s4957_s19, 5  ;;  %p116_p8 = scmp.eq.s32.totalorder %s3404_s20, 5 }
   0xf   : > { %p4682_p9 = scmp.lt.s32.totalorder %s4895_s18, 6  ;;  %s168_s29 = sand.u32 1, %s4891_s17  }
  0x10   : > { %p4985_p10 = por %p110_p7, %p38_p0  ;;  %p4989_p11 = por %p116_p8, %p44_p3 }
  0x11   : > { %s4579_s30 = sshll.u32 %s4895_s18, 8  ;;  %s3407_s5 = sshll.u32 %s168_s29, 4 }
  0x12   : > { %s8411_s27 = scalar_select %p4985_p10, 1, 0 }
  0x13   : > { %s8412_s28 = scalar_select %p4989_p11, 1, 0 }
  0x14   : > { %s4998_s8 = scalar_lea.hbm %s8020_s0, %s4579_s30  ;;  %s172_s9 = scalar_lea.vmem [#allocation2], %s3407_s5 }
  0x15   : > { %s180_s10 = sshll.u32 %s172_s9, 4  ;;  %p5002_p12 = pnand %p4682_p9, %p4975_p5  ;;  %s5006_s10 = int_to_ptr.vmem [resolvable:$true] %s180_s10 }
  0x16   : > { %s169_s12 = scalar_lea.sflag [#allocation3], %s168_s29  ;;  %s4767_s13 = scalar_lea.hbm %s4998_s8, 256 }
  0x17   : > { %p4768_p1 = scmp.ne.s32.totalorder %s4998_s8, %s4767_s13  ;;  %p4769_p2 = pneg %p5002_p12 }
  0x18   : > { %s4772_s22 = scalar_lea.hbm %s8020_s0, 1536  ;;  %p4773_p5 = scmp.lt.u32.totalorder %s4998_s8, %s8020_s0 }
  0x19   : > { %p4770_p3 = pnand %p4769_p2, %p4768_p1  ;;  %p4774_p7 = scmp.lt.u32.totalorder %s4772_s22, %s4767_s13 }
  0x1a   : > { %p4776_p9 = scmp.lt.u32.totalorder %s4767_s13, %s4998_s8 }
  0x1b   : > { %p4771_p4 = pneg %p4770_p3  ;;  %p4775_p8 = por %p4774_p7, %p4773_p5 }
  0x1d   : > { %p4777_p13 = por %p4776_p9, %p4775_p8 }
  0x1f   : > { %p4778_p0 = pnand %p4777_p13, %p4771_p4 }
  0x21   : > { %4781 = shalt.err (!%p4778_p0)
}
  0x22   : > { %s4782_s29 = scalar_lea.vmem %s5006_s10, 256  ;;  %s4897_s30 = smov [#allocation2]  }
  0x23   : > { %p4783_p1 = scmp.ne.s32.totalorder %s5006_s10, %s4782_s29  ;;  %s4787_s5 = sshll.u32 %s4897_s30, 4  ;;  %s4788_s5 = int_to_ptr.vmem [resolvable:$false] %s4787_s5 }
  0x24   : > { %s4789_s6 = scalar_lea.vmem %s4788_s5, 512  ;;  %p4790_p10 = scmp.lt.s32.totalorder %s5006_s10, %s4788_s5 }
  0x25   : > { %p4785_p3 = pnand %p4783_p1, %p4769_p2  ;;  %p4791_p5 = scmp.lt.s32.totalorder %s4789_s6, %s4782_s29 }
  0x27   : > { %p4786_p11 = pneg %p4785_p3  ;;  %p4792_p7 = por %p4791_p5, %p4790_p10 }
  0x29   : > { %p4793_p8 = pnand %p4792_p7, %p4786_p11 }
  0x2b   : > { %4796 = shalt.err (!%p4793_p8)
}
  0x2c   : > { %4674 = dma.hbm_to_vmem [thread:$0]  (!%p5002_p12), %s4998_s8, 256, %s5006_s10, %s169_s12  }
  0x2d   : > { %p8414_p13 = scmp.lt.s32.totalorder %s4895_s18, 7  ;;  %p8415_p0 = scmp.ge.s32.totalorder %s4895_s18, 1 }
  0x2f   : > { %p186_p2 = pnand %p8415_p0, %p8414_p13 }
  0x31   : > { %189 = sbr.rel (%p186_p2) target bundleno = 2317 (0x90d), region = 32 }
  0x38   : > { %s5040_s7 = sand.u32 1, %s4887_s16  }
  0x39   : > { %s3411_s9 = sshll.u32 %s5040_s7, 4  ;;  %s192_s13 = scalar_lea.sflag [#allocation3], %s5040_s7 }
  0x3a   : > { %s5044_s14 = scalar_lea.vmem [#allocation2], %s3411_s9 }
  0x3b   : > { %4870 = dma.done.wait (%p4979_p6), %s192_s13, 256  }
  0x3c   : > { %4872 = vsyncadd (%p4979_p6), %s192_s13, 4294967040  ;;  %v225_v0 = vld [vmem:[%s5044_s14] sm:$0xff]  ;;  %v226_v1 = vld [vmem:[%s5044_s14 + $0x8] sm:$0xff]  ;;  %v8031_v8 = vlaneseq  ;;  %v8029_v13 = vmov 0   ;;  %v8027_v42 = vmov 0.0   ;;  %s4900_s26 = smov 126  }
  0x3d   : > { %v3413_v2 = vadd.f32 3.2, %v225_v0  ;;  %v3415_v3 = vadd.f32 1.0, %v225_v0  ;;  %v3414_v6 = vadd.f32 3.2, %v226_v1  ;;  %v3416_v7 = vadd.f32 1.0, %v226_v1 }
  0x3e   : > { %v5061_v16 = vshrl.u32 %v8031_v8, 7  ;;  %s4901_s8 = smov 127   ;;  %s4902_s10 = smov 3  }
  0x3f   : > { %v231_v4 = vmul.f32 2.5, %v3413_v2  ;;  %v237_v5 = vmul.f32 2.0, %v3415_v3  ;;  %v232_v11 = vmul.f32 2.5, %v3414_v6  ;;  %v238_v12 = vmul.f32 2.0, %v3416_v7  ;;  %s3412_s11 = sshll.u32 %s5040_s7, 6  ;;  %s4599_s20 = smul.u32 320, %s5040_s7 }
  0x40   : > { %8416 = vst [vmem:[#allocation11_spill] sm:$0xff] %v5061_v16  ;;  %v5078_v26 = vsub.s32 2, %v5061_v16  ;;  %v5089_v32 = vsub.s32 1, %v5061_v16  ;;  %v5092_v33 = vsub.s32 0, %v5061_v16  ;;  %vm296_vm12 = vcmp.eq.s32.totalorder %v5061_v16, 1  ;;  %s7525_s12 = scalar_lea.vmem [#allocation5], %s3412_s11 }
  0x41   : > { %v5052_v9 = vfloor.f32 %v231_v4  ;;  %v5054_v10 = vfloor.f32 %v237_v5  ;;  %v5069_v20 = vfloor.f32 %v232_v11  ;;  %v5071_v21 = vfloor.f32 %v238_v12  ;;  %s7873_s22 = scalar_lea.vmem [#allocation6], %s4599_s20  ;;  %s4580_s23 = sshll.u32 %s4957_s19, 10 }
  0x42   : > { %8421 = vst [vmem:[#allocation12_spill] sm:$0xff] %v5092_v33  ;;  %vm297_vm13 = vcmp.eq.s32.totalorder %v5061_v16, 2  ;;  %vm8060_vm14 = vcmp.eq.s32.totalorder %v5061_v16, 3  ;;  %s3283_s25 = sshll.u32 %s7525_s12, 4  ;;  %s7910_s5 = scalar_lea.hbm %s8023_s3, %s4580_s23  ;;  %s7912_s25 = int_to_ptr.vmem [resolvable:$true] %s3283_s25 }
  0x43   : > { %vm241_vm0 = vcmp.ge.f32.partialorder %v5052_v9, 0.0  ;;  %vm243_vm1 = vcmp.lt.f32.partialorder %v5052_v9, 16.0  ;;  %vm263_vm3 = vcmp.ge.f32.partialorder %v5054_v10, 0.0  ;;  %vm273_vm4 = vcmp.lt.f32.partialorder %v5054_v10, 4.0  ;;  %s3265_s6 = scalar_lea.sflag [#allocation4], %s5040_s7  ;;  %s4797_s9 = scalar_lea.vmem %s7912_s25, 1024 }
  0x44   : > { %v247_v14 = vsel %vm241_vm0, 1, %v8029_v13  ;;  %v255_v15 = vsel %vm243_vm1, 1, %v8029_v13  ;;  %vm5063_vm2 = vmand %vm241_vm0, %vm243_vm1  ;;  %v265_v22 = vsel %vm263_vm3, 1, %v8029_v13  ;;  %v275_v23 = vsel %vm273_vm4, 1, %v8029_v13  ;;  %p4798_p6 = scmp.ne.s32.totalorder %s7912_s25, %s4797_s9  ;;  %p9139_p10 = scmp.ne.s32.totalorder %s8411_s27, 0 }
  0x45   : > { %v249_v18 = vrot.slane %v247_v14, 1  ;;  %v257_v19 = vrot.slane %v255_v15, 1  ;;  %v267_v24 = vrot.slane %v265_v22, 2  ;;  %v277_v25 = vrot.slane %v275_v23, 2  ;;  %s4905_s13 = smov [#allocation5]  }
  0x46   : > { %v287_v28 = vmul.f32 0.4, %v5052_v9  ;;  %v288_v29 = vmul.f32 0.4, %v5069_v20  ;;  %v291_v30 = vmul.f32 0.5, %v5054_v10  ;;  %v292_v31 = vmul.f32 0.5, %v5071_v21  ;;  %p4799_p11 = pnand %p4798_p6, %p9139_p10 }
  0x47   : > { %vm251_vm5 = vcmp.ne.s32.totalorder %v249_v18, 0  ;;  %vm259_vm6 = vcmp.ne.s32.totalorder %v257_v19, 0  ;;  %vm269_vm9 = vcmp.ne.s32.totalorder %v267_v24, 0  ;;  %vm279_vm10 = vcmp.ne.s32.totalorder %v277_v25, 0 }
  0x48   : > { %vm253_vm7 = vmand %vm5063_vm2, %vm251_vm5  ;;  %v289_v34 = vadd.f32 -3.0, %v287_v28  ;;  %v290_v35 = vadd.f32 -3.0, %v288_v29  ;;  %v293_v36 = vadd.f32 -0.75, %v291_v30  ;;  %v294_v37 = vadd.f32 -0.75, %v292_v31  ;;  %p4800_p12 = pneg %p4799_p11 }
  0x49   : > { %vm5080_vm8 = vmand %vm253_vm7, %vm259_vm6  ;;  %v346_v46 = vrot.slane %v5054_v10, %v5078_v26  ;;  %v356_v50 = vrot.slane %v5052_v9, %v5089_v32  ;;  %vm8026_vm0 = vcmp.eq.s32.totalorder %v5061_v16, 0  ;;  %v366_v53 = vrot.slane %v5052_v9, %v5092_v33 }
  0x4a   : > { %vm271_vm11 = vmand %vm5080_vm8, %vm269_vm9  ;;  %v301_v38 = vrot.slane %v293_v36, %v5078_v26  ;;  %v305_v39 = vrot.slane %v294_v37, %v5078_v26  ;;  %v311_v40 = vrot.slane %v289_v34, %v5089_v32  ;;  %v315_v41 = vrot.slane %v290_v35, %v5089_v32 }
  0x4b   : > { %vm281_vm15 = vmand %vm271_vm11, %vm279_vm10  ;;  %v321_v44 = vrot.slane %v289_v34, %v5092_v33  ;;  %v325_v45 = vrot.slane %v290_v35, %v5092_v33  ;;  %vm242_vm1 = vcmp.ge.f32.partialorder %v5069_v20, 0.0  ;;  %vm244_vm2 = vcmp.lt.f32.partialorder %v5069_v20, 16.0 }
  0x4c   : > { %v5104_v43 = vsel %vm281_vm15, 1.0, %v8027_v42  ;;  %v306_v47 = vsel %vm297_vm13, %v301_v38, %v225_v0  ;;  %v307_v48 = vsel %vm297_vm13, %v305_v39, %v226_v1  ;;  %v248_v60 = vsel %vm242_vm1, 1, %v8029_v13  ;;  %vm246_vm5 = vmand %vm242_vm1, %vm244_vm2 }
  0x4d   : > { %8422 = vst [vmem:[#allocation13_spill] sm:$0xff] %v5104_v43  ;;  %v5116_v49 = vrot.slane %v5104_v43, %v5092_v33  ;;  %v316_v51 = vsel %vm296_vm12, %v311_v40, %v306_v47  ;;  %v317_v52 = vsel %vm296_vm12, %v315_v41, %v307_v48  ;;  %v250_v61 = vrot.slane %v248_v60, 1 }
  0x4e   : > { %v5129_v54 = vsel %vm8026_vm0, %v321_v44, %v316_v51  ;;  %v5133_v55 = vsel %vm8026_vm0, %v325_v45, %v317_v52  ;;  %v256_v62 = vsel %vm244_vm2, 1, %v8029_v13  ;;  %vm264_vm3 = vcmp.ge.f32.partialorder %v5071_v21, 0.0 }
  0x4f   : > { %8423 = vst [vmem:[#allocation14_spill] sm:$0xff] %v5116_v49  ;;  %8424 = vst [vmem:[#allocation15_spill] sm:$0xff] %v5129_v54  ;;  %v341_v56 = vsel %vm8060_vm14, %v5116_v49, 0.0  ;;  %v258_v63 = vrot.slane %v256_v62, 1  ;;  %v266_v0 = vsel %vm264_vm3, 1, %v8029_v13  ;;  %vm274_vm4 = vcmp.lt.f32.partialorder %v5071_v21, 4.0 }
  0x50   : > { %8425 = vst [vmem:[#allocation16_spill] sm:$0xff] %v5133_v55  ;;  %v351_v57 = vsel %vm297_vm13, %v346_v46, %v341_v56  ;;  %vm252_vm6 = vcmp.ne.s32.totalorder %v250_v61, 0  ;;  %v268_v1 = vrot.slane %v266_v0, 2  ;;  %v276_v2 = vsel %vm274_vm4, 1, %v8029_v13 }
  0x51   : > { %v361_v58 = vsel %vm296_vm12, %v356_v50, %v351_v57  ;;  %vm254_vm7 = vmand %vm246_vm5, %vm252_vm6  ;;  %vm260_vm8 = vcmp.ne.s32.totalorder %v258_v63, 0  ;;  %v278_v3 = vrot.slane %v276_v2, 2  ;;  %v350_v6 = vrot.slane %v5071_v21, %v5078_v26 }
  0x52   : > { %v371_v59 = vsel %vm8026_vm0, %v366_v53, %v361_v58  ;;  %vm262_vm9 = vmand %vm254_vm7, %vm260_vm8  ;;  %vm270_vm10 = vcmp.ne.s32.totalorder %v268_v1, 0  ;;  %v360_v9 = vrot.slane %v5069_v20, %v5089_v32  ;;  %v370_v11 = vrot.slane %v5069_v20, %v5092_v33 }
  0x53   : > { %373 = vxpose.xlu0.b32.start.end [1/1] (short) %v371_v59, 128  ;;  %vm272_vm11 = vmand %vm262_vm9, %vm270_vm10  ;;  %vm280_vm15 = vcmp.ne.s32.totalorder %v278_v3, 0 }
  0x54   : > { %vm282_vm0 = vmand %vm272_vm11, %vm280_vm15 }
  0x55   : > { %v5153_v4 = vsel %vm282_vm0, 1.0, %v8027_v42  ;;  %vm8428_vm0 = vcmp.eq.s32.totalorder %v5061_v16, 0 }
  0x56   : > { %8426 = vst [vmem:[#allocation17_spill] sm:$0xff] %v5153_v4  ;;  %v5157_v5 = vrot.slane %v5153_v4, %v5092_v33 }
  0x58   : > { %8427 = vst [vmem:[#allocation18_spill] sm:$0xff] %v5157_v5  ;;  %v342_v7 = vsel %vm8060_vm14, %v5157_v5, 0.0 }
  0x59   : > { %v352_v10 = vsel %vm297_vm13, %v350_v6, %v342_v7 }
  0x5a   : > { %v362_v12 = vsel %vm296_vm12, %v360_v9, %v352_v10 }
  0x5b   : > { %v372_v14 = vsel %vm8428_vm0, %v370_v11, %v362_v12 }
  0x90   : > { %405 = vxpose.xlu0.b32.start.end [1/1] (short) %v372_v14, 128 }
  0xd3   : > { %v5174_v15 = vpop.trf.xlu0 }
  0xd4   : > { %v4600_v17 = vtrunc.f32 %v5174_v15  ;;  %vm469_vm13 = vcmp.gt.f32.partialorder %v5174_v15, 0.5 }
  0xd6   : > { %v5177_v18 = vcvt.f32.s32 %v4600_v17 }
  0xd7   : > { %v5179_v19 = vpop.trf.xlu0 }
  0xd8   : > { %v4602_v21 = vtrunc.f32 %v5179_v19  ;;  %661 = vrot.lane.b32.xlu1 %v5177_v18, %s4900_s26  ;;  %v533_v20 = vmul.u32 4, %v5177_v18  ;;  %vm470_vm12 = vcmp.gt.f32.partialorder %v5179_v19, 0.5 }
  0xda   : > { %v5188_v23 = vcvt.f32.s32 %v4602_v21 }
  0xdb   : > { %v5185_v22 = vpop.trf.xlu0 }
  0xdc   : > { %565 = vrot.lane.b32.xlu1 %v533_v20, %s4901_s8  ;;  %v4604_v25 = vtrunc.f32 %v5185_v22  ;;  %v534_v26 = vmul.u32 4, %v5188_v23  ;;  %v502_v5 = vmul.u32 64, %v5188_v23  ;;  %vm471_vm1 = vcmp.gt.f32.partialorder %v5185_v22, 0.5 }
  0xde   : > { %v5199_v28 = vcvt.f32.s32 %v4604_v25 }
  0xdf   : > { %v5190_v24 = vpop.trf.xlu0 }
  0xe0   : > { %663 = vrot.lane.b32.xlu1 %v5188_v23, %s4900_s26  ;;  %v4606_v30 = vtrunc.f32 %v5190_v24  ;;  %v535_v31 = vmul.u32 4, %v5199_v28  ;;  %vm472_vm2 = vcmp.gt.f32.partialorder %v5190_v24, 0.5 }
  0xe2   : > { %v5210_v34 = vcvt.f32.s32 %v4606_v30 }
  0xe3   : > { %v5196_v27 = vpop.trf.xlu0 }
  0xe4   : > { %567 = vrot.lane.b32.xlu1 %v534_v26, %s4901_s8  ;;  %v4608_v36 = vtrunc.f32 %v5196_v27  ;;  %v536_v37 = vmul.u32 4, %v5210_v34  ;;  %vm473_vm3 = vcmp.gt.f32.partialorder %v5196_v27, 0.5 }
  0xe6   : > { %v5221_v39 = vcvt.f32.s32 %v4608_v36 }
  0xe7   : > { %v5201_v29 = vpop.trf.xlu0 }
  0xe8   : > { %665 = vrot.lane.b32.xlu1 %v5199_v28, %s4900_s26  ;;  %v4610_v44 = vtrunc.f32 %v5201_v29  ;;  %v537_v46 = vmul.u32 4, %v5221_v39  ;;  %vm474_vm4 = vcmp.gt.f32.partialorder %v5201_v29, 0.5 }
  0xea   : > { %v5237_v50 = vcvt.f32.s32 %v4610_v44 }
  0xeb   : > { %v5207_v32 = vpop.trf.xlu0 }
  0xec   : > { %569 = vrot.lane.b32.xlu1 %v535_v31, %s4901_s8  ;;  %v4612_v52 = vtrunc.f32 %v5207_v32  ;;  %v538_v53 = vmul.u32 4, %v5237_v50  ;;  %vm475_vm5 = vcmp.gt.f32.partialorder %v5207_v32, 0.5 }
  0xee   : > { %v5248_v57 = vcvt.f32.s32 %v4612_v52 }
  0xef   : > { %v5212_v35 = vpop.trf.xlu0 }
  0xf0   : > { %667 = vrot.lane.b32.xlu1 %v5210_v34, %s4900_s26  ;;  %v4614_v59 = vtrunc.f32 %v5212_v35  ;;  %v539_v60 = vmul.u32 4, %v5248_v57  ;;  %vm476_vm6 = vcmp.gt.f32.partialorder %v5212_v35, 0.5 }
  0xf2   : > { %v5260_v63 = vcvt.f32.s32 %v4614_v59 }
  0xf3   : > { %v5218_v38 = vpop.trf.xlu0 }
  0xf4   : > { %571 = vrot.lane.b32.xlu1 %v536_v37, %s4901_s8  ;;  %v4616_v62 = vtrunc.f32 %v5218_v38  ;;  %v540_v2 = vmul.u32 4, %v5260_v63  ;;  %vm477_vm7 = vcmp.gt.f32.partialorder %v5218_v38, 0.5 }
  0xf6   : > { %v5266_v1 = vcvt.f32.s32 %v4616_v62 }
  0xf7   : > { %v5223_v40 = vpop.trf.xlu0 }
  0xf8   : > { %v4618_v41 = vtrunc.f32 %v5223_v40  ;;  %669 = vrot.lane.b32.xlu1 %v5221_v39, %s4900_s26  ;;  %v541_v6 = vmul.u32 4, %v5266_v1  ;;  %vm478_vm8 = vcmp.gt.f32.partialorder %v5223_v40, 0.5 }
  0xfa   : > { %v5229_v45 = vcvt.f32.s32 %v4618_v41 }
  0xfb   : > { %v5232_v47 = vpop.trf.xlu0 }
  0xfc   : > { %573 = vrot.lane.b32.xlu1 %v537_v46, %s4901_s8  ;;  %v542_v48 = vmul.u32 4, %v5229_v45  ;;  %vm479_vm9 = vcmp.gt.f32.partialorder %v5232_v47, 0.5 }
  0xfe   : > { %583 = vrot.lane.b32.xlu0 %v542_v48, %s4901_s8 }
  0xff   : > { %v5239_v51 = vpop.trf.xlu0 }
 0x100   : > { %671 = vrot.lane.b32.xlu1 %v5237_v50, %s4900_s26  ;;  %v4622_v4 = vtrunc.f32 %v5239_v51  ;;  %vm480_vm10 = vcmp.gt.f32.partialorder %v5239_v51, 0.5 }
 0x103   : > { %v5245_v56 = vpop.trf.xlu0 }
 0x104   : > { %575 = vrot.lane.b32.xlu1 %v538_v53, %s4901_s8  ;;  %vm481_vm11 = vcmp.gt.f32.partialorder %v5245_v56, 0.5 }
 0x107   : > { %v5250_v58 = vpop.trf.xlu0 }
 0x108   : > { %673 = vrot.lane.b32.xlu1 %v5248_v57, %s4900_s26  ;;  %vm482_vm15 = vcmp.gt.f32.partialorder %v5250_v58, 0.5 }
 0x10b   : > { %v5256_v61 = vpop.trf.xlu0 }
 0x10c   : > { %8429 = vst [vmem:[#allocation19_spill] sm:$0xff] %v5256_v61  ;;  %577 = vrot.lane.b32.xlu1 %v539_v60, %s4901_s8 }
 0x10f   : > { %v5262_v0 = vpop.trf.xlu0 }
 0x110   : > { %8430 = vst [vmem:[#allocation20_spill] sm:$0xff] %v5262_v0  ;;  %675 = vrot.lane.b32.xlu1 %v5260_v63, %s4900_s26 }
 0x113   : > { %v5269_v3 = vpop.trf.xlu0  ;;  %v8447_v51 = vld [vmem:[#allocation19_spill] sm:$0xff] }
 0x114   : > { %8431 = vst [vmem:[#allocation21_spill] sm:$0xff] %v5269_v3  ;;  %579 = vrot.lane.b32.xlu1 %v540_v2, %s4901_s8  ;;  %v4632_v9 = vtrunc.f32 %v5269_v3  ;;  %vm483_vm0 = vcmp.gt.f32.partialorder %v8447_v51, 0.5  ;;  %v8464_v51 = vld [vmem:[#allocation16_spill] sm:$0xff] }
 0x116   : > { %v5279_v11 = vcvt.f32.s32 %v4632_v9 }
 0x117   : > { %v5273_v7 = vpop.trf.xlu0 }
 0x118   : > { %8432 = vst [vmem:[#allocation22_spill] sm:$0xff] %v5273_v7  ;;  %581 = vrot.lane.b32.xlu1 %v541_v6, %s4901_s8  ;;  %v4634_v12 = vtrunc.f32 %v5273_v7  ;;  %v549_v21 = vmul.u32 4, %v5279_v11 }
 0x11a   : > { %v5286_v17 = vcvt.f32.s32 %v4634_v12 }
 0x11b   : > { %v5277_v10 = vpop.trf.xlu0 }
 0x11c   : > { %8433 = vst [vmem:[#allocation23_spill] sm:$0xff] %v5277_v10  ;;  %677 = vrot.lane.b32.xlu1 %v5266_v1, %s4900_s26  ;;  %v550_v25 = vmul.u32 4, %v5286_v17  ;;  %v4636_v30 = vtrunc.f32 %v5277_v10 }
 0x11e   : > { %v5304_v41 = vcvt.f32.s32 %v4636_v30 }
 0x11f   : > { %v5284_v14 = vpop.trf.xlu0 }
 0x120   : > { %8434 = vst [vmem:[#allocation24_spill] sm:$0xff] %v5284_v14  ;;  %679 = vrot.lane.b32.xlu1 %v5229_v45, %s4900_s26  ;;  %v4638_v44 = vtrunc.f32 %v5284_v14  ;;  %v551_v53 = vmul.u32 4, %v5304_v41 }
 0x122   : > { %v5313_v48 = vcvt.f32.s32 %v4638_v44 }
 0x123   : > { %v5291_v20 = vpop.trf.xlu0 }
 0x124   : > { %8435 = vst [vmem:[#allocation25_spill] sm:$0xff] %v5291_v20  ;;  %597 = vrot.lane.b32.xlu1 %v549_v21, %s4901_s8  ;;  %v552_v2 = vmul.u32 4, %v5313_v48  ;;  %v4640_v9 = vtrunc.f32 %v5291_v20 }
 0x126   : > { %v5338_v30 = vcvt.f32.s32 %v4640_v9 }
 0x127   : > { %v5295_v26 = vpop.trf.xlu0 }
 0x128   : > { %8436 = vst [vmem:[#allocation26_spill] sm:$0xff] %v5295_v26  ;;  %v4642_v31 = vtrunc.f32 %v5295_v26  ;;  %599 = vrot.lane.b32.xlu1 %v550_v25, %s4901_s8 }
 0x12a   : > { %v5300_v36 = vcvt.f32.s32 %v4642_v31 }
 0x12b   : > { %v5302_v37 = vpop.trf.xlu0 }
 0x12c   : > { %8437 = vst [vmem:[#allocation27_spill] sm:$0xff] %v5302_v37  ;;  %693 = vrot.lane.b32.xlu1 %v5279_v11, %s4900_s26  ;;  %703 = vrot.lane.b32.xlu0 %v5300_v36, %s4900_s26 }
 0x12f   : > { %v5311_v46 = vpop.trf.xlu0 }
 0x130   : > { %8438 = vst [vmem:[#allocation28_spill] sm:$0xff] %v5311_v46  ;;  %v4646_v52 = vtrunc.f32 %v5311_v46  ;;  %695 = vrot.lane.b32.xlu1 %v5286_v17, %s4900_s26 }
 0x132   : > { %v5319_v59 = vcvt.f32.s32 %v4646_v52 }
 0x133   : > { %v5321_v60 = vpop.trf.xlu0 }
 0x134   : > { %8439 = vst [vmem:[#allocation29_spill] sm:$0xff] %v5321_v60  ;;  %601 = vrot.lane.b32.xlu1 %v551_v53, %s4901_s8  ;;  %v556_v62 = vmul.u32 4, %v5319_v59  ;;  %v553_v53 = vmul.u32 4, %v5338_v30 }
 0x136   : > { %611 = vrot.lane.b32.xlu0 %v556_v62, %s4901_s8 }
 0x137   : > { %v5327_v6 = vpop.trf.xlu0 }
 0x138   : > { %8440 = vst [vmem:[#allocation30_spill] sm:$0xff] %v5327_v6  ;;  %v4650_v12 = vtrunc.f32 %v5327_v6  ;;  %603 = vrot.lane.b32.xlu1 %v552_v2, %s4901_s8 }
 0x13a   : > { %v5332_v21 = vcvt.f32.s32 %v4650_v12  ;;  %707 = vrot.lane.b32.xlu0 %v5319_v59, %s4900_s26  ;;  %v554_v12 = vmul.u32 4, %v5300_v36 }
 0x13b   : > { %v5336_v25 = vpop.trf.xlu0 }
 0x13c   : > { %8441 = vst [vmem:[#allocation31_spill] sm:$0xff] %v5336_v25  ;;  %697 = vrot.lane.b32.xlu1 %v5304_v41, %s4900_s26  ;;  %v558_v31 = vmul.u32 4, %v5332_v21 }
 0x13e   : > { %615 = vrot.lane.b32.xlu0 %v558_v31, %s4901_s8 }
 0x13f   : > { %v5344_v44 = vpop.trf.xlu0 }
 0x140   : > { %8442 = vst [vmem:[#allocation32_spill] sm:$0xff] %v5344_v44  ;;  %v4654_v52 = vtrunc.f32 %v5344_v44  ;;  %699 = vrot.lane.b32.xlu1 %v5313_v48, %s4900_s26 }
 0x142   : > { %v5350_v62 = vcvt.f32.s32 %v4654_v52  ;;  %711 = vrot.lane.b32.xlu0 %v5332_v21, %s4900_s26  ;;  %v4620_v52 = vtrunc.f32 %v5232_v47 }
 0x143   : > { %v5354_v2 = vpop.trf.xlu0 }
 0x144   : > { %8443 = vst [vmem:[#allocation33_spill] sm:$0xff] %v5354_v2  ;;  %605 = vrot.lane.b32.xlu1 %v553_v53, %s4901_s8  ;;  %v560_v9 = vmul.u32 4, %v5350_v62 }
 0x146   : > { %619 = vrot.lane.b32.xlu0 %v560_v9, %s4901_s8 }
 0x147   : > { %v5360_v31 = vpop.trf.xlu0 }
 0x148   : > { %8444 = vst [vmem:[#allocation34_spill] sm:$0xff] %v5360_v31  ;;  %v4658_v42 = vtrunc.f32 %v5360_v31  ;;  %607 = vrot.lane.b32.xlu1 %v554_v12, %s4901_s8  ;;  %v5379_v12 = vcvt.f32.s32 %v4620_v52 }
 0x14a   : > { %v5365_v13 = vcvt.f32.s32 %v4658_v42  ;;  %v5367_v8 = vpop.permute.xlu1 %661  ;;  %715 = vrot.lane.b32.xlu0 %v5350_v62, %s4900_s26  ;;  %v543_v16 = vmul.u32 4, %v5379_v12 }
 0x14b   : > { %v5371_v53 = vpop.trf.xlu0 }
 0x14c   : > { %8445 = vst [vmem:[#allocation35_spill] sm:$0xff] %v5371_v53  ;;  %701 = vrot.lane.b32.xlu1 %v5338_v30, %s4900_s26  ;;  %v562_v9 = vmul.u32 4, %v5365_v13 }
 0x14e   : > { %v5376_v33 = vpop.permute.xlu1 %565  ;;  %623 = vrot.lane.b32.xlu0 %v562_v9, %s4901_s8 }
 0x14f   : > { %v5381_v42 = vpop.trf.xlu0 }
 0x150   : > { %8446 = vst [vmem:[#allocation36_spill] sm:$0xff] %v5381_v42  ;;  %v4662_v43 = vtrunc.f32 %v5381_v42  ;;  %681 = vrot.lane.b32.xlu1 %v5379_v12, %s4900_s26  ;;  %v5396_v42 = vcvt.f32.s32 %v4622_v4 }
 0x152   : > { %v5387_v49 = vcvt.f32.s32 %v4662_v43  ;;  %v664_v54 = vpop.permute.xlu1 %663  ;;  %719 = vrot.lane.b32.xlu0 %v5365_v13, %s4900_s26  ;;  %v4624_v43 = vtrunc.f32 %v5245_v56  ;;  %v8448_v56 = vld [vmem:[#allocation21_spill] sm:$0xff] }
 0x154   : > { %585 = vrot.lane.b32.xlu1 %v543_v16, %s4901_s8  ;;  %v564_v52 = vmul.u32 4, %v5387_v49  ;;  %v544_v16 = vmul.u32 4, %v5396_v42  ;;  %v5410_v4 = vcvt.f32.s32 %v4624_v43  ;;  %v4628_v43 = vtrunc.f32 %v5256_v61 }
 0x155   : > { %v507_v61 = vmul.u32 64, %v5248_v57 }
 0x156   : > { %v568_v9 = vpop.permute.xlu1 %567  ;;  %627 = vrot.lane.b32.xlu0 %v564_v52, %s4901_s8 }
 0x157   : > { %v630_v55 = vadd.s32 %v568_v9, %v502_v5  ;;  %v4626_v5 = vtrunc.f32 %v5250_v58  ;;  %v545_v9 = vmul.u32 4, %v5410_v4  ;;  %v8449_v58 = vld [vmem:[#allocation23_spill] sm:$0xff] }
 0x158   : > { %683 = vrot.lane.b32.xlu1 %v5396_v42, %s4900_s26 }
 0x159   : > { %v726_v44 = vadd.s32 %v664_v54, %v630_v55  ;;  %v504_v54 = vmul.u32 64, %v5210_v34  ;;  %v5430_v34 = vcvt.f32.s32 %v4628_v43 }
 0x15a   : > { %v5401_v31 = vpop.permute.xlu1 %665  ;;  %723 = vrot.lane.b32.xlu0 %v5387_v49, %s4900_s26 }
 0x15c   : > { %587 = vrot.lane.b32.xlu1 %v544_v16, %s4901_s8  ;;  %v5418_v16 = vcvt.f32.s32 %v4626_v5  ;;  %v4630_v5 = vtrunc.f32 %v5262_v0 }
 0x15e   : > { %v5407_v23 = vpop.permute.xlu1 %569  ;;  %759 = vrot.lane.b32.xlu0 %v726_v44, %s4902_s10  ;;  %v546_v26 = vmul.u32 4, %v5418_v16 }
 0x160   : > { %685 = vrot.lane.b32.xlu1 %v5410_v4, %s4900_s26 }
 0x162   : > { %v668_v52 = vpop.permute.xlu1 %667 }
 0x164   : > { %589 = vrot.lane.b32.xlu1 %v545_v9, %s4901_s8 }
 0x166   : > { %v572_v55 = vpop.permute.xlu1 %571 }
 0x167   : > { %v632_v6 = vadd.s32 %v572_v55, %v504_v54  ;;  %v4644_v54 = vtrunc.f32 %v5302_v37  ;;  %v506_v55 = vmul.u32 64, %v5237_v50 }
 0x168   : > { %687 = vrot.lane.b32.xlu1 %v5418_v16, %s4900_s26 }
 0x169   : > { %v728_v44 = vadd.s32 %v668_v52, %v632_v6  ;;  %v547_v52 = vmul.u32 4, %v5430_v34  ;;  %v5441_v43 = vcvt.f32.s32 %v4644_v54 }
 0x16a   : > { %v5423_v46 = vpop.permute.xlu1 %669 }
 0x16b   : > { %763 = vrot.lane.b32.xlu0 %v728_v44, %s4902_s10  ;;  %v555_v50 = vmul.u32 4, %v5441_v43 }
 0x16c   : > { %591 = vrot.lane.b32.xlu1 %v546_v26, %s4901_s8  ;;  %v5439_v26 = vcvt.f32.s32 %v4630_v5 }
 0x16e   : > { %v5428_v9 = vpop.permute.xlu1 %573  ;;  %v548_v0 = vmul.u32 4, %v5439_v26 }
 0x170   : > { %689 = vrot.lane.b32.xlu1 %v5430_v34, %s4900_s26  ;;  %v584_v10 = vpop.permute.xlu0 %583 }
 0x172   : > { %v672_v6 = vpop.permute.xlu1 %671 }
 0x174   : > { %593 = vrot.lane.b32.xlu1 %v547_v52, %s4901_s8  ;;  %v4648_v52 = vtrunc.f32 %v5321_v60 }
 0x176   : > { %v576_v44 = vpop.permute.xlu1 %575 }
 0x177   : > { %v634_v14 = vadd.s32 %v576_v44, %v506_v55  ;;  %v5452_v55 = vcvt.f32.s32 %v4648_v52 }
 0x178   : > { %691 = vrot.lane.b32.xlu1 %v5439_v26, %s4900_s26 }
 0x179   : > { %v730_v7 = vadd.s32 %v672_v6, %v634_v14  ;;  %v4652_v14 = vtrunc.f32 %v5336_v25  ;;  %v557_v6 = vmul.u32 4, %v5452_v55 }
 0x17a   : > { %v5445_v20 = vpop.permute.xlu1 %673 }
 0x17b   : > { %767 = vrot.lane.b32.xlu0 %v730_v7, %s4902_s10  ;;  %v508_v7 = vmul.u32 64, %v5260_v63  ;;  %v510_v63 = vmul.u32 64, %v5229_v45 }
 0x17c   : > { %595 = vrot.lane.b32.xlu1 %v548_v0, %s4901_s8  ;;  %v5460_v0 = vcvt.f32.s32 %v4652_v14 }
 0x17d   : > { %v638_v14 = vadd.s32 %v584_v10, %v510_v63 }
 0x17e   : > { %v578_v5 = vpop.permute.xlu1 %577  ;;  %v559_v25 = vmul.u32 4, %v5460_v0 }
 0x180   : > { %609 = vrot.lane.b32.xlu1 %v555_v50, %s4901_s8  ;;  %v4656_v50 = vtrunc.f32 %v5354_v2 }
 0x182   : > { %v676_v54 = vpop.permute.xlu1 %675 }
 0x184   : > { %705 = vrot.lane.b32.xlu1 %v5441_v43, %s4900_s26 }
 0x186   : > { %v580_v44 = vpop.permute.xlu1 %579 }
 0x187   : > { %v636_v60 = vadd.s32 %v580_v44, %v508_v7  ;;  %v5469_v7 = vcvt.f32.s32 %v4656_v50  ;;  %v4660_v44 = vtrunc.f32 %v5371_v53  ;;  %v503_v53 = vmul.u32 64, %v5199_v28 }
 0x188   : > { %613 = vrot.lane.b32.xlu1 %v557_v6, %s4901_s8 }
 0x189   : > { %v732_v52 = vadd.s32 %v676_v54, %v636_v60  ;;  %v4903_v54 = vmov 3   ;;  %v5477_v50 = vcvt.f32.s32 %v4660_v44  ;;  %v517_v44 = vmul.u32 64, %v5279_v11 }
 0x18a   : > { %v582_v37 = vpop.permute.xlu1 %581  ;;  %4728 = vset.pattern.permute.xlu0 %v4903_v54  ;;  %4727 = vset.pattern.permute.xlu1 %v4903_v54 }
 0x18b   : > { %771 = vrot.lane.b32.xlu0 %v732_v52, %s4902_s10  ;;  %v561_v52 = vmul.u32 4, %v5469_v7 }
 0x18c   : > { %709 = vrot.lane.b32.xlu1 %v5452_v55, %s4900_s26 }
 0x18e   : > { %v678_v3 = vpop.permute.xlu1 %677 }
 0x190   : > { %617 = vrot.lane.b32.xlu1 %v559_v25, %s4901_s8  ;;  %v563_v25 = vmul.u32 4, %v5477_v50 }
 0x192   : > { %v680_v60 = vpop.permute.xlu1 %679 }
 0x193   : > { %v734_v6 = vadd.s32 %v680_v60, %v638_v14  ;;  %v501_v14 = vmul.u32 64, %v5177_v18  ;;  %v631_v18 = vadd.s32 %v5407_v23, %v503_v53 }
 0x194   : > { %713 = vrot.lane.b32.xlu1 %v5460_v0, %s4900_s26 }
 0x195   : > { %775 = vrot.lane.b32.xlu0 %v734_v6, %s4902_s10  ;;  %v629_v60 = vadd.s32 %v5376_v33, %v501_v14  ;;  %v505_v14 = vmul.u32 64, %v5221_v39 }
 0x196   : > { %v598_v45 = vpop.permute.xlu1 %597 }
 0x197   : > { %v725_v6 = vadd.s32 %v5367_v8, %v629_v60  ;;  %v645_v2 = vadd.s32 %v598_v45, %v517_v44  ;;  %v727_v8 = vadd.s32 %v5401_v31, %v631_v18  ;;  %v633_v11 = vadd.s32 %v5428_v9, %v505_v14 }
 0x198   : > { %621 = vrot.lane.b32.xlu1 %v561_v52, %s4901_s8  ;;  %v635_v45 = vadd.s32 %v578_v5, %v507_v61  ;;  %v511_v61 = vmul.u32 64, %v5379_v12 }
 0x199   : > { %v729_v28 = vadd.s32 %v5423_v46, %v633_v11  ;;  %v513_v11 = vmul.u32 64, %v5410_v4 }
 0x19a   : > { %v5480_v10 = vpop.permute.xlu1 %599  ;;  %v731_v39 = vadd.s32 %v5445_v20, %v635_v45  ;;  %v512_v20 = vmul.u32 64, %v5396_v42 }
 0x19c   : > { %717 = vrot.lane.b32.xlu1 %v5469_v7, %s4900_s26 }
 0x19e   : > { %v694_v63 = vpop.permute.xlu1 %693 }
 0x1a0   : > { %625 = vrot.lane.b32.xlu1 %v563_v25, %s4901_s8  ;;  %v741_v25 = vadd.s32 %v694_v63, %v645_v2  ;;  %v509_v2 = vmul.u32 64, %v5266_v1  ;;  %v5519_v1 = vpop.permute.xlu0 %703 }
 0x1a2   : > { %v5488_v54 = vpop.permute.xlu1 %695  ;;  %v637_v31 = vadd.s32 %v582_v37, %v509_v2 }
 0x1a4   : > { %721 = vrot.lane.b32.xlu1 %v5477_v50, %s4900_s26  ;;  %v733_v9 = vadd.s32 %v678_v3, %v637_v31  ;;  %v514_v31 = vmul.u32 64, %v5418_v16 }
 0x1a6   : > { %v5494_v52 = vpop.permute.xlu1 %601 }
 0x1a8   : > { %757 = vrot.lane.b32.xlu1 %v725_v6, %s4902_s10 }
 0x1aa   : > { %v5499_v33 = vpop.permute.xlu1 %603 }
 0x1ac   : > { %789 = vrot.lane.b32.xlu1 %v741_v25, %s4902_s10 }
 0x1ae   : > { %v698_v60 = vpop.permute.xlu1 %697 }
 0x1b0   : > { %761 = vrot.lane.b32.xlu1 %v727_v8, %s4902_s10  ;;  %v612_v8 = vpop.permute.xlu0 %611 }
 0x1b2   : > { %v5508_v53 = vpop.permute.xlu1 %699 }
 0x1b4   : > { %765 = vrot.lane.b32.xlu1 %v729_v28, %s4902_s10  ;;  %v708_v45 = vpop.permute.xlu0 %707 }
 0x1b6   : > { %v606_v23 = vpop.permute.xlu1 %605 }
 0x1b8   : > { %769 = vrot.lane.b32.xlu1 %v731_v39, %s4902_s10  ;;  %v616_v42 = vpop.permute.xlu0 %615 }
 0x1ba   : > { %v5514_v63 = vpop.permute.xlu1 %607 }
 0x1bc   : > { %773 = vrot.lane.b32.xlu1 %v733_v9, %s4902_s10 }
 0x1be   : > { %v702_v57 = vpop.permute.xlu1 %701 }
 0x1c2   : > { %v682_v46 = vpop.permute.xlu1 %681 }
 0x1c6   : > { %v586_v5 = vpop.permute.xlu1 %585 }
 0x1c7   : > { %v639_v6 = vadd.s32 %v586_v5, %v511_v61 }
 0x1c9   : > { %v735_v44 = vadd.s32 %v682_v46, %v639_v6  ;;  %v712_v6 = vpop.permute.xlu0 %711 }
 0x1ca   : > { %v684_v18 = vpop.permute.xlu1 %683 }
 0x1cb   : > { %777 = vrot.lane.b32.xlu1 %v735_v44, %s4902_s10  ;;  %v515_v44 = vmul.u32 64, %v5430_v34  ;;  %v518_v34 = vmul.u32 64, %v5286_v17 }
 0x1ce   : > { %v588_v37 = vpop.permute.xlu1 %587 }
 0x1cf   : > { %v640_v3 = vadd.s32 %v588_v37, %v512_v20  ;;  %v519_v20 = vmul.u32 64, %v5304_v41 }
 0x1d1   : > { %v736_v25 = vadd.s32 %v684_v18, %v640_v3 }
 0x1d2   : > { %v686_v14 = vpop.permute.xlu1 %685 }
 0x1d3   : > { %779 = vrot.lane.b32.xlu0 %v736_v25, %s4902_s10  ;;  %v647_v25 = vadd.s32 %v5494_v52, %v519_v20  ;;  %v646_v52 = vadd.s32 %v5480_v10, %v518_v34 }
 0x1d5   : > { %v743_v16 = vadd.s32 %v698_v60, %v647_v25 }
 0x1d6   : > { %v590_v12 = vpop.permute.xlu1 %589 }
 0x1d7   : > { %v641_v28 = vadd.s32 %v590_v12, %v513_v11  ;;  %v521_v11 = vmul.u32 64, %v5338_v30  ;;  %v516_v12 = vmul.u32 64, %v5439_v26  ;;  %v742_v30 = vadd.s32 %v5488_v54, %v646_v52 }
 0x1d8   : > { %v520_v26 = vmul.u32 64, %v5313_v48  ;;  %v525_v54 = vmul.u32 64, %v5452_v55 }
 0x1d9   : > { %v737_v39 = vadd.s32 %v686_v14, %v641_v28  ;;  %v620_v14 = vpop.permute.xlu0 %619  ;;  %v524_v48 = vmul.u32 64, %v5319_v59 }
 0x1da   : > { %v688_v2 = vpop.permute.xlu1 %687  ;;  %v648_v17 = vadd.s32 %v5499_v33, %v520_v26 }
 0x1db   : > { %781 = vrot.lane.b32.xlu1 %v737_v39, %s4902_s10  ;;  %v649_v39 = vadd.s32 %v606_v23, %v521_v11  ;;  %v527_v11 = vmul.u32 64, %v5460_v0  ;;  %v529_v0 = vmul.u32 64, %v5469_v7 }
 0x1dd   : > { %v716_v41 = vpop.permute.xlu0 %715 }
 0x1de   : > { %v592_v9 = vpop.permute.xlu1 %591 }
 0x1df   : > { %v642_v46 = vadd.s32 %v592_v9, %v514_v31  ;;  %v745_v31 = vadd.s32 %v702_v57, %v649_v39  ;;  %v522_v57 = vmul.u32 64, %v5300_v36 }
 0x1e1   : > { %v738_v61 = vadd.s32 %v688_v2, %v642_v46  ;;  %v650_v10 = vadd.s32 %v5514_v63, %v522_v57  ;;  %v526_v63 = vmul.u32 64, %v5332_v21  ;;  %v530_v21 = vmul.u32 64, %v5365_v13 }
 0x1e2   : > { %v690_v5 = vpop.permute.xlu1 %689 }
 0x1e3   : > { %783 = vrot.lane.b32.xlu0 %v738_v61, %s4902_s10  ;;  %v523_v61 = vmul.u32 64, %v5441_v43  ;;  %v744_v43 = vadd.s32 %v5508_v53, %v648_v17  ;;  %v746_v33 = vadd.s32 %v5519_v1, %v650_v10  ;;  %v654_v55 = vadd.s32 %v616_v42, %v526_v63 }
 0x1e4   : > { %v528_v1 = vmul.u32 64, %v5350_v62 }
 0x1e5   : > { %v750_v59 = vadd.s32 %v712_v6, %v654_v55 }
 0x1e6   : > { %v594_v4 = vpop.permute.xlu1 %593 }
 0x1e7   : > { %v643_v18 = vadd.s32 %v594_v4, %v515_v44 }
 0x1e9   : > { %v739_v37 = vadd.s32 %v690_v5, %v643_v18  ;;  %v624_v5 = vpop.permute.xlu0 %623 }
 0x1ea   : > { %v692_v3 = vpop.permute.xlu1 %691  ;;  %v658_v34 = vadd.s32 %v624_v5, %v530_v21  ;;  %v8453_v21 = vld [vmem:[#allocation27_spill] sm:$0xff] }
 0x1eb   : > { %785 = vrot.lane.b32.xlu1 %v739_v37, %s4902_s10  ;;  %v652_v37 = vadd.s32 %v612_v8, %v524_v48 }
 0x1ed   : > { %v720_v36 = vpop.permute.xlu0 %719  ;;  %v748_v53 = vadd.s32 %v708_v45, %v652_v37 }
 0x1ee   : > { %v596_v28 = vpop.permute.xlu1 %595  ;;  %v754_v6 = vadd.s32 %v720_v36, %v658_v34 }
 0x1ef   : > { %v644_v2 = vadd.s32 %v596_v28, %v516_v12  ;;  %793 = vrot.lane.b32.xlu1 %v743_v16, %s4902_s10  ;;  %v656_v28 = vadd.s32 %v620_v14, %v528_v1  ;;  %v8451_v1 = vld [vmem:[#allocation25_spill] sm:$0xff] }
 0x1f1   : > { %v740_v9 = vadd.s32 %v692_v3, %v644_v2  ;;  %v628_v16 = vpop.permute.xlu0 %627  ;;  %v752_v45 = vadd.s32 %v716_v41, %v656_v28 }
 0x1f2   : > { %v610_v46 = vpop.permute.xlu1 %609 }
 0x1f3   : > { %797 = vrot.lane.b32.xlu1 %v745_v31, %s4902_s10  ;;  %787 = vrot.lane.b32.xlu0 %v740_v9, %s4902_s10  ;;  %v651_v60 = vadd.s32 %v610_v46, %v523_v61  ;;  %v531_v46 = vmul.u32 64, %v5477_v50  ;;  %v532_v61 = vmul.u32 64, %v5387_v49 }
 0x1f5   : > { %v724_v2 = vpop.permute.xlu0 %723  ;;  %v660_v26 = vadd.s32 %v628_v16, %v532_v61  ;;  %v8458_v61 = vld [vmem:[#allocation30_spill] sm:$0xff] }
 0x1f6   : > { %v706_v23 = vpop.permute.xlu1 %705 }
 0x1f7   : > { %v747_v44 = vadd.s32 %v706_v23, %v651_v60  ;;  %791 = vrot.lane.b32.xlu0 %v742_v30, %s4902_s10  ;;  %v756_v23 = vadd.s32 %v724_v2, %v660_v26  ;;  %v8454_v2 = vld [vmem:[#allocation24_spill] sm:$0xff] }
 0x1f9   : > { %801 = vrot.lane.b32.xlu1 %v747_v44, %s4902_s10  ;;  %v760_v9 = vpop.permute.xlu0 %759 }
 0x1fa   : > { %v614_v4 = vpop.permute.xlu1 %613  ;;  %v5565_v13 = vsel %vm470_vm12, %v760_v9, 4294967295  ;;  %vm485_vm12 = vcmp.gt.f32.partialorder %v8448_v56, 0.5  ;;  %v8456_v9 = vld [vmem:[#allocation29_spill] sm:$0xff] }
 0x1fb   : > { %795 = vrot.lane.b32.xlu0 %v744_v43, %s4902_s10  ;;  %v653_v18 = vadd.s32 %v614_v4, %v525_v54 }
 0x1fd   : > { %v764_v50 = vpop.permute.xlu0 %763 }
 0x1fe   : > { %v710_v20 = vpop.permute.xlu1 %709  ;;  %v5580_v5 = vsel %vm472_vm2, %v764_v50, 4294967295  ;;  %vm489_vm2 = vcmp.gt.f32.partialorder %v8451_v1, 0.5  ;;  %v8460_v50 = vld [vmem:[#allocation32_spill] sm:$0xff] }
 0x1ff   : > { %v749_v3 = vadd.s32 %v710_v20, %v653_v18  ;;  %799 = vrot.lane.b32.xlu0 %v746_v33, %s4902_s10 }
 0x201   : > { %805 = vrot.lane.b32.xlu1 %v749_v3, %s4902_s10  ;;  %v768_v44 = vpop.permute.xlu0 %767 }
 0x202   : > { %v618_v25 = vpop.permute.xlu1 %617  ;;  %v5588_v22 = vsel %vm474_vm4, %v768_v44, 4294967295  ;;  %vm491_vm4 = vcmp.gt.f32.partialorder %v8453_v21, 0.5 }
 0x203   : > { %803 = vrot.lane.b32.xlu0 %v748_v53, %s4902_s10  ;;  %v655_v12 = vadd.s32 %v618_v25, %v527_v11  ;;  %v8450_v25 = vld [vmem:[#allocation20_spill] sm:$0xff] }
 0x205   : > { %v772_v24 = vpop.permute.xlu0 %771 }
 0x206   : > { %v714_v8 = vpop.permute.xlu1 %713  ;;  %v5596_v27 = vsel %vm476_vm6, %v772_v24, 4294967295 }
 0x207   : > { %v751_v39 = vadd.s32 %v714_v8, %v655_v12  ;;  %807 = vrot.lane.b32.xlu0 %v750_v59, %s4902_s10  ;;  %v8452_v12 = vld [vmem:[#allocation22_spill] sm:$0xff] }
 0x209   : > { %809 = vrot.lane.b32.xlu1 %v751_v39, %s4902_s10  ;;  %v776_v29 = vpop.permute.xlu0 %775 }
 0x20a   : > { %v622_v42 = vpop.permute.xlu1 %621  ;;  %v5604_v32 = vsel %vm478_vm8, %v776_v29, 4294967295  ;;  %v8462_v29 = vld [vmem:[#allocation33_spill] sm:$0xff] }
 0x20b   : > { %811 = vrot.lane.b32.xlu0 %v752_v45, %s4902_s10  ;;  %v657_v62 = vadd.s32 %v622_v42, %v529_v0 }
 0x20e   : > { %v718_v31 = vpop.permute.xlu1 %717 }
 0x20f   : > { %v753_v14 = vadd.s32 %v718_v31, %v657_v62  ;;  %815 = vrot.lane.b32.xlu0 %v754_v6, %s4902_s10  ;;  %v8455_v6 = vld [vmem:[#allocation26_spill] sm:$0xff] }
 0x210   : > { %vm490_vm6 = vcmp.gt.f32.partialorder %v8455_v6, 0.5 }
 0x211   : > { %813 = vrot.lane.b32.xlu1 %v753_v14, %s4902_s10 }
 0x212   : > { %v626_v41 = vpop.permute.xlu1 %625 }
 0x213   : > { %899 = vperm.xlu0 %4728, %v5565_v13   ;;  %v659_v7 = vadd.s32 %v626_v41, %v531_v46  ;;  %v8457_v46 = vld [vmem:[#allocation28_spill] sm:$0xff] }
 0x214   : > { %vm492_vm8 = vcmp.gt.f32.partialorder %v8457_v46, 0.5 }
 0x216   : > { %v722_v52 = vpop.permute.xlu1 %721 }
 0x217   : > { %v755_v30 = vadd.s32 %v722_v52, %v659_v7 }
 0x219   : > { %817 = vrot.lane.b32.xlu1 %v755_v30, %s4902_s10 }
 0x21a   : > { %v758_v60 = vpop.permute.xlu1 %757 }
 0x21b   : > { %v5573_v17 = vsel %vm469_vm13, %v758_v60, 4294967295  ;;  %vm487_vm13 = vcmp.gt.f32.partialorder %v8449_v58, 0.5  ;;  %v8459_v60 = vld [vmem:[#allocation31_spill] sm:$0xff]  ;;  %v8465_v58 = vld [vmem:[#allocation36_spill] sm:$0xff] }
 0x21d   : > { %819 = vrot.lane.b32.xlu1 %v756_v23, %s4902_s10 }
 0x21e   : > { %v790_v19 = vpop.permute.xlu1 %789 }
 0x21f   : > { %v5629_v63 = vsel %vm485_vm12, %v790_v19, 4294967295 }
 0x221   : > { %896 = vperm.xlu1 %4727, %v5573_v17  }
 0x222   : > { %v762_v57 = vpop.permute.xlu1 %761 }
 0x223   : > { %v5578_v49 = vsel %vm471_vm1, %v762_v57, 4294967295  ;;  %vm484_vm1 = vcmp.gt.f32.partialorder %v8450_v25, 0.5 }
 0x224   : > { %902 = vperm.xlu0 %4728, %v5578_v49  }
 0x225   : > { %905 = vperm.xlu1 %4727, %v5580_v5  }
 0x226   : > { %v766_v15 = vpop.permute.xlu1 %765 }
 0x227   : > { %v5586_v43 = vsel %vm473_vm3, %v766_v15, 4294967295  ;;  %vm486_vm3 = vcmp.gt.f32.partialorder %v8452_v12, 0.5  ;;  %v8461_v15 = vld [vmem:[#allocation34_spill] sm:$0xff]  ;;  %v3612_v12 = vadd.s32 4294967040, %v5565_v13 }
 0x228   : > { %908 = vperm.xlu0 %4728, %v5586_v43   ;;  %v3615_v6 = vadd.s32 4294967040, %v5586_v43 }
 0x229   : > { %911 = vperm.xlu1 %4727, %v5588_v22  }
 0x22a   : > { %v770_v10 = vpop.permute.xlu1 %769 }
 0x22b   : > { %v5594_v4 = vsel %vm475_vm5, %v770_v10, 4294967295  ;;  %vm488_vm5 = vcmp.gt.f32.partialorder %v8454_v2, 0.5 }
 0x22c   : > { %914 = vperm.xlu0 %4728, %v5594_v4   ;;  %v3617_v46 = vadd.s32 4294967040, %v5594_v4 }
 0x22d   : > { %917 = vperm.xlu1 %4727, %v5596_v27  }
 0x22e   : > { %v774_v54 = vpop.permute.xlu1 %773 }
 0x22f   : > { %v5602_v48 = vsel %vm477_vm7, %v774_v54, 4294967295  ;;  %vm493_vm7 = vcmp.gt.f32.partialorder %v8456_v9, 0.5 }
 0x230   : > { %920 = vperm.xlu0 %4728, %v5602_v48  }
 0x231   : > { %923 = vperm.xlu1 %4727, %v5604_v32  }
 0x23d   : > { %v778_v35 = vpop.permute.xlu1 %777 }
 0x23e   : > { %v5609_v33 = vsel %vm479_vm9, %v778_v35, 4294967295  ;;  %vm494_vm9 = vcmp.gt.f32.partialorder %v8458_v61, 0.5 }
 0x23f   : > { %926 = vperm.xlu0 %4728, %v5609_v33  }
 0x245   : > { %v780_v38 = vpop.permute.xlu0 %779 }
 0x246   : > { %v5613_v36 = vsel %vm480_vm10, %v780_v38, 4294967295  ;;  %vm495_vm10 = vcmp.gt.f32.partialorder %v8459_v60, 0.5  ;;  %v3619_v60 = vadd.s32 4294967040, %v5602_v48 }
 0x247   : > { %929 = vperm.xlu1 %4727, %v5613_v36  }
 0x24d   : > { %v782_v40 = vpop.permute.xlu1 %781 }
 0x24e   : > { %v5617_v18 = vsel %vm481_vm11, %v782_v40, 4294967295  ;;  %vm496_vm11 = vcmp.gt.f32.partialorder %v8460_v50, 0.5  ;;  %v8463_v40 = vld [vmem:[#allocation35_spill] sm:$0xff] }
 0x24f   : > { %932 = vperm.xlu0 %4728, %v5617_v18   ;;  %vm499_vm12 = vcmp.gt.f32.partialorder %v8463_v40, 0.5 }
 0x255   : > { %v784_v47 = vpop.permute.xlu0 %783 }
 0x256   : > { %v5621_v20 = vsel %vm482_vm15, %v784_v47, 4294967295  ;;  %vm498_vm15 = vcmp.gt.f32.partialorder %v8461_v15, 0.5  ;;  %v4763_v47 = vld [vmem:[%s5044_s14 + $0x8] sm:$0xff]  ;;  %v3621_v15 = vadd.s32 4294967040, %v5609_v33 }
 0x257   : > { %935 = vperm.xlu1 %4727, %v5621_v20  }
 0x25d   : > { %v786_v37 = vpop.permute.xlu1 %785 }
 0x25e   : > { %v5625_v3 = vsel %vm483_vm0, %v786_v37, 4294967295  ;;  %vm497_vm0 = vcmp.gt.f32.partialorder %v8462_v29, 0.5  ;;  %v329_v37 = vsub.f32 %v4763_v47, %v8464_v51  ;;  %v3622_v47 = vadd.s32 4294967040, %v5613_v36 }
 0x25f   : > { %938 = vperm.xlu0 %4728, %v5625_v3   ;;  %v3623_v51 = vadd.s32 4294967040, %v5617_v18 }
 0x261   : > { %v794_v53 = vpop.permute.xlu1 %793 }
 0x262   : > { %v5634_v16 = vsel %vm487_vm13, %v794_v53, 4294967295  ;;  %v3611_v53 = vadd.s32 4294967040, %v5573_v17  ;;  %vm500_vm13 = vcmp.gt.f32.partialorder %v8465_v58, 0.5 }
 0x263   : > { %944 = vperm.xlu0 %4728, %v5629_v63  }
 0x265   : > { %v788_v55 = vpop.permute.xlu0 %787  ;;  %v798_v59 = vpop.permute.xlu1 %797 }
 0x266   : > { %v5636_v11 = vsel %vm484_vm1, %v788_v55, 4294967295  ;;  %v5642_v28 = vsel %vm489_vm2, %v798_v59, 4294967295  ;;  %v8466_v55 = vld [vmem:[#allocation18_spill] sm:$0xff] }
 0x267   : > { %950 = vperm.xlu0 %4728, %v5634_v16   ;;  %941 = vperm.xlu1 %4727, %v5636_v11   ;;  %v5697_v59 = vmul.f32 %v8466_v55, %v329_v37 }
 0x269   : > { %v792_v8 = vpop.permute.xlu0 %791  ;;  %8467 = vst [vmem:[#allocation19_spill] sm:$0xff] %v5697_v59  ;;  %v854_v21 = vsel %vm8060_vm14, %v8466_v55, %v5697_v59  ;;  %v3853_v55 = vadd.s32 4294966784, %v5634_v16 }
 0x26a   : > { %v5644_v39 = vsel %vm486_vm3, %v792_v8, 4294967295  ;;  %v3613_v8 = vadd.s32 4294967040, %v5578_v49  ;;  %v5708_v2 = vpack.c.bf16 %v854_v21, %v854_v21 }
 0x26b   : > { %v802_v45 = vpop.permute.xlu1 %801  ;;  %956 = vperm.xlu0 %4728, %v5642_v28   ;;  %947 = vperm.xlu1 %4727, %v5644_v39   ;;  %v3852_v59 = vadd.s32 4294966784, %v5644_v39 }
 0x26c   : > { %v5650_v34 = vsel %vm491_vm4, %v802_v45, 4294967295  ;;  %v8468_v45 = vld [vmem:[#allocation11_spill] sm:$0xff]  ;;  %1247 = vmatprep.mubr.bf16.mxu0 %v5708_v2 }
 0x26d   : > { %v796_v42 = vpop.permute.xlu0 %795 }
 0x26e   : > { %v5652_v0 = vsel %vm488_vm5, %v796_v42, 4294967295  ;;  %v3614_v42 = vadd.s32 4294967040, %v5580_v5 }
 0x26f   : > { %962 = vperm.xlu0 %4728, %v5650_v34   ;;  %953 = vperm.xlu1 %4727, %v5652_v0  }
 0x271   : > { %v800_v62 = vpop.permute.xlu0 %799 }
 0x272   : > { %v5657_v31 = vsel %vm490_vm6, %v800_v62, 4294967295  ;;  %v8469_v62 = vlaneseq }
 0x273   : > { %v806_v14 = vpop.permute.xlu1 %805  ;;  %959 = vperm.xlu1 %4727, %v5657_v31  }
 0x274   : > { %v5661_v41 = vsel %vm493_vm7, %v806_v14, 4294967295  ;;  %v5714_v9 = vand.u32 127, %v8469_v62  ;;  %v3616_v14 = vadd.s32 4294967040, %v5588_v22  ;;  %v8482_v62 = vmov 0 }
 0x275   : > { %968 = vperm.xlu0 %4728, %v5661_v41   ;;  %v804_v7 = vpop.permute.xlu0 %803 }
 0x276   : > { %v5665_v52 = vsel %vm492_vm8, %v804_v7, 4294967295  ;;  %v5719_v7 = vadd.s32 128, %v5714_v9 }
 0x277   : > { %965 = vperm.xlu1 %4727, %v5665_v52  }
 0x279   : > { %v808_v30 = vpop.permute.xlu0 %807 }
 0x27a   : > { %v5669_v26 = vsel %vm494_vm9, %v808_v30, 4294967295  ;;  %v3618_v30 = vadd.s32 4294967040, %v5596_v27 }
 0x27b   : > { %v810_v23 = vpop.permute.xlu1 %809  ;;  %971 = vperm.xlu1 %4727, %v5669_v26  }
 0x27c   : > { %v5673_v19 = vsel %vm495_vm10, %v810_v23, 4294967295 }
 0x27d   : > { %974 = vperm.xlu0 %4728, %v5673_v19   ;;  %v812_v57 = vpop.permute.xlu0 %811 }
 0x27e   : > { %v5677_v44 = vsel %vm496_vm11, %v812_v57, 4294967295  ;;  %v3620_v57 = vadd.s32 4294967040, %v5604_v32 }
 0x27f   : > { %977 = vperm.xlu1 %4727, %v5677_v44  }
 0x281   : > { %v816_v24 = vpop.permute.xlu0 %815 }
 0x282   : > { %v5681_v10 = vsel %vm498_vm15, %v816_v24, 4294967295  ;;  %v8403_v24 = vmov 1.0|1.0  }
 0x283   : > { %v814_v54 = vpop.permute.xlu1 %813  ;;  %983 = vperm.xlu1 %4727, %v5681_v10  }
 0x284   : > { %v5685_v35 = vsel %vm497_vm0, %v814_v54, 4294967295 }
 0x285   : > { %980 = vperm.xlu0 %4728, %v5685_v35  }
 0x28b   : > { %v818_v38 = vpop.permute.xlu1 %817 }
 0x28c   : > { %v5691_v56 = vsel %vm499_vm12, %v818_v38, 4294967295 }
 0x28d   : > { %986 = vperm.xlu0 %4728, %v5691_v56  }
 0x28f   : > { %v820_v25 = vpop.permute.xlu1 %819 }
 0x290   : > { %v5699_v1 = vsel %vm500_vm13, %v820_v25, 4294967295  ;;  %v8478_v25 = vmov 0 }
 0x291   : > { %1349 = vperm.xlu0 %4728, %v3611_v53   ;;  %989 = vperm.xlu1 %4727, %v5699_v1   ;;  %v8476_v53 = vmov 0 }
 0x292   : > { %v900_v61 = vpop.permute.xlu0 %899 }
 0x293   : > { %vm994_vm2 = vcmp.eq.s32.totalorder %v5719_v7, %v900_v61  ;;  %vm993_vm5 = vcmp.eq.s32.totalorder %v5714_v9, %v900_v61 }
 0x295   : > { %1355 = vperm.xlu0 %4728, %v3613_v8   ;;  %1352 = vperm.xlu1 %4727, %v3612_v12   ;;  %v3624_v12 = vadd.s32 4294967040, %v5621_v20  ;;  %v3625_v8 = vadd.s32 4294967040, %v5625_v3 }
 0x299   : > { %1361 = vperm.xlu0 %4728, %v3615_v6   ;;  %1358 = vperm.xlu1 %4727, %v3614_v42   ;;  %v8480_v42 = vmov 0 }
 0x29d   : > { %1367 = vperm.xlu0 %4728, %v3617_v46   ;;  %1364 = vperm.xlu1 %4727, %v3616_v14   ;;  %v3627_v14 = vadd.s32 4294967040, %v5629_v63  ;;  %v3626_v46 = vadd.s32 4294967040, %v5636_v11 }
 0x2a0   : > { %v897_v23 = vpop.permute.xlu1 %896 }
 0x2a1   : > { %1373 = vperm.xlu0 %4728, %v3619_v60   ;;  %1370 = vperm.xlu1 %4727, %v3618_v30   ;;  %vm992_vm1 = vcmp.eq.s32.totalorder %v5719_v7, %v897_v23  ;;  %vm991_vm3 = vcmp.eq.s32.totalorder %v5714_v9, %v897_v23  ;;  %v8484_v30 = vmov 0  ;;  %v8486_v23 = vmov 0 }
 0x2a2   : > { %vm5726_vm4 = vmpackc.low %vm994_vm2, %vm992_vm1 }
 0x2a3   : > { %3484 = vmatprep.subr.msk.bf16.mxu0 %vm5726_vm4, %v8403_v24  ;;  %3548 = vmatprep.subr.msk.bf16.mxu1 %vm5726_vm4, %v8403_v24  ;;  %v903_v29 = vpop.permute.xlu0 %902  ;;  %vm5739_vm6 = vmpackc.low %vm993_vm5, %vm991_vm3 }
 0x2a4   : > { %vm995_vm7 = vcmp.eq.s32.totalorder %v5714_v9, %v903_v29  ;;  %vm996_vm8 = vcmp.eq.s32.totalorder %v5719_v7, %v903_v29  ;;  %v906_v38 = vpop.permute.xlu1 %905  ;;  %3486 = vmatpush1.bf16.msk.msra.mxu0 %vm5739_vm6, %v8403_v24  ;;  %3550 = vmatpush1.bf16.xpose.msk.msra.mxu1 %vm5739_vm6, %v8403_v24  ;;  %v8488_v29 = vmov 0 }
 0x2a5   : > { %vm997_vm9 = vcmp.eq.s32.totalorder %v5714_v9, %v906_v38  ;;  %vm998_vm10 = vcmp.eq.s32.totalorder %v5719_v7, %v906_v38  ;;  %1379 = vperm.xlu0 %4728, %v3621_v15   ;;  %1376 = vperm.xlu1 %4727, %v3620_v57   ;;  %v3629_v57 = vadd.s32 4294967040, %v5634_v16  ;;  %v3628_v15 = vadd.s32 4294967040, %v5644_v39 }
 0x2a6   : > { %vm5753_vm11 = vmpackc.low %vm998_vm10, %vm996_vm8  ;;  %v3631_v38 = vadd.s32 4294967040, %v5642_v28 }
 0x2a7   : > { %3488 = vmatprep.subr.msk.bf16.mxu0 %vm5753_vm11, %v8403_v24  ;;  %3552 = vmatprep.subr.msk.bf16.mxu1 %vm5753_vm11, %v8403_v24  ;;  %v909_v37 = vpop.permute.xlu0 %908  ;;  %vm5767_vm15 = vmpackc.low %vm997_vm9, %vm995_vm7 }
 0x2a8   : > { %v8477_v53 = vsel %vm5767_vm15, 4294967295, %v8476_v53  ;;  %vm999_vm0 = vcmp.eq.s32.totalorder %v5714_v9, %v909_v37  ;;  %vm1000_vm12 = vcmp.eq.s32.totalorder %v5719_v7, %v909_v37  ;;  %v912_v58 = vpop.permute.xlu1 %911  ;;  %3490 = vmatpush1.bf16.msk.msra.mxu0 %vm5767_vm15, %v8403_v24  ;;  %v3632_v37 = vadd.s32 4294967040, %v5657_v31 }
 0x2a9   : > { %vm1001_vm13 = vcmp.eq.s32.totalorder %v5714_v9, %v912_v58  ;;  %vm1002_vm1 = vcmp.eq.s32.totalorder %v5719_v7, %v912_v58  ;;  %1385 = vperm.xlu0 %4728, %v3623_v51   ;;  %1382 = vperm.xlu1 %4727, %v3622_v47   ;;  %v3630_v47 = vadd.s32 4294967040, %v5652_v0  ;;  %v3633_v51 = vadd.s32 4294967040, %v5650_v34 }
 0x2aa   : > { %vm5778_vm2 = vmpackc.low %vm1002_vm1, %vm1000_vm12  ;;  %v3635_v58 = vadd.s32 4294967040, %v5661_v41 }
 0x2ab   : > { %v8479_v25 = vsel %vm5778_vm2, 4294967295, %v8478_v25  ;;  %3492 = vmatprep.subr.msk.bf16.mxu0 %vm5778_vm2, %v8403_v24  ;;  %v915_v21 = vpop.permute.xlu0 %914  ;;  %vm5787_vm3 = vmpackc.low %vm1001_vm13, %vm999_vm0 }
 0x2ac   : > { %v8481_v42 = vsel %vm5787_vm3, 4294967295, %v8480_v42  ;;  %vm1003_vm5 = vcmp.eq.s32.totalorder %v5714_v9, %v915_v21  ;;  %vm1004_vm7 = vcmp.eq.s32.totalorder %v5719_v7, %v915_v21  ;;  %v918_v6 = vpop.permute.xlu1 %917  ;;  %3494 = vmatpush1.bf16.msk.msra.mxu0 %vm5787_vm3, %v8403_v24  ;;  %3554 = vmatpush1.bf16.xpose.msk.msra.mxu1 %vm5767_vm15, %v8403_v24  ;;  %v3637_v21 = vadd.s32 4294967040, %v5673_v19 }
 0x2ad   : > { %vm1005_vm8 = vcmp.eq.s32.totalorder %v5714_v9, %v918_v6  ;;  %vm1006_vm9 = vcmp.eq.s32.totalorder %v5719_v7, %v918_v6  ;;  %1391 = vperm.xlu0 %4728, %v3625_v8   ;;  %1388 = vperm.xlu1 %4727, %v3624_v12   ;;  %v3634_v12 = vadd.s32 4294967040, %v5665_v52  ;;  %v3636_v8 = vadd.s32 4294967040, %v5669_v26 }
 0x2ae   : > { %3556 = vmatprep.subr.msk.bf16.mxu1 %vm5778_vm2, %v8403_v24  ;;  %vm5804_vm10 = vmpackc.low %vm1006_vm9, %vm1004_vm7 }
 0x2af   : > { %v8483_v62 = vsel %vm5804_vm10, 4294967295, %v8482_v62  ;;  %3496 = vmatprep.subr.msk.bf16.mxu0 %vm5804_vm10, %v8403_v24  ;;  %v921_v61 = vpop.permute.xlu0 %920  ;;  %vm5815_vm0 = vmpackc.low %vm1005_vm8, %vm1003_vm5 }
 0x2b0   : > { %v8485_v30 = vsel %vm5815_vm0, 4294967295, %v8484_v30  ;;  %vm1007_vm12 = vcmp.eq.s32.totalorder %v5714_v9, %v921_v61  ;;  %vm1008_vm13 = vcmp.eq.s32.totalorder %v5719_v7, %v921_v61  ;;  %v924_v60 = vpop.permute.xlu1 %923  ;;  %3498 = vmatpush1.bf16.msk.msra.mxu0 %vm5815_vm0, %v8403_v24  ;;  %v3639_v61 = vadd.s32 4294967040, %v5685_v35 }
 0x2b1   : > { %vm1009_vm1 = vcmp.eq.s32.totalorder %v5714_v9, %v924_v60  ;;  %vm1010_vm7 = vcmp.eq.s32.totalorder %v5719_v7, %v924_v60  ;;  %1397 = vperm.xlu0 %4728, %v3627_v14   ;;  %1394 = vperm.xlu1 %4727, %v3626_v46   ;;  %v3638_v14 = vadd.s32 4294967040, %v5677_v44  ;;  %v8490_v60 = vmov 0 }
 0x2b2   : > { %vm5826_vm9 = vmpackc.low %vm1010_vm7, %vm1008_vm13 }
 0x2b3   : > { %v8487_v23 = vsel %vm5826_vm9, 4294967295, %v8486_v23  ;;  %3500 = vmatprep.subr.msk.bf16.mxu0 %vm5826_vm9, %v8403_v24  ;;  %vm5835_vm5 = vmpackc.low %vm1009_vm1, %vm1007_vm12 }
 0x2b4   : > { %v8489_v29 = vsel %vm5835_vm5, 4294967295, %v8488_v29  ;;  %3502 = vmatpush1.bf16.msk.msra.mxu0 %vm5835_vm5, %v8403_v24  ;;  %3558 = vmatpush1.bf16.xpose.msk.msra.mxu1 %vm5787_vm3, %v8403_v24 }
 0x2b5   : > { %1403 = vperm.xlu0 %4728, %v3629_v57   ;;  %1400 = vperm.xlu1 %4727, %v3628_v15   ;;  %v8493_v57 = vmov 0  ;;  %v3640_v15 = vadd.s32 4294967040, %v5681_v10 }
 0x2b6   : > { %3560 = vmatprep.subr.msk.bf16.mxu1 %vm5804_vm10, %v8403_v24 }
 0x2b9   : > { %1409 = vperm.xlu0 %4728, %v3631_v38   ;;  %1406 = vperm.xlu1 %4727, %v3630_v47   ;;  %v3641_v38 = vadd.s32 4294967040, %v5691_v56  ;;  %v3835_v47 = vadd.s32 4294966784, %v5573_v17 }
 0x2bc   : > { %3562 = vmatpush1.bf16.xpose.msk.msra.mxu1 %vm5815_vm0, %v8403_v24 }
 0x2bd   : > { %1415 = vperm.xlu0 %4728, %v3633_v51   ;;  %1412 = vperm.xlu1 %4727, %v3632_v37   ;;  %v3642_v51 = vadd.s32 4294967040, %v5699_v1  ;;  %v3836_v37 = vadd.s32 4294966784, %v5565_v13 }
 0x2be   : > { %3564 = vmatprep.subr.msk.bf16.mxu1 %vm5826_vm9, %v8403_v24  ;;  %v927_v6 = vpop.permute.xlu0 %926 }
 0x2bf   : > { %vm1012_vm8 = vcmp.eq.s32.totalorder %v5719_v7, %v927_v6  ;;  %vm1011_vm1 = vcmp.eq.s32.totalorder %v5714_v9, %v927_v6  ;;  %v3839_v6 = vadd.s32 4294966784, %v5586_v43 }
 0x2c1   : > { %1421 = vperm.xlu0 %4728, %v3635_v58   ;;  %1418 = vperm.xlu1 %4727, %v3634_v12   ;;  %v3837_v58 = vadd.s32 4294966784, %v5578_v49 }
 0x2c4   : > { %3566 = vmatpush1.bf16.xpose.msk.msra.mxu1 %vm5835_vm5, %v8403_v24 }
 0x2c5   : > { %1427 = vperm.xlu0 %4728, %v3637_v21   ;;  %1424 = vperm.xlu1 %4727, %v3636_v8   ;;  %v3838_v8 = vadd.s32 4294966784, %v5580_v5 }
 0x2c6   : > { %v930_v46 = vpop.permute.xlu1 %929 }
 0x2c7   : > { %vm1013_vm12 = vcmp.eq.s32.totalorder %v5714_v9, %v930_v46  ;;  %vm1014_vm13 = vcmp.eq.s32.totalorder %v5719_v7, %v930_v46  ;;  %v8499_v46 = vmov 0 }
 0x2c8   : > { %vm5871_vm7 = vmpackc.low %vm1014_vm13, %vm1012_vm8 }
 0x2c9   : > { %v8491_v60 = vsel %vm5871_vm7, 4294967295, %v8490_v60  ;;  %1433 = vperm.xlu0 %4728, %v3639_v61   ;;  %1430 = vperm.xlu1 %4727, %v3638_v14   ;;  %vm5875_vm14 = vmpackc.low %vm1013_vm12, %vm1011_vm1  ;;  %v8496_v14 = vmov 0  ;;  %v3840_v61 = vadd.s32 4294966784, %v5588_v22 }
 0x2ca   : > { %8492 = vst [vmem:[#allocation21_spill] sm:$0xff] %v8491_v60  ;;  %v8494_v57 = vsel %vm5875_vm14, 4294967295, %v8493_v57  ;;  %3504 = vmatprep.subr.msk.bf16.mxu0 %vm5871_vm7, %v8403_v24  ;;  %3568 = vmatprep.subr.msk.bf16.mxu1 %vm5871_vm7, %v8403_v24 }
 0x2cb   : > { %8495 = vst [vmem:[#allocation23_spill] sm:$0xff] %v8494_v57  ;;  %3506 = vmatpush1.bf16.msk.msra.mxu0 %vm5875_vm14, %v8403_v24 }
 0x2cc   : > { %3570 = vmatpush1.bf16.xpose.msk.msra.mxu1 %vm5875_vm14, %v8403_v24 }
 0x2cd   : > { %1439 = vperm.xlu0 %4728, %v3641_v38   ;;  %1436 = vperm.xlu1 %4727, %v3640_v15   ;;  %v3841_v15 = vadd.s32 4294966784, %v5594_v4 }
 0x2ce   : > { %v933_v12 = vpop.permute.xlu0 %932 }
 0x2cf   : > { %vm1016_vm8 = vcmp.eq.s32.totalorder %v5719_v7, %v933_v12  ;;  %vm1015_vm1 = vcmp.eq.s32.totalorder %v5714_v9, %v933_v12  ;;  %v3845_v12 = vadd.s32 4294966784, %v5609_v33 }
 0x2d1   : > { %1802 = vperm.xlu0 %4728, %v3835_v47   ;;  %1442 = vperm.xlu1 %4727, %v3642_v51   ;;  %v3842_v47 = vadd.s32 4294966784, %v5596_v27  ;;  %v3843_v51 = vadd.s32 4294966784, %v5602_v48 }
 0x2d5   : > { %1808 = vperm.xlu0 %4728, %v3837_v58   ;;  %1805 = vperm.xlu1 %4727, %v3836_v37   ;;  %v3844_v58 = vadd.s32 4294966784, %v5604_v32 }
 0x2d6   : > { %v936_v21 = vpop.permute.xlu1 %935 }
 0x2d7   : > { %vm1017_vm12 = vcmp.eq.s32.totalorder %v5714_v9, %v936_v21  ;;  %vm1018_vm13 = vcmp.eq.s32.totalorder %v5719_v7, %v936_v21 }
 0x2d8   : > { %vm5903_vm14 = vmpackc.low %vm1018_vm13, %vm1016_vm8 }
 0x2d9   : > { %v8497_v14 = vsel %vm5903_vm14, 4294967295, %v8496_v14  ;;  %1814 = vperm.xlu0 %4728, %v3839_v6   ;;  %1811 = vperm.xlu1 %4727, %v3838_v8   ;;  %vm5907_vm7 = vmpackc.low %vm1017_vm12, %vm1015_vm1  ;;  %v3846_v8 = vadd.s32 4294966784, %v5613_v36  ;;  %v3847_v6 = vadd.s32 4294966784, %v5617_v18 }
 0x2da   : > { %8498 = vst [vmem:[#allocation20_spill] sm:$0xff] %v8497_v14  ;;  %v8500_v46 = vsel %vm5907_vm7, 4294967295, %v8499_v46  ;;  %3508 = vmatprep.subr.msk.bf16.mxu0 %vm5903_vm14, %v8403_v24  ;;  %3572 = vmatprep.subr.msk.bf16.mxu1 %vm5903_vm14, %v8403_v24  ;;  %v8545_v14 = vld [vmem:[#allocation14_spill] sm:$0xff] }
 0x2db   : > { %8501 = vst [vmem:[#allocation25_spill] sm:$0xff] %v8500_v46  ;;  %3510 = vmatpush1.bf16.msk.msra.mxu0 %vm5907_vm7, %v8403_v24  ;;  %3574 = vmatpush1.bf16.xpose.msk.msra.mxu1 %vm5907_vm7, %v8403_v24  ;;  %v3865_v46 = vadd.s32 4294966784, %v5691_v56 }
 0x2dd   : > { %1820 = vperm.xlu0 %4728, %v3841_v15   ;;  %1817 = vperm.xlu1 %4727, %v3840_v61   ;;  %v8502_v15 = vmov 0 }
 0x2de   : > { %v939_v38 = vpop.permute.xlu0 %938 }
 0x2df   : > { %vm1020_vm8 = vcmp.eq.s32.totalorder %v5719_v7, %v939_v38  ;;  %vm1019_vm1 = vcmp.eq.s32.totalorder %v5714_v9, %v939_v38 }
 0x2e1   : > { %1826 = vperm.xlu0 %4728, %v3843_v51   ;;  %1823 = vperm.xlu1 %4727, %v3842_v47   ;;  %v8505_v47 = vmov 0  ;;  %v3848_v51 = vadd.s32 4294966784, %v5621_v20 }
 0x2e2   : > { %v945_v37 = vpop.permute.xlu0 %944 }
 0x2e5   : > { %1832 = vperm.xlu0 %4728, %v3845_v12   ;;  %1829 = vperm.xlu1 %4727, %v3844_v58   ;;  %v3849_v58 = vadd.s32 4294966784, %v5625_v3  ;;  %v8508_v12 = vmov 0 }
 0x2e6   : > { %v942_v21 = vpop.permute.xlu1 %941  ;;  %v951_v61 = vpop.permute.xlu0 %950 }
 0x2e7   : > { %vm1021_vm12 = vcmp.eq.s32.totalorder %v5714_v9, %v942_v21  ;;  %vm1022_vm13 = vcmp.eq.s32.totalorder %v5719_v7, %v942_v21  ;;  %v3851_v21 = vadd.s32 4294966784, %v5629_v63 }
 0x2e8   : > { %vm5935_vm7 = vmpackc.low %vm1022_vm13, %vm1020_vm8  ;;  %vm1024_vm8 = vcmp.eq.s32.totalorder %v5719_v7, %v945_v37 }
 0x2e9   : > { %v8503_v15 = vsel %vm5935_vm7, 4294967295, %v8502_v15  ;;  %1838 = vperm.xlu0 %4728, %v3847_v6   ;;  %1835 = vperm.xlu1 %4727, %v3846_v8   ;;  %vm5939_vm14 = vmpackc.low %vm1021_vm12, %vm1019_vm1  ;;  %vm1023_vm1 = vcmp.eq.s32.totalorder %v5714_v9, %v945_v37  ;;  %v8511_v8 = vmov 0 }
 0x2ea   : > { %8504 = vst [vmem:[#allocation22_spill] sm:$0xff] %v8503_v15  ;;  %v8506_v47 = vsel %vm5939_vm14, 4294967295, %v8505_v47  ;;  %3512 = vmatprep.subr.msk.bf16.mxu0 %vm5935_vm7, %v8403_v24  ;;  %3576 = vmatprep.subr.msk.bf16.mxu1 %vm5935_vm7, %v8403_v24  ;;  %v948_v38 = vpop.permute.xlu1 %947  ;;  %v957_v6 = vpop.permute.xlu0 %956  ;;  %v3861_v15 = vadd.s32 4294966784, %v5673_v19 }
 0x2eb   : > { %8507 = vst [vmem:[#allocation27_spill] sm:$0xff] %v8506_v47  ;;  %vm1025_vm12 = vcmp.eq.s32.totalorder %v5714_v9, %v948_v38  ;;  %vm1026_vm13 = vcmp.eq.s32.totalorder %v5719_v7, %v948_v38  ;;  %3514 = vmatpush1.bf16.msk.msra.mxu0 %vm5939_vm14, %v8403_v24  ;;  %3578 = vmatpush1.bf16.xpose.msk.msra.mxu1 %vm5939_vm14, %v8403_v24  ;;  %v3850_v38 = vadd.s32 4294966784, %v5636_v11  ;;  %v3860_v47 = vadd.s32 4294966784, %v5669_v26 }
 0x2ec   : > { %vm5961_vm7 = vmpackc.low %vm1026_vm13, %vm1024_vm8  ;;  %vm1028_vm8 = vcmp.eq.s32.totalorder %v5719_v7, %v951_v61 }
 0x2ed   : > { %v8509_v12 = vsel %vm5961_vm7, 4294967295, %v8508_v12  ;;  %1844 = vperm.xlu0 %4728, %v3849_v58   ;;  %1841 = vperm.xlu1 %4727, %v3848_v51   ;;  %vm5965_vm5 = vmpackc.low %vm1025_vm12, %vm1023_vm1  ;;  %vm1027_vm1 = vcmp.eq.s32.totalorder %v5714_v9, %v951_v61  ;;  %v8514_v51 = vmov 0  ;;  %v8517_v58 = vmov 0 }
 0x2ee   : > { %8510 = vst [vmem:[#allocation24_spill] sm:$0xff] %v8509_v12  ;;  %v8512_v8 = vsel %vm5965_vm5, 4294967295, %v8511_v8  ;;  %3516 = vmatprep.subr.msk.bf16.mxu0 %vm5961_vm7, %v8403_v24  ;;  %3580 = vmatprep.subr.msk.bf16.mxu1 %vm5961_vm7, %v8403_v24  ;;  %v954_v37 = vpop.permute.xlu1 %953  ;;  %v963_v61 = vpop.permute.xlu0 %962  ;;  %v3857_v12 = vadd.s32 4294966784, %v5650_v34 }
 0x2ef   : > { %8513 = vst [vmem:[#allocation26_spill] sm:$0xff] %v8512_v8  ;;  %vm1029_vm12 = vcmp.eq.s32.totalorder %v5714_v9, %v954_v37  ;;  %vm1030_vm13 = vcmp.eq.s32.totalorder %v5719_v7, %v954_v37  ;;  %3518 = vmatpush1.bf16.msk.msra.mxu0 %vm5965_vm5, %v8403_v24  ;;  %v8529_v8 = vmov 0 }
 0x2f0   : > { %vm5984_vm14 = vmpackc.low %vm1030_vm13, %vm1028_vm8  ;;  %vm1032_vm8 = vcmp.eq.s32.totalorder %v5719_v7, %v957_v6 }
 0x2f1   : > { %v8515_v51 = vsel %vm5984_vm14, 4294967295, %v8514_v51  ;;  %1850 = vperm.xlu0 %4728, %v3851_v21   ;;  %1847 = vperm.xlu1 %4727, %v3850_v38   ;;  %vm5988_vm7 = vmpackc.low %vm1029_vm12, %vm1027_vm1  ;;  %vm1031_vm12 = vcmp.eq.s32.totalorder %v5714_v9, %v957_v6  ;;  %v8520_v21 = vmov 0  ;;  %v8523_v38 = vmov 0 }
 0x2f2   : > { %8516 = vst [vmem:[#allocation29_spill] sm:$0xff] %v8515_v51  ;;  %v8518_v58 = vsel %vm5988_vm7, 4294967295, %v8517_v58  ;;  %3520 = vmatprep.subr.msk.bf16.mxu0 %vm5984_vm14, %v8403_v24  ;;  %v960_v37 = vpop.permute.xlu1 %959  ;;  %v3854_v51 = vadd.s32 4294966784, %v5652_v0 }
 0x2f3   : > { %8519 = vst [vmem:[#allocation28_spill] sm:$0xff] %v8518_v58  ;;  %vm1033_vm13 = vcmp.eq.s32.totalorder %v5714_v9, %v960_v37  ;;  %vm1034_vm9 = vcmp.eq.s32.totalorder %v5719_v7, %v960_v37  ;;  %3522 = vmatpush1.bf16.msk.msra.mxu0 %vm5988_vm7, %v8403_v24  ;;  %3582 = vmatpush1.bf16.xpose.msk.msra.mxu1 %vm5965_vm5, %v8403_v24  ;;  %v3855_v37 = vadd.s32 4294966784, %v5642_v28  ;;  %v3859_v58 = vadd.s32 4294966784, %v5661_v41 }
 0x2f4   : > { %3584 = vmatprep.subr.msk.bf16.mxu1 %vm5984_vm14, %v8403_v24  ;;  %vm6010_vm1 = vmpackc.low %vm1034_vm9, %vm1032_vm8  ;;  %vm1036_vm9 = vcmp.eq.s32.totalorder %v5719_v7, %v963_v61 }
 0x2f5   : > { %v8521_v21 = vsel %vm6010_vm1, 4294967295, %v8520_v21  ;;  %1856 = vperm.xlu0 %4728, %v3853_v55   ;;  %1853 = vperm.xlu1 %4727, %v3852_v59   ;;  %vm6014_vm0 = vmpackc.low %vm1033_vm13, %vm1031_vm12  ;;  %vm1035_vm13 = vcmp.eq.s32.totalorder %v5714_v9, %v963_v61  ;;  %v969_v55 = vpop.permute.xlu0 %968  ;;  %v8526_v59 = vmov 0  ;;  %v3856_v61 = vadd.s32 4294966784, %v5657_v31 }
 0x2f6   : > { %8522 = vst [vmem:[#allocation30_spill] sm:$0xff] %v8521_v21  ;;  %v8524_v38 = vsel %vm6014_vm0, 4294967295, %v8523_v38  ;;  %3524 = vmatprep.subr.msk.bf16.mxu0 %vm6010_vm1, %v8403_v24  ;;  %v966_v6 = vpop.permute.xlu1 %965  ;;  %v3858_v21 = vadd.s32 4294966784, %v5665_v52 }
 0x2f7   : > { %8525 = vst [vmem:[#allocation31_spill] sm:$0xff] %v8524_v38  ;;  %vm1037_vm8 = vcmp.eq.s32.totalorder %v5714_v9, %v966_v6  ;;  %vm1038_vm14 = vcmp.eq.s32.totalorder %v5719_v7, %v966_v6  ;;  %3526 = vmatpush1.bf16.msk.msra.mxu0 %vm6014_vm0, %v8403_v24 }
 0x2f8   : > { %vm6030_vm12 = vmpackc.low %vm1038_vm14, %vm1036_vm9  ;;  %vm1040_vm14 = vcmp.eq.s32.totalorder %v5719_v7, %v969_v55 }
 0x2f9   : > { %v8527_v59 = vsel %vm6030_vm12, 4294967295, %v8526_v59  ;;  %1862 = vperm.xlu0 %4728, %v3855_v37   ;;  %1859 = vperm.xlu1 %4727, %v3854_v51   ;;  %vm6034_vm5 = vmpackc.low %vm1037_vm8, %vm1035_vm13  ;;  %vm1039_vm8 = vcmp.eq.s32.totalorder %v5714_v9, %v969_v55  ;;  %v8532_v37 = vmov 0 }
 0x2fa   : > { %8528 = vst [vmem:[#allocation32_spill] sm:$0xff] %v8527_v59  ;;  %v8530_v8 = vsel %vm6034_vm5, 4294967295, %v8529_v8  ;;  %3528 = vmatprep.subr.msk.bf16.mxu0 %vm6030_vm12, %v8403_v24  ;;  %v972_v6 = vpop.permute.xlu1 %971  ;;  %v3863_v59 = vadd.s32 4294966784, %v5685_v35 }
 0x2fb   : > { %8531 = vst [vmem:[#allocation34_spill] sm:$0xff] %v8530_v8  ;;  %vm1041_vm9 = vcmp.eq.s32.totalorder %v5714_v9, %v972_v6  ;;  %vm1042_vm10 = vcmp.eq.s32.totalorder %v5719_v7, %v972_v6  ;;  %3530 = vmatpush1.bf16.msk.msra.mxu0 %vm6034_vm5, %v8403_v24  ;;  %3586 = vmatpush1.bf16.xpose.msk.msra.mxu1 %vm5988_vm7, %v8403_v24  ;;  %v8534_v6 = vmov 0 }
 0x2fc   : > { %3588 = vmatprep.subr.msk.bf16.mxu1 %vm6010_vm1, %v8403_v24  ;;  %v975_v51 = vpop.permute.xlu0 %974  ;;  %vm6056_vm13 = vmpackc.low %vm1042_vm10, %vm1040_vm14 }
 0x2fd   : > { %v8533_v37 = vsel %vm6056_vm13, 4294967295, %v8532_v37  ;;  %1868 = vperm.xlu0 %4728, %v3857_v12   ;;  %1865 = vperm.xlu1 %4727, %v3856_v61   ;;  %vm6060_vm3 = vmpackc.low %vm1041_vm9, %vm1039_vm8  ;;  %vm1044_vm10 = vcmp.eq.s32.totalorder %v5719_v7, %v975_v51  ;;  %vm1043_vm9 = vcmp.eq.s32.totalorder %v5714_v9, %v975_v51  ;;  %v8536_v12 = vmov 0 }
 0x2fe   : > { %v8535_v6 = vsel %vm6060_vm3, 4294967295, %v8534_v6  ;;  %3532 = vmatprep.subr.msk.bf16.mxu0 %vm6056_vm13, %v8403_v24  ;;  %v978_v55 = vpop.permute.xlu1 %977  ;;  %v8538_v61 = vmov 0  ;;  %v3862_v51 = vadd.s32 4294966784, %v5677_v44 }
 0x2ff   : > { %vm1045_vm14 = vcmp.eq.s32.totalorder %v5714_v9, %v978_v55  ;;  %vm1046_vm1 = vcmp.eq.s32.totalorder %v5719_v7, %v978_v55  ;;  %3534 = vmatpush1.bf16.msk.msra.mxu0 %vm6060_vm3, %v8403_v24 }
 0x300   : > { %vm6076_vm8 = vmpackc.low %vm1046_vm1, %vm1044_vm10 }
 0x301   : > { %v8537_v12 = vsel %vm6076_vm8, 4294967295, %v8536_v12  ;;  %1874 = vperm.xlu0 %4728, %v3859_v58   ;;  %1871 = vperm.xlu1 %4727, %v3858_v21   ;;  %vm6080_vm7 = vmpackc.low %vm1045_vm14, %vm1043_vm9  ;;  %v8540_v21 = vmov 0 }
 0x302   : > { %v8539_v61 = vsel %vm6080_vm7, 4294967295, %v8538_v61  ;;  %3536 = vmatprep.subr.msk.bf16.mxu0 %vm6076_vm8, %v8403_v24  ;;  %v984_v55 = vpop.permute.xlu1 %983 }
 0x303   : > { %3538 = vmatpush1.bf16.msk.msra.mxu0 %vm6080_vm7, %v8403_v24  ;;  %3590 = vmatpush1.bf16.xpose.msk.msra.mxu1 %vm6014_vm0, %v8403_v24  ;;  %vm1050_vm1 = vcmp.eq.s32.totalorder %v5719_v7, %v984_v55  ;;  %vm1049_vm9 = vcmp.eq.s32.totalorder %v5714_v9, %v984_v55  ;;  %v3864_v55 = vadd.s32 4294966784, %v5681_v10 }
 0x304   : > { %3592 = vmatprep.subr.msk.bf16.mxu1 %vm6030_vm12, %v8403_v24  ;;  %v981_v58 = vpop.permute.xlu0 %980 }
 0x305   : > { %vm1047_vm10 = vcmp.eq.s32.totalorder %v5714_v9, %v981_v58  ;;  %vm1048_vm14 = vcmp.eq.s32.totalorder %v5719_v7, %v981_v58  ;;  %1880 = vperm.xlu0 %4728, %v3861_v15   ;;  %1877 = vperm.xlu1 %4727, %v3860_v47   ;;  %v4764_v15 = vld [vmem:[%s5044_s14] sm:$0xff] }
 0x306   : > { %vm6102_vm2 = vmpackc.low %vm1050_vm1, %vm1048_vm14  ;;  %v8544_v47 = vld [vmem:[#allocation15_spill] sm:$0xff]  ;;  %vm8547_vm1 = vcmp.eq.s32.totalorder %v8468_v45, 3 }
 0x307   : > { %v8541_v21 = vsel %vm6102_vm2, 4294967295, %v8540_v21  ;;  %3540 = vmatprep.subr.msk.bf16.mxu0 %vm6102_vm2, %v8403_v24  ;;  %vm6111_vm12 = vmpackc.low %vm1049_vm9, %vm1047_vm10  ;;  %v328_v58 = vsub.f32 %v4764_v15, %v8544_v47 }
 0x308   : > { %3542 = vmatpush1.bf16.msk.msra.mxu0 %vm6111_vm12, %v8403_v24 }
 0x309   : > { %1886 = vperm.xlu0 %4728, %v3863_v59   ;;  %1883 = vperm.xlu1 %4727, %v3862_v51   ;;  %v6126_v57 = vmul.f32 %v8545_v14, %v328_v58  ;;  %v3866_v59 = vadd.s32 4294966784, %v5699_v1  ;;  %v4059_v51 = vadd.s32 4294966528, %v5573_v17  ;;  %v4060_v17 = vadd.s32 4294966528, %v5565_v13 }
 0x30a   : > { %v8550_v58 = vmov 0 }
 0x30b   : > { %3594 = vmatpush1.bf16.xpose.msk.msra.mxu1 %vm6034_vm5, %v8403_v24  ;;  %8546 = vst [vmem:[#allocation33_spill] sm:$0xff] %v6126_v57  ;;  %v853_v8 = vsel %vm8547_vm1, %v8545_v14, %v6126_v57 }
 0x30c   : > { %3596 = vmatprep.subr.msk.bf16.mxu1 %vm6056_vm13, %v8403_v24  ;;  %v987_v15 = vpop.permute.xlu0 %986 }
 0x30d   : > { %1892 = vperm.xlu0 %4728, %v3865_v46   ;;  %1889 = vperm.xlu1 %4727, %v3864_v55   ;;  %vm1052_vm10 = vcmp.eq.s32.totalorder %v5719_v7, %v987_v15  ;;  %vm1051_vm13 = vcmp.eq.s32.totalorder %v5714_v9, %v987_v15  ;;  %v8548_v46 = vmov 0  ;;  %v6156_v55 = vpack.c.bf16 %v853_v8, %v853_v8 }
 0x30e   : > { %v4061_v15 = vadd.s32 4294966528, %v5578_v49  ;;  %v8554_v8 = vmov 0  ;;  %v9001_v49 = vld [vmem:[#allocation17_spill] sm:$0xff] }
 0x310   : > { %v990_v47 = vpop.permute.xlu1 %989  ;;  %v1350_v60 = vpop.permute.xlu0 %1349 }
 0x311   : > { %vm1053_vm14 = vcmp.eq.s32.totalorder %v5714_v9, %v990_v47  ;;  %vm1054_vm9 = vcmp.eq.s32.totalorder %v5719_v7, %v990_v47  ;;  %1895 = vperm.xlu1 %4727, %v3866_v59   ;;  %2255 = vperm.xlu0 %4728, %v4059_v51   ;;  %v4062_v51 = vadd.s32 4294966528, %v5580_v5  ;;  %v4063_v47 = vadd.s32 4294966528, %v5586_v43  ;;  %v9003_v5 = vld [vmem:[#allocation13_spill] sm:$0xff] }
 0x312   : > { %vm6141_vm5 = vmpackc.low %vm1054_vm9, %vm1052_vm10  ;;  %vm1444_vm10 = vcmp.eq.s32.totalorder %v5714_v9, %v1350_v60  ;;  %vm1445_vm9 = vcmp.eq.s32.totalorder %v5719_v7, %v1350_v60  ;;  %v8558_v43 = vmov 0 }
 0x313   : > { %v8549_v46 = vsel %vm6141_vm5, 4294967295, %v8548_v46  ;;  %3598 = vmatpush1.bf16.xpose.msk.msra.mxu1 %vm6060_vm3, %v8403_v24  ;;  %3544 = vmatprep.subr.msk.bf16.mxu0 %vm6141_vm5, %v8403_v24  ;;  %vm6152_vm1 = vmpackc.low %vm1053_vm14, %vm1051_vm13 }
 0x314   : > { %v8551_v58 = vsel %vm6152_vm1, 4294967295, %v8550_v58  ;;  %3600 = vmatprep.subr.msk.bf16.mxu1 %vm6076_vm8, %v8403_v24  ;;  %v1353_v13 = vpop.permute.xlu1 %1352  ;;  %3546 = vmatpush1.bf16.msk.msra.mxu0 %vm6152_vm1, %v8403_v24  ;;  %v1356_v59 = vpop.permute.xlu0 %1355 }
 0x315   : > { %vm1446_vm13 = vcmp.eq.s32.totalorder %v5714_v9, %v1353_v13  ;;  %vm1447_vm14 = vcmp.eq.s32.totalorder %v5719_v7, %v1353_v13  ;;  %2258 = vperm.xlu1 %4727, %v4060_v17   ;;  %2261 = vperm.xlu0 %4728, %v4061_v15   ;;  %v4064_v15 = vadd.s32 4294966528, %v5588_v22  ;;  %v4065_v13 = vadd.s32 4294966528, %v5594_v4 }
 0x316   : > { %vm6169_vm3 = vmpackc.low %vm1446_vm13, %vm1444_vm10  ;;  %vm1449_vm10 = vcmp.eq.s32.totalorder %v5719_v7, %v1356_v59  ;;  %v8560_v22 = vmov 0 }
 0x317   : > { %1248 = vmatmul.mubr.bf16.vlgmr.msra.gmra.mrb[0].mxu0 %v6156_v55  ;;  %vm6174_vm8 = vmpackc.low %vm1447_vm14, %vm1445_vm9  ;;  %vm1448_vm9 = vcmp.eq.s32.totalorder %v5714_v9, %v1356_v59 }
 0x318   : > { %v8555_v8 = vsel %vm6174_vm8, 4294967295, %v8554_v8  ;;  %3708 = vmatprep.subr.msk.bf16.mxu0 %vm6174_vm8, %v8403_v24  ;;  %v1359_v60 = vpop.permute.xlu1 %1358  ;;  %v1362_v17 = vpop.permute.xlu0 %1361  ;;  %1700 = vmatprep.mubr.bf16.mxu0 %v5708_v2 }
 0x319   : > { %vm1450_vm13 = vcmp.eq.s32.totalorder %v5714_v9, %v1359_v60  ;;  %vm1451_vm14 = vcmp.eq.s32.totalorder %v5719_v7, %v1359_v60  ;;  %3710 = vmatpush1.bf16.msk.msra.mxu0 %vm6169_vm3, %v8403_v24  ;;  %2264 = vperm.xlu1 %4727, %v4062_v51   ;;  %v4067_v60 = vadd.s32 4294966528, %v5602_v48  ;;  %v4068_v48 = vadd.s32 4294966528, %v5604_v32 }
 0x31a   : > { %vm6191_vm0 = vmpackc.low %vm1451_vm14, %vm1449_vm10  ;;  %2267 = vperm.xlu0 %4728, %v4063_v47   ;;  %vm1453_vm10 = vcmp.eq.s32.totalorder %v5719_v7, %v1362_v17  ;;  %v4066_v47 = vadd.s32 4294966528, %v5596_v27  ;;  %v8566_v27 = vmov 0  ;;  %v8568_v32 = vmov 0 }
 0x31b   : > { %vm6195_vm15 = vmpackc.low %vm1450_vm13, %vm1448_vm9  ;;  %3602 = vmatpush1.bf16.xpose.msk.msra.mxu1 %vm6080_vm7, %v8403_v24  ;;  %3712 = vmatprep.subr.msk.bf16.mxu0 %vm6191_vm0, %v8403_v24  ;;  %vm1452_vm9 = vcmp.eq.s32.totalorder %v5714_v9, %v1362_v17 }
 0x31c   : > { %v8559_v43 = vsel %vm6195_vm15, 4294967295, %v8558_v43  ;;  %3604 = vmatprep.subr.msk.bf16.mxu1 %vm6102_vm2, %v8403_v24  ;;  %v1365_v59 = vpop.permute.xlu1 %1364  ;;  %v1368_v51 = vpop.permute.xlu0 %1367 }
 0x31d   : > { %vm1454_vm13 = vcmp.eq.s32.totalorder %v5714_v9, %v1365_v59  ;;  %vm1455_vm14 = vcmp.eq.s32.totalorder %v5719_v7, %v1365_v59  ;;  %3714 = vmatpush1.bf16.msk.msra.mxu0 %vm6195_vm15, %v8403_v24  ;;  %2270 = vperm.xlu1 %4727, %v4064_v15   ;;  %v8564_v15 = vmov 0 }
 0x31e   : > { %vm6217_vm7 = vmpackc.low %vm1455_vm14, %vm1453_vm10  ;;  %2273 = vperm.xlu0 %4728, %v4065_v13   ;;  %vm1457_vm10 = vcmp.eq.s32.totalorder %v5719_v7, %v1368_v51  ;;  %v4069_v13 = vadd.s32 4294966528, %v5609_v33  ;;  %v8570_v33 = vmov 0 }
 0x31f   : > { %v8561_v22 = vsel %vm6217_vm7, 4294967295, %v8560_v22  ;;  %vm6221_vm2 = vmpackc.low %vm1454_vm13, %vm1452_vm9  ;;  %3716 = vmatprep.subr.msk.bf16.mxu0 %vm6217_vm7, %v8403_v24  ;;  %vm1456_vm13 = vcmp.eq.s32.totalorder %v5714_v9, %v1368_v51 }
 0x320   : > { %v1371_v59 = vpop.permute.xlu1 %1370  ;;  %v1374_v17 = vpop.permute.xlu0 %1373 }
 0x321   : > { %vm1458_vm14 = vcmp.eq.s32.totalorder %v5714_v9, %v1371_v59  ;;  %vm1459_vm15 = vcmp.eq.s32.totalorder %v5719_v7, %v1371_v59  ;;  %3718 = vmatpush1.bf16.msk.msra.mxu0 %vm6221_vm2, %v8403_v24  ;;  %2276 = vperm.xlu1 %4727, %v4066_v47   ;;  %v4071_v59 = vadd.s32 4294966528, %v5617_v18  ;;  %v4072_v18 = vadd.s32 4294966528, %v5621_v20 }
 0x322   : > { %vm6237_vm9 = vmpackc.low %vm1459_vm15, %vm1457_vm10  ;;  %2279 = vperm.xlu0 %4728, %v4067_v60   ;;  %vm1461_vm15 = vcmp.eq.s32.totalorder %v5719_v7, %v1374_v17  ;;  %v4070_v60 = vadd.s32 4294966528, %v5613_v36  ;;  %v8574_v36 = vmov 0  ;;  %v8576_v20 = vmov 0 }
 0x323   : > { %v8565_v15 = vsel %vm6237_vm9, 4294967295, %v8564_v15  ;;  %vm6241_vm7 = vmpackc.low %vm1458_vm14, %vm1456_vm13  ;;  %3606 = vmatpush1.bf16.xpose.msk.msra.mxu1 %vm6111_vm12, %v8403_v24  ;;  %3720 = vmatprep.subr.msk.bf16.mxu0 %vm6237_vm9, %v8403_v24  ;;  %vm1460_vm13 = vcmp.eq.s32.totalorder %v5714_v9, %v1374_v17 }
 0x324   : > { %v8567_v27 = vsel %vm6241_vm7, 4294967295, %v8566_v27  ;;  %3608 = vmatprep.subr.msk.bf16.mxu1 %vm6141_vm5, %v8403_v24  ;;  %v1377_v51 = vpop.permute.xlu1 %1376  ;;  %v1380_v47 = vpop.permute.xlu0 %1379 }
 0x325   : > { %vm1462_vm10 = vcmp.eq.s32.totalorder %v5714_v9, %v1377_v51  ;;  %vm1463_vm14 = vcmp.eq.s32.totalorder %v5719_v7, %v1377_v51  ;;  %3722 = vmatpush1.bf16.msk.msra.mxu0 %vm6241_vm7, %v8403_v24  ;;  %2282 = vperm.xlu1 %4727, %v4068_v48   ;;  %v8572_v48 = vmov 0 }
 0x326   : > { %vm6263_vm9 = vmpackc.low %vm1463_vm14, %vm1461_vm15  ;;  %2285 = vperm.xlu0 %4728, %v4069_v13   ;;  %vm1465_vm15 = vcmp.eq.s32.totalorder %v5719_v7, %v1380_v47  ;;  %v4073_v13 = vadd.s32 4294966528, %v5625_v3  ;;  %v8578_v3 = vmov 0 }
 0x327   : > { %v8569_v32 = vsel %vm6263_vm9, 4294967295, %v8568_v32  ;;  %vm6267_vm5 = vmpackc.low %vm1462_vm10, %vm1460_vm13  ;;  %3724 = vmatprep.subr.msk.bf16.mxu0 %vm6263_vm9, %v8403_v24  ;;  %vm1464_vm10 = vcmp.eq.s32.totalorder %v5714_v9, %v1380_v47 }
 0x328   : > { %v8571_v33 = vsel %vm6267_vm5, 4294967295, %v8570_v33  ;;  %v1383_v51 = vpop.permute.xlu1 %1382  ;;  %v1386_v17 = vpop.permute.xlu0 %1385 }
 0x329   : > { %vm1466_vm14 = vcmp.eq.s32.totalorder %v5714_v9, %v1383_v51  ;;  %vm1467_vm7 = vcmp.eq.s32.totalorder %v5719_v7, %v1383_v51  ;;  %3726 = vmatpush1.bf16.msk.msra.mxu0 %vm6267_vm5, %v8403_v24  ;;  %2288 = vperm.xlu1 %4727, %v4070_v60   ;;  %v4074_v51 = vadd.s32 4294966528, %v5636_v11  ;;  %v4077_v11 = vadd.s32 4294966528, %v5634_v16 }
 0x32a   : > { %vm6283_vm13 = vmpackc.low %vm1467_vm7, %vm1465_vm15  ;;  %2291 = vperm.xlu0 %4728, %v4071_v59   ;;  %vm1469_vm7 = vcmp.eq.s32.totalorder %v5719_v7, %v1386_v17  ;;  %v4075_v59 = vadd.s32 4294966528, %v5629_v63  ;;  %v8582_v63 = vmov 0  ;;  %v8586_v16 = vmov 0 }
 0x32b   : > { %v8573_v48 = vsel %vm6283_vm13, 4294967295, %v8572_v48  ;;  %vm6287_vm9 = vmpackc.low %vm1466_vm14, %vm1464_vm10  ;;  %3610 = vmatpush1.bf16.xpose.msk.msra.mxu1 %vm6152_vm1, %v8403_v24  ;;  %3728 = vmatprep.subr.msk.bf16.mxu0 %vm6283_vm13, %v8403_v24  ;;  %vm1468_vm10 = vcmp.eq.s32.totalorder %v5714_v9, %v1386_v17 }
 0x32c   : > { %v8575_v36 = vsel %vm6287_vm9, 4294967295, %v8574_v36  ;;  %3772 = vmatprep.subr.msk.bf16.mxu1 %vm6174_vm8, %v8403_v24  ;;  %v1389_v47 = vpop.permute.xlu1 %1388  ;;  %v1392_v60 = vpop.permute.xlu0 %1391 }
 0x32d   : > { %vm1470_vm15 = vcmp.eq.s32.totalorder %v5714_v9, %v1389_v47  ;;  %vm1471_vm14 = vcmp.eq.s32.totalorder %v5719_v7, %v1389_v47  ;;  %3730 = vmatpush1.bf16.msk.msra.mxu0 %vm6287_vm9, %v8403_v24  ;;  %2294 = vperm.xlu1 %4727, %v4072_v18   ;;  %v8580_v18 = vmov 0 }
 0x32e   : > { %vm6309_vm13 = vmpackc.low %vm1471_vm14, %vm1469_vm7  ;;  %2297 = vperm.xlu0 %4728, %v4073_v13   ;;  %vm1473_vm7 = vcmp.eq.s32.totalorder %v5719_v7, %v1392_v60  ;;  %v4076_v13 = vadd.s32 4294966528, %v5644_v39  ;;  %v4079_v39 = vadd.s32 4294966528, %v5642_v28  ;;  %v8590_v28 = vmov 0 }
 0x32f   : > { %v8577_v20 = vsel %vm6309_vm13, 4294967295, %v8576_v20  ;;  %vm6313_vm5 = vmpackc.low %vm1470_vm15, %vm1468_vm10  ;;  %3732 = vmatprep.subr.msk.bf16.mxu0 %vm6309_vm13, %v8403_v24  ;;  %vm1472_vm15 = vcmp.eq.s32.totalorder %v5714_v9, %v1392_v60 }
 0x330   : > { %v8579_v3 = vsel %vm6313_vm5, 4294967295, %v8578_v3  ;;  %v1395_v47 = vpop.permute.xlu1 %1394  ;;  %v1398_v17 = vpop.permute.xlu0 %1397 }
 0x331   : > { %vm1474_vm14 = vcmp.eq.s32.totalorder %v5714_v9, %v1395_v47  ;;  %vm1475_vm9 = vcmp.eq.s32.totalorder %v5719_v7, %v1395_v47  ;;  %3734 = vmatpush1.bf16.msk.msra.mxu0 %vm6313_vm5, %v8403_v24  ;;  %2300 = vperm.xlu1 %4727, %v4074_v51   ;;  %v4078_v51 = vadd.s32 4294966528, %v5652_v0  ;;  %v4081_v0 = vadd.s32 4294966528, %v5650_v34 }
 0x332   : > { %vm6329_vm10 = vmpackc.low %vm1475_vm9, %vm1473_vm7  ;;  %2303 = vperm.xlu0 %4728, %v4075_v59   ;;  %vm1477_vm9 = vcmp.eq.s32.totalorder %v5719_v7, %v1398_v17  ;;  %v8584_v59 = vmov 0  ;;  %v8594_v34 = vmov 0 }
 0x333   : > { %v8581_v18 = vsel %vm6329_vm10, 4294967295, %v8580_v18  ;;  %vm6333_vm13 = vmpackc.low %vm1474_vm14, %vm1472_vm15  ;;  %3736 = vmatprep.subr.msk.bf16.mxu0 %vm6329_vm10, %v8403_v24  ;;  %vm1476_vm14 = vcmp.eq.s32.totalorder %v5714_v9, %v1398_v17 }
 0x334   : > { %v8583_v63 = vsel %vm6333_vm13, 4294967295, %v8582_v63  ;;  %v1401_v47 = vpop.permute.xlu1 %1400  ;;  %v1404_v60 = vpop.permute.xlu0 %1403 }
 0x335   : > { %vm1478_vm7 = vcmp.eq.s32.totalorder %v5714_v9, %v1401_v47  ;;  %vm1479_vm5 = vcmp.eq.s32.totalorder %v5719_v7, %v1401_v47  ;;  %3738 = vmatpush1.bf16.msk.msra.mxu0 %vm6333_vm13, %v8403_v24  ;;  %2306 = vperm.xlu1 %4727, %v4076_v13   ;;  %v4080_v13 = vadd.s32 4294966528, %v5657_v31  ;;  %v4083_v31 = vadd.s32 4294966528, %v5661_v41 }
 0x336   : > { %vm6349_vm15 = vmpackc.low %vm1479_vm5, %vm1477_vm9  ;;  %2309 = vperm.xlu0 %4728, %v4077_v11   ;;  %vm1481_vm5 = vcmp.eq.s32.totalorder %v5719_v7, %v1404_v60  ;;  %v8588_v11 = vmov 0  ;;  %v8598_v41 = vmov 0 }
 0x337   : > { %v8585_v59 = vsel %vm6349_vm15, 4294967295, %v8584_v59  ;;  %vm6353_vm10 = vmpackc.low %vm1478_vm7, %vm1476_vm14  ;;  %3740 = vmatprep.subr.msk.bf16.mxu0 %vm6349_vm15, %v8403_v24  ;;  %vm1480_vm7 = vcmp.eq.s32.totalorder %v5714_v9, %v1404_v60 }
 0x338   : > { %v8587_v16 = vsel %vm6353_vm10, 4294967295, %v8586_v16  ;;  %v1407_v47 = vpop.permute.xlu1 %1406  ;;  %v1410_v17 = vpop.permute.xlu0 %1409 }
 0x339   : > { %vm1482_vm9 = vcmp.eq.s32.totalorder %v5714_v9, %v1407_v47  ;;  %vm1483_vm13 = vcmp.eq.s32.totalorder %v5719_v7, %v1407_v47  ;;  %3742 = vmatpush1.bf16.msk.msra.mxu0 %vm6353_vm10, %v8403_v24  ;;  %2312 = vperm.xlu1 %4727, %v4078_v51   ;;  %v4082_v51 = vadd.s32 4294966528, %v5665_v52  ;;  %v4084_v52 = vadd.s32 4294966528, %v5669_v26 }
 0x33a   : > { %vm6369_vm14 = vmpackc.low %vm1483_vm13, %vm1481_vm5  ;;  %2315 = vperm.xlu0 %4728, %v4079_v39   ;;  %vm1485_vm13 = vcmp.eq.s32.totalorder %v5719_v7, %v1410_v17  ;;  %v8592_v39 = vmov 0  ;;  %v8602_v26 = vmov 0 }
 0x33b   : > { %v8589_v11 = vsel %vm6369_vm14, 4294967295, %v8588_v11  ;;  %vm6373_vm15 = vmpackc.low %vm1482_vm9, %vm1480_vm7  ;;  %3744 = vmatprep.subr.msk.bf16.mxu0 %vm6369_vm14, %v8403_v24  ;;  %vm1484_vm9 = vcmp.eq.s32.totalorder %v5714_v9, %v1410_v17 }
 0x33c   : > { %v8591_v28 = vsel %vm6373_vm15, 4294967295, %v8590_v28  ;;  %v1413_v47 = vpop.permute.xlu1 %1412  ;;  %v1416_v60 = vpop.permute.xlu0 %1415 }
 0x33d   : > { %vm1486_vm5 = vcmp.eq.s32.totalorder %v5714_v9, %v1413_v47  ;;  %vm1487_vm10 = vcmp.eq.s32.totalorder %v5719_v7, %v1413_v47  ;;  %3746 = vmatpush1.bf16.msk.msra.mxu0 %vm6373_vm15, %v8403_v24  ;;  %2318 = vperm.xlu1 %4727, %v4080_v13   ;;  %v4085_v13 = vadd.s32 4294966528, %v5673_v19  ;;  %v4086_v19 = vadd.s32 4294966528, %v5677_v44 }
 0x33e   : > { %vm6389_vm7 = vmpackc.low %vm1487_vm10, %vm1485_vm13  ;;  %2321 = vperm.xlu0 %4728, %v4081_v0   ;;  %vm1489_vm10 = vcmp.eq.s32.totalorder %v5719_v7, %v1416_v60  ;;  %v8596_v0 = vmov 0  ;;  %v8606_v44 = vmov 0 }
 0x33f   : > { %v8593_v39 = vsel %vm6389_vm7, 4294967295, %v8592_v39  ;;  %vm6393_vm14 = vmpackc.low %vm1486_vm5, %vm1484_vm9  ;;  %3748 = vmatprep.subr.msk.bf16.mxu0 %vm6389_vm7, %v8403_v24  ;;  %vm1488_vm5 = vcmp.eq.s32.totalorder %v5714_v9, %v1416_v60 }
 0x340   : > { %v8595_v34 = vsel %vm6393_vm14, 4294967295, %v8594_v34  ;;  %v1419_v47 = vpop.permute.xlu1 %1418  ;;  %v1422_v17 = vpop.permute.xlu0 %1421 }
 0x341   : > { %vm1490_vm13 = vcmp.eq.s32.totalorder %v5714_v9, %v1419_v47  ;;  %vm1491_vm15 = vcmp.eq.s32.totalorder %v5719_v7, %v1419_v47  ;;  %3750 = vmatpush1.bf16.msk.msra.mxu0 %vm6393_vm14, %v8403_v24  ;;  %2324 = vperm.xlu1 %4727, %v4082_v51   ;;  %v4087_v51 = vadd.s32 4294966528, %v5685_v35  ;;  %v4088_v35 = vadd.s32 4294966528, %v5681_v10 }
 0x342   : > { %vm6409_vm9 = vmpackc.low %vm1491_vm15, %vm1489_vm10  ;;  %2327 = vperm.xlu0 %4728, %v4083_v31   ;;  %vm1493_vm15 = vcmp.eq.s32.totalorder %v5719_v7, %v1422_v17  ;;  %v8600_v31 = vmov 0  ;;  %v8610_v10 = vmov 0 }
 0x343   : > { %v8597_v0 = vsel %vm6409_vm9, 4294967295, %v8596_v0  ;;  %vm6413_vm7 = vmpackc.low %vm1490_vm13, %vm1488_vm5  ;;  %3752 = vmatprep.subr.msk.bf16.mxu0 %vm6409_vm9, %v8403_v24  ;;  %vm1492_vm13 = vcmp.eq.s32.totalorder %v5714_v9, %v1422_v17 }
 0x344   : > { %v8599_v41 = vsel %vm6413_vm7, 4294967295, %v8598_v41  ;;  %v1425_v47 = vpop.permute.xlu1 %1424  ;;  %v1428_v60 = vpop.permute.xlu0 %1427 }
 0x345   : > { %vm1494_vm10 = vcmp.eq.s32.totalorder %v5714_v9, %v1425_v47  ;;  %vm1495_vm14 = vcmp.eq.s32.totalorder %v5719_v7, %v1425_v47  ;;  %3754 = vmatpush1.bf16.msk.msra.mxu0 %vm6413_vm7, %v8403_v24  ;;  %2330 = vperm.xlu1 %4727, %v4084_v52   ;;  %v8604_v52 = vmov 0 }
 0x346   : > { %vm6429_vm5 = vmpackc.low %vm1495_vm14, %vm1493_vm15  ;;  %2333 = vperm.xlu0 %4728, %v4085_v13   ;;  %vm1497_vm14 = vcmp.eq.s32.totalorder %v5719_v7, %v1428_v60  ;;  %v4089_v13 = vadd.s32 4294966528, %v5691_v56  ;;  %v4090_v56 = vadd.s32 4294966528, %v5699_v1  ;;  %v8614_v1 = vmov 0  }
 0x347   : > { %v8601_v31 = vsel %vm6429_vm5, 4294967295, %v8600_v31  ;;  %vm6433_vm9 = vmpackc.low %vm1494_vm10, %vm1492_vm13  ;;  %3756 = vmatprep.subr.msk.bf16.mxu0 %vm6429_vm5, %v8403_v24  ;;  %vm1496_vm10 = vcmp.eq.s32.totalorder %v5714_v9, %v1428_v60 }
 0x348   : > { %v8603_v26 = vsel %vm6433_vm9, 4294967295, %v8602_v26  ;;  %v1431_v47 = vpop.permute.xlu1 %1430  ;;  %v1434_v17 = vpop.permute.xlu0 %1433 }
 0x349   : > { %vm1498_vm15 = vcmp.eq.s32.totalorder %v5714_v9, %v1431_v47  ;;  %vm1499_vm7 = vcmp.eq.s32.totalorder %v5719_v7, %v1431_v47  ;;  %3758 = vmatpush1.bf16.msk.msra.mxu0 %vm6433_vm9, %v8403_v24  ;;  %2336 = vperm.xlu1 %4727, %v4086_v19   ;;  %v8608_v19 = vmov 0 }
 0x34a   : > { %vm6449_vm13 = vmpackc.low %vm1499_vm7, %vm1497_vm14  ;;  %2339 = vperm.xlu0 %4728, %v4087_v51   ;;  %vm1501_vm7 = vcmp.eq.s32.totalorder %v5719_v7, %v1434_v17 }
 0x34b   : > { %v8605_v52 = vsel %vm6449_vm13, 4294967295, %v8604_v52  ;;  %vm6453_vm5 = vmpackc.low %vm1498_vm15, %vm1496_vm10  ;;  %3760 = vmatprep.subr.msk.bf16.mxu0 %vm6449_vm13, %v8403_v24  ;;  %vm1500_vm15 = vcmp.eq.s32.totalorder %v5714_v9, %v1434_v17  ;;  %v8612_v17 = vmov 0 }
 0x34c   : > { %v8607_v44 = vsel %vm6453_vm5, 4294967295, %v8606_v44  ;;  %v1437_v47 = vpop.permute.xlu1 %1436  ;;  %v1440_v60 = vpop.permute.xlu0 %1439 }
 0x34d   : > { %vm1502_vm14 = vcmp.eq.s32.totalorder %v5714_v9, %v1437_v47  ;;  %vm1503_vm9 = vcmp.eq.s32.totalorder %v5719_v7, %v1437_v47  ;;  %3762 = vmatpush1.bf16.msk.msra.mxu0 %vm6453_vm5, %v8403_v24  ;;  %2342 = vperm.xlu1 %4727, %v4088_v35   ;;  %vm1505_vm5 = vcmp.eq.s32.totalorder %v5719_v7, %v1440_v60  ;;  %v8615_v35 = vmov 0 }
 0x34e   : > { %vm6469_vm10 = vmpackc.low %vm1503_vm9, %vm1501_vm7  ;;  %2345 = vperm.xlu0 %4728, %v4089_v13  }
 0x34f   : > { %v8609_v19 = vsel %vm6469_vm10, 4294967295, %v8608_v19  ;;  %vm6473_vm13 = vmpackc.low %vm1502_vm14, %vm1500_vm15  ;;  %3764 = vmatprep.subr.msk.bf16.mxu0 %vm6469_vm10, %v8403_v24  ;;  %vm1504_vm14 = vcmp.eq.s32.totalorder %v5714_v9, %v1440_v60  ;;  %v8617_v60 = vmov 0 }
 0x350   : > { %v8611_v10 = vsel %vm6473_vm13, 4294967295, %v8610_v10  ;;  %v1443_v51 = vpop.permute.xlu1 %1442  ;;  %v1803_v47 = vpop.permute.xlu0 %1802 }
 0x351   : > { %vm1506_vm9 = vcmp.eq.s32.totalorder %v5714_v9, %v1443_v51  ;;  %vm1507_vm7 = vcmp.eq.s32.totalorder %v5719_v7, %v1443_v51  ;;  %3766 = vmatpush1.bf16.msk.msra.mxu0 %vm6473_vm13, %v8403_v24  ;;  %2348 = vperm.xlu1 %4727, %v4090_v56   ;;  %vm1898_vm13 = vcmp.eq.s32.totalorder %v5719_v7, %v1803_v47  ;;  %v8619_v56 = vmov 0 }
 0x352   : > { %vm6488_vm15 = vmpackc.low %vm1507_vm7, %vm1505_vm5  ;;  %4729 = vset.pattern.permute.xlu0 %v8614_v1 }
 0x353   : > { %v8613_v17 = vsel %vm6488_vm15, 4294967295, %v8612_v17  ;;  %vm6493_vm10 = vmpackc.low %vm1506_vm9, %vm1504_vm14  ;;  %3768 = vmatprep.subr.msk.bf16.mxu0 %vm6488_vm15, %v8403_v24  ;;  %vm1897_vm9 = vcmp.eq.s32.totalorder %v5714_v9, %v1803_v47  ;;  %v8622_v47 = vmov 0 }
 0x354   : > { %v8616_v35 = vsel %vm6493_vm10, 4294967295, %v8615_v35  ;;  %v1806_v13 = vpop.permute.xlu1 %1805  ;;  %v1809_v51 = vpop.permute.xlu0 %1808 }
 0x355   : > { %vm1899_vm5 = vcmp.eq.s32.totalorder %v5714_v9, %v1806_v13  ;;  %vm1900_vm7 = vcmp.eq.s32.totalorder %v5719_v7, %v1806_v13  ;;  %3770 = vmatpush1.bf16.msk.msra.mxu0 %vm6493_vm10, %v8403_v24  ;;  %4730 = vset.pattern.permute.xlu1 %v8614_v1  ;;  %vm1902_vm10 = vcmp.eq.s32.totalorder %v5719_v7, %v1809_v51  ;;  %v8625_v1 = vmov 0 }
 0x356   : > { %vm6507_vm14 = vmpackc.low %vm1900_vm7, %vm1898_vm13 }
 0x357   : > { %v8618_v60 = vsel %vm6507_vm14, 4294967295, %v8617_v60  ;;  %vm6512_vm15 = vmpackc.low %vm1899_vm5, %vm1897_vm9  ;;  %3932 = vmatprep.subr.msk.bf16.mxu0 %vm6507_vm14, %v8403_v24  ;;  %vm1901_vm5 = vcmp.eq.s32.totalorder %v5714_v9, %v1809_v51  ;;  %v8628_v51 = vmov 0 }
 0x358   : > { %v8620_v56 = vsel %vm6512_vm15, 4294967295, %v8619_v56  ;;  %v1812_v13 = vpop.permute.xlu1 %1811  ;;  %v1815_v14 = vpop.permute.xlu0 %1814  ;;  %1701 = vmatmul.mubr.bf16.vlgmr.msra.gmra.mrb[4].mxu0 %v6156_v55 }
 0x359   : > { %8621 = vst [vmem:[#allocation35_spill] sm:$0xff] %v8620_v56  ;;  %vm1903_vm13 = vcmp.eq.s32.totalorder %v5714_v9, %v1812_v13  ;;  %vm1904_vm7 = vcmp.eq.s32.totalorder %v5719_v7, %v1812_v13  ;;  %3934 = vmatpush1.bf16.msk.msra.mxu0 %vm6512_vm15, %v8403_v24  ;;  %2153 = vmatprep.mubr.bf16.mxu0 %v5708_v2 }
 0x35a   : > { %vm6527_vm9 = vmpackc.low %vm1904_vm7, %vm1902_vm10  ;;  %vm1906_vm15 = vcmp.eq.s32.totalorder %v5719_v7, %v1815_v14 }
 0x35b   : > { %v8623_v47 = vsel %vm6527_vm9, 4294967295, %v8622_v47  ;;  %vm6532_vm14 = vmpackc.low %vm1903_vm13, %vm1901_vm5  ;;  %3936 = vmatprep.subr.msk.bf16.mxu0 %vm6527_vm9, %v8403_v24  ;;  %vm1905_vm13 = vcmp.eq.s32.totalorder %v5714_v9, %v1815_v14  ;;  %v8634_v14 = vmov 0 }
 0x35c   : > { %8624 = vst [vmem:[#allocation16_spill] sm:$0xff] %v8623_v47  ;;  %v8626_v1 = vsel %vm6532_vm14, 4294967295, %v8625_v1  ;;  %v1818_v13 = vpop.permute.xlu1 %1817  ;;  %v1821_v57 = vpop.permute.xlu0 %1820  ;;  %v8631_v47 = vmov 0 }
 0x35d   : > { %8627 = vst [vmem:[#allocation36_spill] sm:$0xff] %v8626_v1  ;;  %vm1907_vm8 = vcmp.eq.s32.totalorder %v5714_v9, %v1818_v13  ;;  %vm1908_vm10 = vcmp.eq.s32.totalorder %v5719_v7, %v1818_v13  ;;  %3938 = vmatpush1.bf16.msk.msra.mxu0 %vm6532_vm14, %v8403_v24  ;;  %vm1910_vm9 = vcmp.eq.s32.totalorder %v5719_v7, %v1821_v57 }
 0x35e   : > { %vm6546_vm7 = vmpackc.low %vm1908_vm10, %vm1906_vm15 }
 0x35f   : > { %v8629_v51 = vsel %vm6546_vm7, 4294967295, %v8628_v51  ;;  %vm6550_vm5 = vmpackc.low %vm1907_vm8, %vm1905_vm13  ;;  %3940 = vmatprep.subr.msk.bf16.mxu0 %vm6546_vm7, %v8403_v24  ;;  %vm1909_vm8 = vcmp.eq.s32.totalorder %v5714_v9, %v1821_v57  ;;  %v8640_v57 = vmov 0 }
 0x360   : > { %8630 = vst [vmem:[#allocation15_spill] sm:$0xff] %v8629_v51  ;;  %v8632_v47 = vsel %vm6550_vm5, 4294967295, %v8631_v47  ;;  %v1824_v56 = vpop.permute.xlu1 %1823  ;;  %v1827_v13 = vpop.permute.xlu0 %1826  ;;  %v8637_v51 = vmov 0 }
 0x361   : > { %8633 = vst [vmem:[#allocation37_spill] sm:$0xff] %v8632_v47  ;;  %vm1911_vm14 = vcmp.eq.s32.totalorder %v5714_v9, %v1824_v56  ;;  %vm1912_vm1 = vcmp.eq.s32.totalorder %v5719_v7, %v1824_v56  ;;  %3942 = vmatpush1.bf16.msk.msra.mxu0 %vm6550_vm5, %v8403_v24  ;;  %vm1914_vm13 = vcmp.eq.s32.totalorder %v5719_v7, %v1827_v13 }
 0x362   : > { %vm6564_vm15 = vmpackc.low %vm1912_vm1, %vm1910_vm9  ;;  %vm1913_vm1 = vcmp.eq.s32.totalorder %v5714_v9, %v1827_v13  ;;  %v8646_v13 = vmov 0 }
 0x363   : > { %v8635_v14 = vsel %vm6564_vm15, 4294967295, %v8634_v14  ;;  %vm6568_vm10 = vmpackc.low %vm1911_vm14, %vm1909_vm8  ;;  %3944 = vmatprep.subr.msk.bf16.mxu0 %vm6564_vm15, %v8403_v24 }
 0x364   : > { %8636 = vst [vmem:[#allocation38_spill] sm:$0xff] %v8635_v14  ;;  %v8638_v51 = vsel %vm6568_vm10, 4294967295, %v8637_v51  ;;  %v1830_v1 = vpop.permute.xlu1 %1829  ;;  %v1833_v56 = vpop.permute.xlu0 %1832  ;;  %v8643_v14 = vmov 0 }
 0x365   : > { %8639 = vst [vmem:[#allocation39_spill] sm:$0xff] %v8638_v51  ;;  %vm1915_vm5 = vcmp.eq.s32.totalorder %v5714_v9, %v1830_v1  ;;  %vm1916_vm7 = vcmp.eq.s32.totalorder %v5719_v7, %v1830_v1  ;;  %3946 = vmatpush1.bf16.msk.msra.mxu0 %vm6568_vm10, %v8403_v24  ;;  %vm1918_vm8 = vcmp.eq.s32.totalorder %v5719_v7, %v1833_v56 }
 0x366   : > { %vm6582_vm14 = vmpackc.low %vm1916_vm7, %vm1914_vm13  ;;  %vm1917_vm7 = vcmp.eq.s32.totalorder %v5714_v9, %v1833_v56  ;;  %v8652_v56 = vmov 0 }
 0x367   : > { %v8641_v57 = vsel %vm6582_vm14, 4294967295, %v8640_v57  ;;  %vm6586_vm9 = vmpackc.low %vm1915_vm5, %vm1913_vm1  ;;  %3948 = vmatprep.subr.msk.bf16.mxu0 %vm6582_vm14, %v8403_v24 }
 0x368   : > { %8642 = vst [vmem:[#allocation40_spill] sm:$0xff] %v8641_v57  ;;  %v8644_v14 = vsel %vm6586_vm9, 4294967295, %v8643_v14  ;;  %v1836_v47 = vpop.permute.xlu1 %1835  ;;  %v1839_v1 = vpop.permute.xlu0 %1838  ;;  %v8649_v57 = vmov 0 }
 0x369   : > { %8645 = vst [vmem:[#allocation41_spill] sm:$0xff] %v8644_v14  ;;  %vm1919_vm10 = vcmp.eq.s32.totalorder %v5714_v9, %v1836_v47  ;;  %vm1920_vm15 = vcmp.eq.s32.totalorder %v5719_v7, %v1836_v47  ;;  %3950 = vmatpush1.bf16.msk.msra.mxu0 %vm6586_vm9, %v8403_v24  ;;  %vm1922_vm1 = vcmp.eq.s32.totalorder %v5719_v7, %v1839_v1 }
 0x36a   : > { %vm6600_vm5 = vmpackc.low %vm1920_vm15, %vm1918_vm8  ;;  %vm1921_vm15 = vcmp.eq.s32.totalorder %v5714_v9, %v1839_v1  ;;  %v8658_v1 = vmov 0 }
 0x36b   : > { %v8647_v13 = vsel %vm6600_vm5, 4294967295, %v8646_v13  ;;  %vm6604_vm13 = vmpackc.low %vm1919_vm10, %vm1917_vm7  ;;  %3952 = vmatprep.subr.msk.bf16.mxu0 %vm6600_vm5, %v8403_v24 }
 0x36c   : > { %8648 = vst [vmem:[#allocation42_spill] sm:$0xff] %v8647_v13  ;;  %v8650_v57 = vsel %vm6604_vm13, 4294967295, %v8649_v57  ;;  %v1842_v51 = vpop.permute.xlu1 %1841  ;;  %v1845_v47 = vpop.permute.xlu0 %1844  ;;  %v8655_v13 = vmov 0 }
 0x36d   : > { %8651 = vst [vmem:[#allocation43_spill] sm:$0xff] %v8650_v57  ;;  %vm1923_vm9 = vcmp.eq.s32.totalorder %v5714_v9, %v1842_v51  ;;  %vm1924_vm14 = vcmp.eq.s32.totalorder %v5719_v7, %v1842_v51  ;;  %3954 = vmatpush1.bf16.msk.msra.mxu0 %vm6604_vm13, %v8403_v24  ;;  %vm1926_vm7 = vcmp.eq.s32.totalorder %v5719_v7, %v1845_v47 }
 0x36e   : > { %vm6618_vm10 = vmpackc.low %vm1924_vm14, %vm1922_vm1  ;;  %vm1925_vm14 = vcmp.eq.s32.totalorder %v5714_v9, %v1845_v47  ;;  %v8664_v47 = vmov 0 }
 0x36f   : > { %v8653_v56 = vsel %vm6618_vm10, 4294967295, %v8652_v56  ;;  %vm6622_vm8 = vmpackc.low %vm1923_vm9, %vm1921_vm15  ;;  %3956 = vmatprep.subr.msk.bf16.mxu0 %vm6618_vm10, %v8403_v24 }
 0x370   : > { %8654 = vst [vmem:[#allocation44_spill] sm:$0xff] %v8653_v56  ;;  %v8656_v13 = vsel %vm6622_vm8, 4294967295, %v8655_v13  ;;  %v1848_v14 = vpop.permute.xlu1 %1847  ;;  %v1851_v51 = vpop.permute.xlu0 %1850  ;;  %v8661_v56 = vmov 0 }
 0x371   : > { %8657 = vst [vmem:[#allocation45_spill] sm:$0xff] %v8656_v13  ;;  %vm1927_vm13 = vcmp.eq.s32.totalorder %v5714_v9, %v1848_v14  ;;  %vm1928_vm5 = vcmp.eq.s32.totalorder %v5719_v7, %v1848_v14  ;;  %3958 = vmatpush1.bf16.msk.msra.mxu0 %vm6622_vm8, %v8403_v24  ;;  %vm1930_vm15 = vcmp.eq.s32.totalorder %v5719_v7, %v1851_v51 }
 0x372   : > { %vm6636_vm9 = vmpackc.low %vm1928_vm5, %vm1926_vm7  ;;  %vm1929_vm5 = vcmp.eq.s32.totalorder %v5714_v9, %v1851_v51  ;;  %v8670_v51 = vmov 0 }
 0x373   : > { %v8659_v1 = vsel %vm6636_vm9, 4294967295, %v8658_v1  ;;  %vm6640_vm1 = vmpackc.low %vm1927_vm13, %vm1925_vm14  ;;  %3960 = vmatprep.subr.msk.bf16.mxu0 %vm6636_vm9, %v8403_v24 }
 0x374   : > { %8660 = vst [vmem:[#allocation46_spill] sm:$0xff] %v8659_v1  ;;  %v8662_v56 = vsel %vm6640_vm1, 4294967295, %v8661_v56  ;;  %v1854_v57 = vpop.permute.xlu1 %1853  ;;  %v1857_v14 = vpop.permute.xlu0 %1856  ;;  %v8667_v1 = vmov 0  ;;  %v9041_v4 = vld [vmem:[#allocation43_spill] sm:$0xff] }
 0x375   : > { %8663 = vst [vmem:[#allocation47_spill] sm:$0xff] %v8662_v56  ;;  %vm1931_vm8 = vcmp.eq.s32.totalorder %v5714_v9, %v1854_v57  ;;  %vm1932_vm10 = vcmp.eq.s32.totalorder %v5719_v7, %v1854_v57  ;;  %3962 = vmatpush1.bf16.msk.msra.mxu0 %vm6640_vm1, %v8403_v24  ;;  %vm1934_vm14 = vcmp.eq.s32.totalorder %v5719_v7, %v1857_v14 }
 0x376   : > { %vm6654_vm13 = vmpackc.low %vm1932_vm10, %vm1930_vm15  ;;  %vm1933_vm10 = vcmp.eq.s32.totalorder %v5714_v9, %v1857_v14  ;;  %v8676_v14 = vmov 0 }
 0x377   : > { %v8665_v47 = vsel %vm6654_vm13, 4294967295, %v8664_v47  ;;  %vm6658_vm7 = vmpackc.low %vm1931_vm8, %vm1929_vm5  ;;  %3964 = vmatprep.subr.msk.bf16.mxu0 %vm6654_vm13, %v8403_v24 }
 0x378   : > { %8666 = vst [vmem:[#allocation48_spill] sm:$0xff] %v8665_v47  ;;  %v8668_v1 = vsel %vm6658_vm7, 4294967295, %v8667_v1  ;;  %v1860_v13 = vpop.permute.xlu1 %1859  ;;  %v1863_v57 = vpop.permute.xlu0 %1862  ;;  %v8673_v47 = vmov 0 }
 0x379   : > { %8669 = vst [vmem:[#allocation49_spill] sm:$0xff] %v8668_v1  ;;  %vm1935_vm1 = vcmp.eq.s32.totalorder %v5714_v9, %v1860_v13  ;;  %vm1936_vm9 = vcmp.eq.s32.totalorder %v5719_v7, %v1860_v13  ;;  %3966 = vmatpush1.bf16.msk.msra.mxu0 %vm6658_vm7, %v8403_v24  ;;  %vm1938_vm5 = vcmp.eq.s32.totalorder %v5719_v7, %v1863_v57 }
 0x37a   : > { %vm6672_vm8 = vmpackc.low %vm1936_vm9, %vm1934_vm14  ;;  %vm1937_vm9 = vcmp.eq.s32.totalorder %v5714_v9, %v1863_v57  ;;  %v8682_v57 = vmov 0 }
 0x37b   : > { %v8671_v51 = vsel %vm6672_vm8, 4294967295, %v8670_v51  ;;  %vm6676_vm15 = vmpackc.low %vm1935_vm1, %vm1933_vm10  ;;  %3968 = vmatprep.subr.msk.bf16.mxu0 %vm6672_vm8, %v8403_v24 }
 0x37c   : > { %8672 = vst [vmem:[#allocation50_spill] sm:$0xff] %v8671_v51  ;;  %v8674_v47 = vsel %vm6676_vm15, 4294967295, %v8673_v47  ;;  %v1866_v56 = vpop.permute.xlu1 %1865  ;;  %v1869_v13 = vpop.permute.xlu0 %1868  ;;  %v8679_v51 = vmov 0 }
 0x37d   : > { %8675 = vst [vmem:[#allocation51_spill] sm:$0xff] %v8674_v47  ;;  %vm1939_vm7 = vcmp.eq.s32.totalorder %v5714_v9, %v1866_v56  ;;  %vm1940_vm13 = vcmp.eq.s32.totalorder %v5719_v7, %v1866_v56  ;;  %3970 = vmatpush1.bf16.msk.msra.mxu0 %vm6676_vm15, %v8403_v24  ;;  %vm1942_vm10 = vcmp.eq.s32.totalorder %v5719_v7, %v1869_v13 }
 0x37e   : > { %vm6690_vm1 = vmpackc.low %vm1940_vm13, %vm1938_vm5  ;;  %vm1941_vm13 = vcmp.eq.s32.totalorder %v5714_v9, %v1869_v13  ;;  %v8688_v13 = vmov 0 }
 0x37f   : > { %v8677_v14 = vsel %vm6690_vm1, 4294967295, %v8676_v14  ;;  %vm6694_vm14 = vmpackc.low %vm1939_vm7, %vm1937_vm9  ;;  %3972 = vmatprep.subr.msk.bf16.mxu0 %vm6690_vm1, %v8403_v24 }
 0x380   : > { %8678 = vst [vmem:[#allocation52_spill] sm:$0xff] %v8677_v14  ;;  %v8680_v51 = vsel %vm6694_vm14, 4294967295, %v8679_v51  ;;  %v1872_v1 = vpop.permute.xlu1 %1871  ;;  %v1875_v56 = vpop.permute.xlu0 %1874  ;;  %v8685_v14 = vmov 0 }
 0x381   : > { %8681 = vst [vmem:[#allocation53_spill] sm:$0xff] %v8680_v51  ;;  %vm1943_vm15 = vcmp.eq.s32.totalorder %v5714_v9, %v1872_v1  ;;  %vm1944_vm8 = vcmp.eq.s32.totalorder %v5719_v7, %v1872_v1  ;;  %3974 = vmatpush1.bf16.msk.msra.mxu0 %vm6694_vm14, %v8403_v24  ;;  %vm1946_vm9 = vcmp.eq.s32.totalorder %v5719_v7, %v1875_v56 }
 0x382   : > { %vm6708_vm7 = vmpackc.low %vm1944_vm8, %vm1942_vm10  ;;  %vm1945_vm8 = vcmp.eq.s32.totalorder %v5714_v9, %v1875_v56  ;;  %v8694_v56 = vmov 0 }
 0x383   : > { %v8683_v57 = vsel %vm6708_vm7, 4294967295, %v8682_v57  ;;  %vm6712_vm5 = vmpackc.low %vm1943_vm15, %vm1941_vm13  ;;  %3976 = vmatprep.subr.msk.bf16.mxu0 %vm6708_vm7, %v8403_v24 }
 0x384   : > { %8684 = vst [vmem:[#allocation54_spill] sm:$0xff] %v8683_v57  ;;  %v8686_v14 = vsel %vm6712_vm5, 4294967295, %v8685_v14  ;;  %v1878_v47 = vpop.permute.xlu1 %1877  ;;  %v1881_v1 = vpop.permute.xlu0 %1880  ;;  %v8691_v57 = vmov 0 }
 0x385   : > { %8687 = vst [vmem:[#allocation55_spill] sm:$0xff] %v8686_v14  ;;  %vm1947_vm14 = vcmp.eq.s32.totalorder %v5714_v9, %v1878_v47  ;;  %vm1948_vm1 = vcmp.eq.s32.totalorder %v5719_v7, %v1878_v47  ;;  %3978 = vmatpush1.bf16.msk.msra.mxu0 %vm6712_vm5, %v8403_v24  ;;  %vm1950_vm13 = vcmp.eq.s32.totalorder %v5719_v7, %v1881_v1 }
 0x386   : > { %vm6726_vm15 = vmpackc.low %vm1948_vm1, %vm1946_vm9  ;;  %vm1949_vm1 = vcmp.eq.s32.totalorder %v5714_v9, %v1881_v1  ;;  %v8700_v1 = vmov 0 }
 0x387   : > { %v8689_v13 = vsel %vm6726_vm15, 4294967295, %v8688_v13  ;;  %vm6730_vm10 = vmpackc.low %vm1947_vm14, %vm1945_vm8  ;;  %3980 = vmatprep.subr.msk.bf16.mxu0 %vm6726_vm15, %v8403_v24 }
 0x388   : > { %8690 = vst [vmem:[#allocation56_spill] sm:$0xff] %v8689_v13  ;;  %v8692_v57 = vsel %vm6730_vm10, 4294967295, %v8691_v57  ;;  %v1884_v51 = vpop.permute.xlu1 %1883  ;;  %v1887_v47 = vpop.permute.xlu0 %1886  ;;  %v8697_v13 = vmov 0 }
 0x389   : > { %8693 = vst [vmem:[#allocation57_spill] sm:$0xff] %v8692_v57  ;;  %vm1951_vm5 = vcmp.eq.s32.totalorder %v5714_v9, %v1884_v51  ;;  %vm1952_vm7 = vcmp.eq.s32.totalorder %v5719_v7, %v1884_v51  ;;  %3982 = vmatpush1.bf16.msk.msra.mxu0 %vm6730_vm10, %v8403_v24  ;;  %vm1954_vm8 = vcmp.eq.s32.totalorder %v5719_v7, %v1887_v47 }
 0x38a   : > { %vm6744_vm14 = vmpackc.low %vm1952_vm7, %vm1950_vm13  ;;  %vm1953_vm7 = vcmp.eq.s32.totalorder %v5714_v9, %v1887_v47  ;;  %v8706_v47 = vmov 0 }
 0x38b   : > { %v8695_v56 = vsel %vm6744_vm14, 4294967295, %v8694_v56  ;;  %vm6748_vm9 = vmpackc.low %vm1951_vm5, %vm1949_vm1  ;;  %3984 = vmatprep.subr.msk.bf16.mxu0 %vm6744_vm14, %v8403_v24 }
 0x38c   : > { %8696 = vst [vmem:[#allocation58_spill] sm:$0xff] %v8695_v56  ;;  %v8698_v13 = vsel %vm6748_vm9, 4294967295, %v8697_v13  ;;  %v1890_v14 = vpop.permute.xlu1 %1889  ;;  %v1893_v51 = vpop.permute.xlu0 %1892  ;;  %v8703_v56 = vmov 0 }
 0x38d   : > { %8699 = vst [vmem:[#allocation59_spill] sm:$0xff] %v8698_v13  ;;  %vm1955_vm10 = vcmp.eq.s32.totalorder %v5714_v9, %v1890_v14  ;;  %vm1956_vm15 = vcmp.eq.s32.totalorder %v5719_v7, %v1890_v14  ;;  %3986 = vmatpush1.bf16.msk.msra.mxu0 %vm6748_vm9, %v8403_v24  ;;  %vm1958_vm1 = vcmp.eq.s32.totalorder %v5719_v7, %v1893_v51 }
 0x38e   : > { %vm6762_vm5 = vmpackc.low %vm1956_vm15, %vm1954_vm8  ;;  %vm1957_vm15 = vcmp.eq.s32.totalorder %v5714_v9, %v1893_v51 }
 0x38f   : > { %v8701_v1 = vsel %vm6762_vm5, 4294967295, %v8700_v1  ;;  %vm6766_vm13 = vmpackc.low %vm1955_vm10, %vm1953_vm7  ;;  %3988 = vmatprep.subr.msk.bf16.mxu0 %vm6762_vm5, %v8403_v24 }
 0x390   : > { %8702 = vst [vmem:[#allocation60_spill] sm:$0xff] %v8701_v1  ;;  %v8704_v56 = vsel %vm6766_vm13, 4294967295, %v8703_v56  ;;  %v1896_v57 = vpop.permute.xlu1 %1895  ;;  %v2256_v14 = vpop.permute.xlu0 %2255  ;;  %v8709_v1 = vmov 0 }
 0x391   : > { %8705 = vst [vmem:[#allocation61_spill] sm:$0xff] %v8704_v56  ;;  %vm1959_vm14 = vcmp.eq.s32.totalorder %v5714_v9, %v1896_v57  ;;  %vm1960_vm9 = vcmp.eq.s32.totalorder %v5719_v7, %v1896_v57  ;;  %3990 = vmatpush1.bf16.msk.msra.mxu0 %vm6766_vm13, %v8403_v24  ;;  %vm2351_vm7 = vcmp.eq.s32.totalorder %v5719_v7, %v2256_v14  ;;  %v8712_v56 = vmov 0 }
 0x392   : > { %vm6780_vm10 = vmpackc.low %vm1960_vm9, %vm1958_vm1 }
 0x393   : > { %v8707_v47 = vsel %vm6780_vm10, 4294967295, %v8706_v47  ;;  %vm6784_vm8 = vmpackc.low %vm1959_vm14, %vm1957_vm15  ;;  %3992 = vmatprep.subr.msk.bf16.mxu0 %vm6780_vm10, %v8403_v24  ;;  %vm2350_vm14 = vcmp.eq.s32.totalorder %v5714_v9, %v2256_v14  ;;  %v8718_v14 = vmov 0 }
 0x394   : > { %8708 = vst [vmem:[#allocation62_spill] sm:$0xff] %v8707_v47  ;;  %v8710_v1 = vsel %vm6784_vm8, 4294967295, %v8709_v1  ;;  %v2259_v57 = vpop.permute.xlu1 %2258  ;;  %v2262_v51 = vpop.permute.xlu0 %2261  ;;  %v8715_v47 = vmov 0 }
 0x395   : > { %8711 = vst [vmem:[#allocation63_spill] sm:$0xff] %v8710_v1  ;;  %vm2352_vm5 = vcmp.eq.s32.totalorder %v5714_v9, %v2259_v57  ;;  %vm2353_vm13 = vcmp.eq.s32.totalorder %v5719_v7, %v2259_v57  ;;  %3994 = vmatpush1.bf16.msk.msra.mxu0 %vm6784_vm8, %v8403_v24 }
 0x396   : > { %vm6798_vm9 = vmpackc.low %vm2353_vm13, %vm2351_vm7  ;;  %vm2355_vm13 = vcmp.eq.s32.totalorder %v5719_v7, %v2262_v51  ;;  %vm2354_vm7 = vcmp.eq.s32.totalorder %v5714_v9, %v2262_v51  ;;  %v8724_v51 = vmov 0 }
 0x397   : > { %v8713_v56 = vsel %vm6798_vm9, 4294967295, %v8712_v56  ;;  %vm6802_vm1 = vmpackc.low %vm2352_vm5, %vm2350_vm14  ;;  %4156 = vmatprep.subr.msk.bf16.mxu0 %vm6798_vm9, %v8403_v24 }
 0x398   : > { %8714 = vst [vmem:[#allocation64_spill] sm:$0xff] %v8713_v56  ;;  %v8716_v47 = vsel %vm6802_vm1, 4294967295, %v8715_v47  ;;  %2154 = vmatmul.mubr.bf16.vlgmr.msra.gmra.mrb[8].mxu0 %v6156_v55  ;;  %v2265_v57 = vpop.permute.xlu1 %2264  ;;  %v8721_v56 = vmov 0 }
 0x399   : > { %8717 = vst [vmem:[#allocation65_spill] sm:$0xff] %v8716_v47  ;;  %v2268_v13 = vpop.permute.xlu0 %2267  ;;  %4158 = vmatpush1.bf16.msk.msra.mxu0 %vm6802_vm1, %v8403_v24  ;;  %2606 = vmatprep.mubr.bf16.mxu0 %v5708_v2  ;;  %vm2356_vm5 = vcmp.eq.s32.totalorder %v5714_v9, %v2265_v57  ;;  %vm2357_vm15 = vcmp.eq.s32.totalorder %v5719_v7, %v2265_v57  ;;  %v8727_v57 = vmov 0 }
 0x39a   : > { %vm6818_vm14 = vmpackc.low %vm2357_vm15, %vm2355_vm13  ;;  %vm2359_vm1 = vcmp.eq.s32.totalorder %v5719_v7, %v2268_v13 }
 0x39b   : > { %v8719_v14 = vsel %vm6818_vm14, 4294967295, %v8718_v14  ;;  %vm6822_vm9 = vmpackc.low %vm2356_vm5, %vm2354_vm7  ;;  %4160 = vmatprep.subr.msk.bf16.mxu0 %vm6818_vm14, %v8403_v24  ;;  %vm2358_vm5 = vcmp.eq.s32.totalorder %v5714_v9, %v2268_v13  ;;  %v8730_v13 = vmov 0 }
 0x39c   : > { %8720 = vst [vmem:[#allocation66_spill] sm:$0xff] %v8719_v14  ;;  %v8722_v56 = vsel %vm6822_vm9, 4294967295, %v8721_v56  ;;  %v2271_v2 = vpop.permute.xlu1 %2270 }
 0x39d   : > { %8723 = vst [vmem:[#allocation67_spill] sm:$0xff] %v8722_v56  ;;  %v2274_v47 = vpop.permute.xlu0 %2273  ;;  %4162 = vmatpush1.bf16.msk.msra.mxu0 %vm6822_vm9, %v8403_v24  ;;  %vm2360_vm13 = vcmp.eq.s32.totalorder %v5714_v9, %v2271_v2  ;;  %vm2361_vm15 = vcmp.eq.s32.totalorder %v5719_v7, %v2271_v2  ;;  %v8733_v2 = vmov 0 }
 0x39e   : > { %vm6836_vm7 = vmpackc.low %vm2361_vm15, %vm2359_vm1  ;;  %vm2363_vm9 = vcmp.eq.s32.totalorder %v5719_v7, %v2274_v47 }
 0x39f   : > { %v8725_v51 = vsel %vm6836_vm7, 4294967295, %v8724_v51  ;;  %vm6840_vm8 = vmpackc.low %vm2360_vm13, %vm2358_vm5  ;;  %4164 = vmatprep.subr.msk.bf16.mxu0 %vm6836_vm7, %v8403_v24  ;;  %vm2362_vm13 = vcmp.eq.s32.totalorder %v5714_v9, %v2274_v47  ;;  %v8739_v47 = vmov 0 }
 0x3a0   : > { %8726 = vst [vmem:[#allocation68_spill] sm:$0xff] %v8725_v51  ;;  %v8728_v57 = vsel %vm6840_vm8, 4294967295, %v8727_v57  ;;  %v2277_v56 = vpop.permute.xlu1 %2276 }
 0x3a1   : > { %8729 = vst [vmem:[#allocation69_spill] sm:$0xff] %v8728_v57  ;;  %v2280_v14 = vpop.permute.xlu0 %2279  ;;  %4166 = vmatpush1.bf16.msk.msra.mxu0 %vm6840_vm8, %v8403_v24  ;;  %vm2364_vm1 = vcmp.eq.s32.totalorder %v5714_v9, %v2277_v56  ;;  %vm2365_vm15 = vcmp.eq.s32.totalorder %v5719_v7, %v2277_v56  ;;  %v8736_v56 = vmov 0 }
 0x3a2   : > { %vm6854_vm5 = vmpackc.low %vm2365_vm15, %vm2363_vm9  ;;  %vm2367_vm8 = vcmp.eq.s32.totalorder %v5719_v7, %v2280_v14 }
 0x3a3   : > { %v8731_v13 = vsel %vm6854_vm5, 4294967295, %v8730_v13  ;;  %vm6858_vm14 = vmpackc.low %vm2364_vm1, %vm2362_vm13  ;;  %4168 = vmatprep.subr.msk.bf16.mxu0 %vm6854_vm5, %v8403_v24  ;;  %vm2366_vm1 = vcmp.eq.s32.totalorder %v5714_v9, %v2280_v14  ;;  %v8742_v14 = vmov 0 }
 0x3a4   : > { %8732 = vst [vmem:[#allocation70_spill] sm:$0xff] %v8731_v13  ;;  %v8734_v2 = vsel %vm6858_vm14, 4294967295, %v8733_v2  ;;  %v2283_v57 = vpop.permute.xlu1 %2282 }
 0x3a5   : > { %8735 = vst [vmem:[#allocation71_spill] sm:$0xff] %v8734_v2  ;;  %v2286_v51 = vpop.permute.xlu0 %2285  ;;  %4170 = vmatpush1.bf16.msk.msra.mxu0 %vm6858_vm14, %v8403_v24  ;;  %vm2368_vm9 = vcmp.eq.s32.totalorder %v5714_v9, %v2283_v57  ;;  %vm2369_vm15 = vcmp.eq.s32.totalorder %v5719_v7, %v2283_v57  ;;  %v8745_v57 = vmov 0 }
 0x3a6   : > { %vm6872_vm13 = vmpackc.low %vm2369_vm15, %vm2367_vm8  ;;  %vm2371_vm14 = vcmp.eq.s32.totalorder %v5719_v7, %v2286_v51 }
 0x3a7   : > { %v8737_v56 = vsel %vm6872_vm13, 4294967295, %v8736_v56  ;;  %vm6876_vm7 = vmpackc.low %vm2368_vm9, %vm2366_vm1  ;;  %4172 = vmatprep.subr.msk.bf16.mxu0 %vm6872_vm13, %v8403_v24  ;;  %vm2370_vm9 = vcmp.eq.s32.totalorder %v5714_v9, %v2286_v51  ;;  %v8748_v51 = vmov 0 }
 0x3a8   : > { %8738 = vst [vmem:[#allocation72_spill] sm:$0xff] %v8737_v56  ;;  %v8740_v47 = vsel %vm6876_vm7, 4294967295, %v8739_v47  ;;  %v2289_v2 = vpop.permute.xlu1 %2288 }
 0x3a9   : > { %8741 = vst [vmem:[#allocation73_spill] sm:$0xff] %v8740_v47  ;;  %v2292_v13 = vpop.permute.xlu0 %2291  ;;  %4174 = vmatpush1.bf16.msk.msra.mxu0 %vm6876_vm7, %v8403_v24  ;;  %vm2372_vm8 = vcmp.eq.s32.totalorder %v5714_v9, %v2289_v2  ;;  %vm2373_vm15 = vcmp.eq.s32.totalorder %v5719_v7, %v2289_v2  ;;  %v8751_v2 = vmov 0 }
 0x3aa   : > { %vm6890_vm1 = vmpackc.low %vm2373_vm15, %vm2371_vm14  ;;  %vm2375_vm7 = vcmp.eq.s32.totalorder %v5719_v7, %v2292_v13 }
 0x3ab   : > { %v8743_v14 = vsel %vm6890_vm1, 4294967295, %v8742_v14  ;;  %vm6894_vm5 = vmpackc.low %vm2372_vm8, %vm2370_vm9  ;;  %4176 = vmatprep.subr.msk.bf16.mxu0 %vm6890_vm1, %v8403_v24  ;;  %vm2374_vm8 = vcmp.eq.s32.totalorder %v5714_v9, %v2292_v13  ;;  %v8754_v13 = vmov 0 }
 0x3ac   : > { %8744 = vst [vmem:[#allocation74_spill] sm:$0xff] %v8743_v14  ;;  %v8746_v57 = vsel %vm6894_vm5, 4294967295, %v8745_v57  ;;  %v2295_v47 = vpop.permute.xlu1 %2294 }
 0x3ad   : > { %8747 = vst [vmem:[#allocation75_spill] sm:$0xff] %v8746_v57  ;;  %v2298_v56 = vpop.permute.xlu0 %2297  ;;  %4178 = vmatpush1.bf16.msk.msra.mxu0 %vm6894_vm5, %v8403_v24  ;;  %vm2376_vm14 = vcmp.eq.s32.totalorder %v5714_v9, %v2295_v47  ;;  %vm2377_vm15 = vcmp.eq.s32.totalorder %v5719_v7, %v2295_v47  ;;  %v8757_v47 = vmov 0 }
 0x3ae   : > { %vm6908_vm9 = vmpackc.low %vm2377_vm15, %vm2375_vm7  ;;  %vm2379_vm5 = vcmp.eq.s32.totalorder %v5719_v7, %v2298_v56 }
 0x3af   : > { %v8749_v51 = vsel %vm6908_vm9, 4294967295, %v8748_v51  ;;  %vm6912_vm13 = vmpackc.low %vm2376_vm14, %vm2374_vm8  ;;  %4180 = vmatprep.subr.msk.bf16.mxu0 %vm6908_vm9, %v8403_v24  ;;  %vm2378_vm14 = vcmp.eq.s32.totalorder %v5714_v9, %v2298_v56  ;;  %v8760_v56 = vmov 0 }
 0x3b0   : > { %8750 = vst [vmem:[#allocation76_spill] sm:$0xff] %v8749_v51  ;;  %v8752_v2 = vsel %vm6912_vm13, 4294967295, %v8751_v2  ;;  %v2301_v57 = vpop.permute.xlu1 %2300 }
 0x3b1   : > { %8753 = vst [vmem:[#allocation77_spill] sm:$0xff] %v8752_v2  ;;  %v2304_v14 = vpop.permute.xlu0 %2303  ;;  %4182 = vmatpush1.bf16.msk.msra.mxu0 %vm6912_vm13, %v8403_v24  ;;  %vm2380_vm7 = vcmp.eq.s32.totalorder %v5714_v9, %v2301_v57  ;;  %vm2381_vm15 = vcmp.eq.s32.totalorder %v5719_v7, %v2301_v57  ;;  %v8763_v57 = vmov 0 }
 0x3b2   : > { %vm6926_vm8 = vmpackc.low %vm2381_vm15, %vm2379_vm5  ;;  %vm2383_vm13 = vcmp.eq.s32.totalorder %v5719_v7, %v2304_v14 }
 0x3b3   : > { %v8755_v13 = vsel %vm6926_vm8, 4294967295, %v8754_v13  ;;  %vm6930_vm1 = vmpackc.low %vm2380_vm7, %vm2378_vm14  ;;  %4184 = vmatprep.subr.msk.bf16.mxu0 %vm6926_vm8, %v8403_v24  ;;  %vm2382_vm7 = vcmp.eq.s32.totalorder %v5714_v9, %v2304_v14  ;;  %v8766_v14 = vmov 0 }
 0x3b4   : > { %8756 = vst [vmem:[#allocation78_spill] sm:$0xff] %v8755_v13  ;;  %v8758_v47 = vsel %vm6930_vm1, 4294967295, %v8757_v47  ;;  %v2307_v2 = vpop.permute.xlu1 %2306 }
 0x3b5   : > { %8759 = vst [vmem:[#allocation79_spill] sm:$0xff] %v8758_v47  ;;  %v2310_v51 = vpop.permute.xlu0 %2309  ;;  %4186 = vmatpush1.bf16.msk.msra.mxu0 %vm6930_vm1, %v8403_v24  ;;  %vm2384_vm5 = vcmp.eq.s32.totalorder %v5714_v9, %v2307_v2  ;;  %vm2385_vm15 = vcmp.eq.s32.totalorder %v5719_v7, %v2307_v2  ;;  %v8769_v2 = vmov 0 }
 0x3b6   : > { %vm6944_vm14 = vmpackc.low %vm2385_vm15, %vm2383_vm13  ;;  %vm2387_vm1 = vcmp.eq.s32.totalorder %v5719_v7, %v2310_v51 }
 0x3b7   : > { %v8761_v56 = vsel %vm6944_vm14, 4294967295, %v8760_v56  ;;  %vm6948_vm9 = vmpackc.low %vm2384_vm5, %vm2382_vm7  ;;  %4188 = vmatprep.subr.msk.bf16.mxu0 %vm6944_vm14, %v8403_v24  ;;  %vm2386_vm5 = vcmp.eq.s32.totalorder %v5714_v9, %v2310_v51  ;;  %v8772_v51 = vmov 0 }
 0x3b8   : > { %8762 = vst [vmem:[#allocation80_spill] sm:$0xff] %v8761_v56  ;;  %v8764_v57 = vsel %vm6948_vm9, 4294967295, %v8763_v57  ;;  %v2313_v47 = vpop.permute.xlu1 %2312 }
 0x3b9   : > { %8765 = vst [vmem:[#allocation81_spill] sm:$0xff] %v8764_v57  ;;  %v2316_v13 = vpop.permute.xlu0 %2315  ;;  %4190 = vmatpush1.bf16.msk.msra.mxu0 %vm6948_vm9, %v8403_v24  ;;  %vm2388_vm13 = vcmp.eq.s32.totalorder %v5714_v9, %v2313_v47  ;;  %vm2389_vm15 = vcmp.eq.s32.totalorder %v5719_v7, %v2313_v47  ;;  %v8775_v47 = vmov 0 }
 0x3ba   : > { %vm6962_vm7 = vmpackc.low %vm2389_vm15, %vm2387_vm1  ;;  %vm2391_vm9 = vcmp.eq.s32.totalorder %v5719_v7, %v2316_v13 }
 0x3bb   : > { %v8767_v14 = vsel %vm6962_vm7, 4294967295, %v8766_v14  ;;  %vm6966_vm8 = vmpackc.low %vm2388_vm13, %vm2386_vm5  ;;  %4192 = vmatprep.subr.msk.bf16.mxu0 %vm6962_vm7, %v8403_v24  ;;  %vm2390_vm13 = vcmp.eq.s32.totalorder %v5714_v9, %v2316_v13  ;;  %v8778_v13 = vmov 0 }
 0x3bc   : > { %8768 = vst [vmem:[#allocation82_spill] sm:$0xff] %v8767_v14  ;;  %v8770_v2 = vsel %vm6966_vm8, 4294967295, %v8769_v2  ;;  %v2319_v57 = vpop.permute.xlu1 %2318 }
 0x3bd   : > { %8771 = vst [vmem:[#allocation83_spill] sm:$0xff] %v8770_v2  ;;  %v2322_v56 = vpop.permute.xlu0 %2321  ;;  %4194 = vmatpush1.bf16.msk.msra.mxu0 %vm6966_vm8, %v8403_v24  ;;  %vm2392_vm1 = vcmp.eq.s32.totalorder %v5714_v9, %v2319_v57  ;;  %vm2393_vm15 = vcmp.eq.s32.totalorder %v5719_v7, %v2319_v57  ;;  %v8781_v57 = vmov 0 }
 0x3be   : > { %vm6980_vm5 = vmpackc.low %vm2393_vm15, %vm2391_vm9  ;;  %vm2395_vm8 = vcmp.eq.s32.totalorder %v5719_v7, %v2322_v56 }
 0x3bf   : > { %v8773_v51 = vsel %vm6980_vm5, 4294967295, %v8772_v51  ;;  %vm6984_vm14 = vmpackc.low %vm2392_vm1, %vm2390_vm13  ;;  %4196 = vmatprep.subr.msk.bf16.mxu0 %vm6980_vm5, %v8403_v24  ;;  %vm2394_vm1 = vcmp.eq.s32.totalorder %v5714_v9, %v2322_v56  ;;  %v8784_v56 = vmov 0 }
 0x3c0   : > { %8774 = vst [vmem:[#allocation84_spill] sm:$0xff] %v8773_v51  ;;  %v8776_v47 = vsel %vm6984_vm14, 4294967295, %v8775_v47  ;;  %v2325_v2 = vpop.permute.xlu1 %2324 }
 0x3c1   : > { %8777 = vst [vmem:[#allocation85_spill] sm:$0xff] %v8776_v47  ;;  %v2328_v14 = vpop.permute.xlu0 %2327  ;;  %4198 = vmatpush1.bf16.msk.msra.mxu0 %vm6984_vm14, %v8403_v24  ;;  %vm2396_vm9 = vcmp.eq.s32.totalorder %v5714_v9, %v2325_v2  ;;  %vm2397_vm15 = vcmp.eq.s32.totalorder %v5719_v7, %v2325_v2  ;;  %v8787_v2 = vmov 0 }
 0x3c2   : > { %vm6998_vm13 = vmpackc.low %vm2397_vm15, %vm2395_vm8  ;;  %vm2399_vm14 = vcmp.eq.s32.totalorder %v5719_v7, %v2328_v14 }
 0x3c3   : > { %v8779_v13 = vsel %vm6998_vm13, 4294967295, %v8778_v13  ;;  %vm7002_vm7 = vmpackc.low %vm2396_vm9, %vm2394_vm1  ;;  %4200 = vmatprep.subr.msk.bf16.mxu0 %vm6998_vm13, %v8403_v24  ;;  %vm2398_vm9 = vcmp.eq.s32.totalorder %v5714_v9, %v2328_v14  ;;  %v8790_v14 = vmov 0 }
 0x3c4   : > { %8780 = vst [vmem:[#allocation86_spill] sm:$0xff] %v8779_v13  ;;  %v8782_v57 = vsel %vm7002_vm7, 4294967295, %v8781_v57  ;;  %v2331_v47 = vpop.permute.xlu1 %2330 }
 0x3c5   : > { %8783 = vst [vmem:[#allocation87_spill] sm:$0xff] %v8782_v57  ;;  %v2334_v51 = vpop.permute.xlu0 %2333  ;;  %4202 = vmatpush1.bf16.msk.msra.mxu0 %vm7002_vm7, %v8403_v24  ;;  %vm2400_vm8 = vcmp.eq.s32.totalorder %v5714_v9, %v2331_v47  ;;  %vm2401_vm15 = vcmp.eq.s32.totalorder %v5719_v7, %v2331_v47  ;;  %v8793_v47 = vmov 0 }
 0x3c6   : > { %vm7016_vm1 = vmpackc.low %vm2401_vm15, %vm2399_vm14  ;;  %vm2403_vm7 = vcmp.eq.s32.totalorder %v5719_v7, %v2334_v51 }
 0x3c7   : > { %v8785_v56 = vsel %vm7016_vm1, 4294967295, %v8784_v56  ;;  %vm7020_vm5 = vmpackc.low %vm2400_vm8, %vm2398_vm9  ;;  %4204 = vmatprep.subr.msk.bf16.mxu0 %vm7016_vm1, %v8403_v24  ;;  %vm2402_vm8 = vcmp.eq.s32.totalorder %v5714_v9, %v2334_v51  ;;  %v8796_v51 = vmov 0 }
 0x3c8   : > { %8786 = vst [vmem:[#allocation88_spill] sm:$0xff] %v8785_v56  ;;  %v8788_v2 = vsel %vm7020_vm5, 4294967295, %v8787_v2  ;;  %v2337_v57 = vpop.permute.xlu1 %2336 }
 0x3c9   : > { %8789 = vst [vmem:[#allocation89_spill] sm:$0xff] %v8788_v2  ;;  %v2340_v13 = vpop.permute.xlu0 %2339  ;;  %4206 = vmatpush1.bf16.msk.msra.mxu0 %vm7020_vm5, %v8403_v24  ;;  %vm2404_vm14 = vcmp.eq.s32.totalorder %v5714_v9, %v2337_v57  ;;  %vm2405_vm15 = vcmp.eq.s32.totalorder %v5719_v7, %v2337_v57 }
 0x3ca   : > { %vm7034_vm9 = vmpackc.low %vm2405_vm15, %vm2403_vm7  ;;  %vm2407_vm5 = vcmp.eq.s32.totalorder %v5719_v7, %v2340_v13 }
 0x3cb   : > { %v8791_v14 = vsel %vm7034_vm9, 4294967295, %v8790_v14  ;;  %vm7038_vm13 = vmpackc.low %vm2404_vm14, %vm2402_vm8  ;;  %4208 = vmatprep.subr.msk.bf16.mxu0 %vm7034_vm9, %v8403_v24  ;;  %vm2406_vm14 = vcmp.eq.s32.totalorder %v5714_v9, %v2340_v13  ;;  %v8802_v13 = vmov 0 }
 0x3cc   : > { %8792 = vst [vmem:[#allocation90_spill] sm:$0xff] %v8791_v14  ;;  %v8794_v47 = vsel %vm7038_vm13, 4294967295, %v8793_v47  ;;  %v2343_v2 = vpop.permute.xlu1 %2342  ;;  %v8799_v14 = vmov 0 }
 0x3cd   : > { %8795 = vst [vmem:[#allocation91_spill] sm:$0xff] %v8794_v47  ;;  %4210 = vmatpush1.bf16.msk.msra.mxu0 %vm7038_vm13, %v8403_v24  ;;  %vm2408_vm7 = vcmp.eq.s32.totalorder %v5714_v9, %v2343_v2  ;;  %vm2409_vm15 = vcmp.eq.s32.totalorder %v5719_v7, %v2343_v2  ;;  %v2346_v57 = vpop.permute.xlu0 %2345  ;;  %v8805_v2 = vmov 0 }
 0x3ce   : > { %vm7052_vm8 = vmpackc.low %vm2409_vm15, %vm2407_vm5  ;;  %vm2411_vm13 = vcmp.eq.s32.totalorder %v5719_v7, %v2346_v57 }
 0x3cf   : > { %v8797_v51 = vsel %vm7052_vm8, 4294967295, %v8796_v51  ;;  %vm7056_vm1 = vmpackc.low %vm2408_vm7, %vm2406_vm14  ;;  %4212 = vmatprep.subr.msk.bf16.mxu0 %vm7052_vm8, %v8403_v24  ;;  %vm2410_vm7 = vcmp.eq.s32.totalorder %v5714_v9, %v2346_v57 }
 0x3d0   : > { %8798 = vst [vmem:[#allocation92_spill] sm:$0xff] %v8797_v51  ;;  %v8800_v14 = vsel %vm7056_vm1, 4294967295, %v8799_v14  ;;  %v2349_v47 = vpop.permute.xlu1 %2348 }
 0x3d1   : > { %8801 = vst [vmem:[#allocation93_spill] sm:$0xff] %v8800_v14  ;;  %4214 = vmatpush1.bf16.msk.msra.mxu0 %vm7056_vm1, %v8403_v24  ;;  %vm2412_vm5 = vcmp.eq.s32.totalorder %v5714_v9, %v2349_v47  ;;  %vm2413_vm15 = vcmp.eq.s32.totalorder %v5719_v7, %v2349_v47  ;;  %v8815_v9 = vld [vmem:[#allocation21_spill] sm:$0xff]  ;;  %v8827_v47 = vld [vmem:[#allocation24_spill] sm:$0xff]  ;;  %v2684_v14 = vld [vmem:[%s8022_s2] sm:$0xff] }
 0x3d2   : > { %vm7070_vm14 = vmpackc.low %vm2413_vm15, %vm2411_vm13  ;;  %vm8808_vm13 = vnez %v8477_v53  ;;  %vm8811_vm15 = vnez %v8483_v62  ;;  %v8819_v62 = vld [vmem:[#allocation20_spill] sm:$0xff]  ;;  %2690 = vperm.xlu0 %4729, %v2684_v14  }
 0x3d3   : > { %v8803_v13 = vsel %vm7070_vm14, 4294967295, %v8802_v13  ;;  %vm7074_vm9 = vmpackc.low %vm2412_vm5, %vm2410_vm7  ;;  %4216 = vmatprep.subr.msk.bf16.mxu0 %vm7070_vm14, %v8403_v24  ;;  %vm8809_vm5 = vnez %v8479_v25  ;;  %vm8814_vm7 = vnez %v8489_v29  ;;  %v8817_v25 = vld [vmem:[#allocation23_spill] sm:$0xff]  ;;  %v7131_v29 = vsub.s32 3, %v8468_v45 }
 0x3d4   : > { %8804 = vst [vmem:[#allocation94_spill] sm:$0xff] %v8803_v13  ;;  %v8806_v2 = vsel %vm7074_vm9, 4294967295, %v8805_v2  ;;  %v8924_v45 = vld [vmem:[#allocation55_spill] sm:$0xff]  ;;  %v2685_v13 = vld [vmem:[%s8022_s2 + $0x8] sm:$0xff] }
 0x3d5   : > { %8807 = vst [vmem:[#allocation95_spill] sm:$0xff] %v8806_v2  ;;  %4218 = vmatpush1.bf16.msk.msra.mxu0 %vm7074_vm9, %v8403_v24  ;;  %2695 = vperm.xlu1 %4730, %v2685_v13   ;;  %v8996_v13 = vld [vmem:[#allocation33_spill] sm:$0xff] }
 0x3d6   : > { %4288 = vmatprep.subr.msk.bf16.mxu0 %vm5726_vm4, %v8403_v24  ;;  %vm8810_vm4 = vnez %v8481_v42 }
 0x3d8   : > { %2607 = vmatmul.mubr.bf16.vlgmr.msra.gmra.mrb[12].mxu0 %v6156_v55  ;;  %v8825_v55 = vld [vmem:[#allocation27_spill] sm:$0xff] }
 0x3d9   : > { %4290 = vmatpush1.bf16.msk.msra.mxu0 %vm5739_vm6, %v8403_v24  ;;  %vm8812_vm6 = vnez %v8485_v30  ;;  %v8821_v30 = vld [vmem:[#allocation25_spill] sm:$0xff] }
 0x3da   : > { %4292 = vmatprep.subr.msk.bf16.mxu0 %vm5753_vm11, %v8403_v24  ;;  %vm8813_vm11 = vnez %v8487_v23  ;;  %v8823_v23 = vld [vmem:[#allocation22_spill] sm:$0xff] }
 0x3dd   : > { %4294 = vmatpush1.bf16.msk.msra.mxu0 %vm8808_vm13, %v8403_v24  ;;  %vm8816_vm13 = vnez %v8815_v9 }
 0x3de   : > { %4296 = vmatprep.subr.msk.bf16.mxu0 %vm8809_vm5, %v8403_v24  ;;  %vm8818_vm5 = vnez %v8817_v25 }
 0x3e1   : > { %4298 = vmatpush1.bf16.msk.msra.mxu0 %vm8810_vm4, %v8403_v24  ;;  %vm8820_vm4 = vnez %v8819_v62 }
 0x3e2   : > { %4300 = vmatprep.subr.msk.bf16.mxu0 %vm8811_vm15, %v8403_v24  ;;  %vm8822_vm15 = vnez %v8821_v30  ;;  %v8833_v30 = vld [vmem:[#allocation28_spill] sm:$0xff] }
 0x3e5   : > { %4302 = vmatpush1.bf16.msk.msra.mxu0 %vm8812_vm6, %v8403_v24  ;;  %vm8824_vm6 = vnez %v8823_v23 }
 0x3e6   : > { %4304 = vmatprep.subr.msk.bf16.mxu0 %vm8813_vm11, %v8403_v24  ;;  %vm8826_vm11 = vnez %v8825_v55 }
 0x3e9   : > { %4306 = vmatpush1.bf16.msk.msra.mxu0 %vm8814_vm7, %v8403_v24  ;;  %vm8828_vm7 = vnez %v8827_v47  ;;  %v8835_v47 = vld [vmem:[#allocation30_spill] sm:$0xff] }
 0x3ea   : > { %4308 = vmatprep.subr.msk.bf16.mxu0 %vm8816_vm13, %v8403_v24  ;;  %v1249_v7 = vpop.f32.mrb[0].mxu0 }
 0x3eb   : > { %v1256_v50 = vmax.f32 %v1249_v7, 1.0  ;;  %v1251_v54 = vpop.f32.mrb[1].mxu0 }
 0x3ec   : > { %v1257_v40 = vmax.f32 %v1251_v54, 1.0  ;;  %v1253_v53 = vpop.f32.mrb[2].mxu0 }
 0x3ed   : > { %4731 = vrcp.f32 %v1256_v50  ;;  %4310 = vmatpush1.bf16.msk.msra.mxu0 %vm8818_vm5, %v8403_v24  ;;  %v1254_v42 = vpop.f32.mrb[3].mxu0 }
 0x3ee   : > { %4733 = vrcp.f32 %v1257_v40  ;;  %4312 = vmatprep.subr.msk.bf16.mxu0 %vm8820_vm4, %v8403_v24  ;;  %v8829_v40 = vld [vmem:[#allocation26_spill] sm:$0xff]  ;;  %v8831_v42 = vld [vmem:[#allocation29_spill] sm:$0xff]  ;;  %vm8834_vm4 = vnez %v8833_v30 }
 0x3ef   : > { %vm8830_vm13 = vnez %v8829_v40  ;;  %vm8832_vm5 = vnez %v8831_v42 }
 0x3f1   : > { %4314 = vmatpush1.bf16.msk.msra.mxu0 %vm8822_vm15, %v8403_v24  ;;  %vm8836_vm15 = vnez %v8835_v47 }
 0x3f2   : > { %4316 = vmatprep.subr.msk.bf16.mxu0 %vm8824_vm6, %v8403_v24 }
 0x3f5   : > { %4318 = vmatpush1.bf16.msk.msra.mxu0 %vm8826_vm11, %v8403_v24 }
 0x3f6   : > { %4320 = vmatprep.subr.msk.bf16.mxu0 %vm8828_vm7, %v8403_v24 }
 0x3f7   : > { %v4732_v57 = vpop.eup %4731 }
 0x3f8   : > { %v4734_v9 = vpop.eup %4733  ;;  %v1263_v50 = vrot.slane %v4732_v57, %v7131_v29  ;;  %v8841_v57 = vld [vmem:[#allocation34_spill] sm:$0xff] }
 0x3f9   : > { %4322 = vmatpush1.bf16.msk.msra.mxu0 %vm8830_vm13, %v8403_v24  ;;  %v1267_v53 = vrot.slane %v4734_v9, %v7131_v29  ;;  %vm8842_vm7 = vnez %v8841_v57  ;;  %vm8843_vm13 = vnez %v8533_v37 }
 0x3fa   : > { %v1268_v25 = vmul.f32 %v1263_v50, %v1249_v7  ;;  %4324 = vmatprep.subr.msk.bf16.mxu0 %vm8832_vm5, %v8403_v24  ;;  %v8837_v7 = vld [vmem:[#allocation31_spill] sm:$0xff]  ;;  %vm8844_vm5 = vnez %v8559_v43  ;;  %v7578_v43 = vpack.c.bf16 %v9003_v5, %v9003_v5 }
 0x3fb   : > { %v1269_v62 = vmul.f32 %v1267_v53, %v1251_v54  ;;  %vm8838_vm6 = vnez %v8837_v7  ;;  %v8839_v54 = vld [vmem:[#allocation32_spill] sm:$0xff] }
 0x3fc   : > { %v1270_v55 = vpack.c.bf16 %v1268_v25, %v1268_v25  ;;  %vm8840_vm11 = vnez %v8839_v54 }
 0x3fd   : > { %4326 = vmatpush1.bf16.msk.msra.mxu0 %vm8834_vm4, %v8403_v24  ;;  %v1271_v23 = vpack.c.bf16 %v1269_v62, %v1269_v62  ;;  %vm8845_vm4 = vnez %v8535_v6 }
 0x3fe   : > { %4328 = vmatprep.subr.msk.bf16.mxu0 %vm8836_vm15, %v8403_v24  ;;  %vm8846_vm15 = vnez %v8561_v22  ;;  %v9039_v22 = vld [vmem:[#allocation42_spill] sm:$0xff] }
 0x3ff   : > { %1304 = vmatprep.mubr.bf16.mxu1 %v1271_v23 }
 0x400   : > { %1305 = vmatmul.mubr.bf16.vlgmr.msra.gmra.mrb[0].mxu1 %v1270_v55 }
 0x401   : > { %3774 = vmatpush1.bf16.xpose.msk.msra.mxu1 %vm6169_vm3, %v8403_v24  ;;  %4330 = vmatpush1.bf16.msk.msra.mxu0 %vm8838_vm6, %v8403_v24  ;;  %vm8847_vm6 = vnez %v8537_v12 }
 0x402   : > { %3776 = vmatprep.subr.msk.bf16.mxu1 %vm6191_vm0, %v8403_v24  ;;  %4332 = vmatprep.subr.msk.bf16.mxu0 %vm8840_vm11, %v8403_v24  ;;  %vm8848_vm11 = vnez %v8539_v61 }
 0x405   : > { %4334 = vmatpush1.bf16.msk.msra.mxu0 %vm8842_vm7, %v8403_v24  ;;  %vm8849_vm7 = vnez %v8541_v21 }
 0x406   : > { %4336 = vmatprep.subr.msk.bf16.mxu0 %vm8843_vm13, %v8403_v24  ;;  %vm8850_vm13 = vnez %v8565_v15 }
 0x409   : > { %3778 = vmatpush1.bf16.xpose.msk.msra.mxu1 %vm8844_vm5, %v8403_v24  ;;  %4338 = vmatpush1.bf16.msk.msra.mxu0 %vm8845_vm4, %v8403_v24  ;;  %vm8851_vm4 = vnez %v8549_v46 }
 0x40a   : > { %3780 = vmatprep.subr.msk.bf16.mxu1 %vm8846_vm15, %v8403_v24  ;;  %4340 = vmatprep.subr.msk.bf16.mxu0 %vm8847_vm6, %v8403_v24  ;;  %vm8852_vm6 = vnez %v8551_v58 }
 0x40d   : > { %4342 = vmatpush1.bf16.msk.msra.mxu0 %vm8848_vm11, %v8403_v24  ;;  %vm8853_vm11 = vnez %v8555_v8 }
 0x40e   : > { %4344 = vmatprep.subr.msk.bf16.mxu0 %vm8849_vm7, %v8403_v24  ;;  %vm8854_vm7 = vnez %v8567_v27 }
 0x411   : > { %3782 = vmatpush1.bf16.xpose.msk.msra.mxu1 %vm6221_vm2, %v8403_v24  ;;  %4346 = vmatpush1.bf16.msk.msra.mxu0 %vm6111_vm12, %v8403_v24  ;;  %vm8855_vm12 = vnez %v8569_v32 }
 0x412   : > { %3784 = vmatprep.subr.msk.bf16.mxu1 %vm8850_vm13, %v8403_v24  ;;  %4348 = vmatprep.subr.msk.bf16.mxu0 %vm8851_vm4, %v8403_v24  ;;  %vm8856_vm13 = vnez %v8571_v33  ;;  %vm8857_vm4 = vnez %v8573_v48 }
 0x415   : > { %4350 = vmatpush1.bf16.msk.msra.mxu0 %vm8852_vm6, %v8403_v24  ;;  %vm8858_vm6 = vnez %v8575_v36 }
 0x416   : > { %4352 = vmatprep.subr.msk.bf16.mxu0 %vm8853_vm11, %v8403_v24  ;;  %vm8859_vm11 = vnez %v8577_v20 }
 0x419   : > { %3786 = vmatpush1.bf16.xpose.msk.msra.mxu1 %vm8854_vm7, %v8403_v24  ;;  %vm8869_vm7 = vnez %v8597_v0 }
 0x41a   : > { %3788 = vmatprep.subr.msk.bf16.mxu1 %vm8855_vm12, %v8403_v24  ;;  %vm8868_vm12 = vnez %v8595_v34 }
 0x421   : > { %3790 = vmatpush1.bf16.xpose.msk.msra.mxu1 %vm8856_vm13, %v8403_v24  ;;  %vm8860_vm13 = vnez %v8579_v3 }
 0x422   : > { %3792 = vmatprep.subr.msk.bf16.mxu1 %vm8857_vm4, %v8403_v24  ;;  %vm8861_vm4 = vnez %v8581_v18 }
 0x429   : > { %3794 = vmatpush1.bf16.xpose.msk.msra.mxu1 %vm8858_vm6, %v8403_v24  ;;  %vm8862_vm6 = vnez %v8583_v63 }
 0x42a   : > { %3796 = vmatprep.subr.msk.bf16.mxu1 %vm8859_vm11, %v8403_v24  ;;  %vm8863_vm11 = vnez %v8585_v59 }
 0x42b   : > { %v1702_v38 = vpop.f32.mrb[4].mxu0 }
 0x42c   : > { %v1704_v37 = vpop.f32.mrb[5].mxu0  ;;  %v1709_v9 = vmax.f32 %v1702_v38, 1.0 }
 0x42d   : > { %v1710_v6 = vmax.f32 %v1704_v37, 1.0  ;;  %v1706_v12 = vpop.f32.mrb[6].mxu0 }
 0x42e   : > { %v1707_v61 = vpop.f32.mrb[7].mxu0  ;;  %v8886_v12 = vld [vmem:[#allocation15_spill] sm:$0xff] }
 0x42f   : > { %4735 = vrcp.f32 %v1710_v6  ;;  %v8882_v6 = vld [vmem:[#allocation16_spill] sm:$0xff]  ;;  %v8888_v61 = vld [vmem:[#allocation37_spill] sm:$0xff] }
 0x430   : > { %4737 = vrcp.f32 %v1709_v9  ;;  %v8898_v9 = vld [vmem:[#allocation42_spill] sm:$0xff] }
 0x431   : > { %3798 = vmatpush1.bf16.xpose.msk.msra.mxu1 %vm8860_vm13, %v8403_v24  ;;  %vm8864_vm13 = vnez %v8587_v16 }
 0x432   : > { %3800 = vmatprep.subr.msk.bf16.mxu1 %vm8861_vm4, %v8403_v24  ;;  %vm8865_vm4 = vnez %v8589_v11 }
 0x439   : > { %v4736_v21 = vpop.eup %4735  ;;  %3802 = vmatpush1.bf16.xpose.msk.msra.mxu1 %vm8862_vm6, %v8403_v24  ;;  %vm8866_vm6 = vnez %v8591_v28 }
 0x43a   : > { %3804 = vmatprep.subr.msk.bf16.mxu1 %vm8863_vm11, %v8403_v24  ;;  %v1720_v46 = vrot.slane %v4736_v21, %v7131_v29  ;;  %vm8867_vm11 = vnez %v8593_v39  ;;  %v4738_v62 = vpop.eup %4737  ;;  %v8890_v21 = vld [vmem:[#allocation38_spill] sm:$0xff] }
 0x43b   : > { %v1716_v30 = vrot.slane %v4738_v62, %v7131_v29  ;;  %v8908_v62 = vld [vmem:[#allocation47_spill] sm:$0xff] }
 0x43c   : > { %v1722_v58 = vmul.f32 %v1720_v46, %v1704_v37  ;;  %v8880_v37 = vld [vmem:[#allocation35_spill] sm:$0xff] }
 0x43d   : > { %v1721_v55 = vmul.f32 %v1716_v30, %v1702_v38  ;;  %v8884_v38 = vld [vmem:[#allocation36_spill] sm:$0xff]  ;;  %v8892_v46 = vld [vmem:[#allocation39_spill] sm:$0xff] }
 0x43e   : > { %v1724_v8 = vpack.c.bf16 %v1722_v58, %v1722_v58  ;;  %v8894_v58 = vld [vmem:[#allocation40_spill] sm:$0xff] }
 0x43f   : > { %v1723_v54 = vpack.c.bf16 %v1721_v55, %v1721_v55  ;;  %v8910_v30 = vld [vmem:[#allocation48_spill] sm:$0xff]  ;;  %v8914_v55 = vld [vmem:[#allocation50_spill] sm:$0xff] }
 0x440   : > { %1757 = vmatprep.mubr.bf16.mxu1 %v1724_v8  ;;  %v8896_v8 = vld [vmem:[#allocation41_spill] sm:$0xff] }
 0x441   : > { %3806 = vmatpush1.bf16.xpose.msk.msra.mxu1 %vm8864_vm13, %v8403_v24  ;;  %vm8870_vm13 = vnez %v8599_v41 }
 0x442   : > { %3808 = vmatprep.subr.msk.bf16.mxu1 %vm8865_vm4, %v8403_v24  ;;  %vm8871_vm4 = vnez %v8601_v31 }
 0x449   : > { %3810 = vmatpush1.bf16.xpose.msk.msra.mxu1 %vm8866_vm6, %v8403_v24  ;;  %vm8872_vm6 = vnez %v8603_v26 }
 0x44a   : > { %3812 = vmatprep.subr.msk.bf16.mxu1 %vm8867_vm11, %v8403_v24  ;;  %vm8873_vm11 = vnez %v8605_v52 }
 0x451   : > { %3814 = vmatpush1.bf16.xpose.msk.msra.mxu1 %vm8868_vm12, %v8403_v24  ;;  %vm8893_vm12 = vnez %v8892_v46 }
 0x452   : > { %3816 = vmatprep.subr.msk.bf16.mxu1 %vm8869_vm7, %v8403_v24  ;;  %vm8874_vm7 = vnez %v8607_v44 }
 0x459   : > { %3818 = vmatpush1.bf16.xpose.msk.msra.mxu1 %vm8870_vm13, %v8403_v24  ;;  %vm8875_vm13 = vnez %v8609_v19 }
 0x45a   : > { %3820 = vmatprep.subr.msk.bf16.mxu1 %vm8871_vm4, %v8403_v24  ;;  %vm8889_vm4 = vnez %v8888_v61 }
 0x461   : > { %3822 = vmatpush1.bf16.xpose.msk.msra.mxu1 %vm8872_vm6, %v8403_v24  ;;  %vm8877_vm6 = vnez %v8613_v17 }
 0x462   : > { %3824 = vmatprep.subr.msk.bf16.mxu1 %vm8873_vm11, %v8403_v24  ;;  %vm8876_vm11 = vnez %v8611_v10 }
 0x469   : > { %3826 = vmatpush1.bf16.xpose.msk.msra.mxu1 %vm8874_vm7, %v8403_v24  ;;  %vm8879_vm7 = vnez %v8618_v60 }
 0x46a   : > { %3828 = vmatprep.subr.msk.bf16.mxu1 %vm8875_vm13, %v8403_v24  ;;  %vm8878_vm13 = vnez %v8616_v35 }
 0x46b   : > { %v7274_v50 = vpop.f32.mrb[8].mxu0 }
 0x46c   : > { %v2157_v40 = vpop.f32.mrb[9].mxu0 }
 0x46d   : > { %v2163_v53 = vmax.f32 %v2157_v40, 1.0  ;;  %v2159_v25 = vpop.f32.mrb[10].mxu0 }
 0x46e   : > { %v2160_v42 = vpop.f32.mrb[11].mxu0  ;;  %v8904_v25 = vld [vmem:[#allocation45_spill] sm:$0xff] }
 0x46f   : > { %4739 = vrcp.f32 %v2163_v53  ;;  %v8902_v53 = vld [vmem:[#allocation44_spill] sm:$0xff]  ;;  %v8906_v42 = vld [vmem:[#allocation46_spill] sm:$0xff] }
 0x471   : > { %3830 = vmatpush1.bf16.xpose.msk.msra.mxu1 %vm8876_vm11, %v8403_v24  ;;  %vm8883_vm11 = vnez %v8882_v6 }
 0x472   : > { %3832 = vmatprep.subr.msk.bf16.mxu1 %vm8877_vm6, %v8403_v24  ;;  %vm8881_vm6 = vnez %v8880_v37 }
 0x479   : > { %v4740_v23 = vpop.eup %4739  ;;  %3834 = vmatpush1.bf16.xpose.msk.msra.mxu1 %vm8878_vm13, %v8403_v24  ;;  %vm8885_vm13 = vnez %v8884_v38 }
 0x47a   : > { %3996 = vmatprep.subr.msk.bf16.mxu1 %vm8879_vm7, %v8403_v24  ;;  %v2173_v47 = vrot.slane %v4740_v23, %v7131_v29  ;;  %vm8887_vm7 = vnez %v8886_v12  ;;  %v8912_v23 = vld [vmem:[#allocation49_spill] sm:$0xff] }
 0x47c   : > { %v2175_v7 = vmul.f32 %v2173_v47, %v2157_v40  ;;  %v8900_v40 = vld [vmem:[#allocation43_spill] sm:$0xff] }
 0x47d   : > { %v8916_v47 = vld [vmem:[#allocation51_spill] sm:$0xff] }
 0x47e   : > { %v2177_v57 = vpack.c.bf16 %v2175_v7, %v2175_v7  ;;  %v8918_v7 = vld [vmem:[#allocation52_spill] sm:$0xff] }
 0x480   : > { %1758 = vmatmul.mubr.bf16.vlgmr.msra.gmra.mrb[0].mxu1 %v1723_v54  ;;  %v8920_v54 = vld [vmem:[#allocation53_spill] sm:$0xff] }
 0x481   : > { %3998 = vmatpush1.bf16.xpose.msk.msra.mxu1 %vm8881_vm6, %v8403_v24  ;;  %2210 = vmatprep.mubr.bf16.mxu1 %v2177_v57  ;;  %vm8891_vm6 = vnez %v8890_v21  ;;  %v8922_v57 = vld [vmem:[#allocation54_spill] sm:$0xff] }
 0x482   : > { %4000 = vmatprep.subr.msk.bf16.mxu1 %vm8883_vm11, %v8403_v24  ;;  %vm8895_vm11 = vnez %v8894_v58 }
 0x489   : > { %4002 = vmatpush1.bf16.xpose.msk.msra.mxu1 %vm8885_vm13, %v8403_v24  ;;  %vm8897_vm13 = vnez %v8896_v8 }
 0x48a   : > { %4004 = vmatprep.subr.msk.bf16.mxu1 %vm8887_vm7, %v8403_v24  ;;  %vm8899_vm7 = vnez %v8898_v9 }
 0x491   : > { %4006 = vmatpush1.bf16.xpose.msk.msra.mxu1 %vm8889_vm4, %v8403_v24  ;;  %vm8901_vm4 = vnez %v8900_v40 }
 0x492   : > { %4008 = vmatprep.subr.msk.bf16.mxu1 %vm8891_vm6, %v8403_v24  ;;  %vm8903_vm6 = vnez %v8902_v53 }
 0x499   : > { %4010 = vmatpush1.bf16.xpose.msk.msra.mxu1 %vm8893_vm12, %v8403_v24  ;;  %vm8905_vm12 = vnez %v8904_v25 }
 0x49a   : > { %4012 = vmatprep.subr.msk.bf16.mxu1 %vm8895_vm11, %v8403_v24  ;;  %vm8907_vm11 = vnez %v8906_v42  ;;  %v8932_v42 = vld [vmem:[#allocation59_spill] sm:$0xff] }
 0x4a1   : > { %4014 = vmatpush1.bf16.xpose.msk.msra.mxu1 %vm8897_vm13, %v8403_v24  ;;  %vm8909_vm13 = vnez %v8908_v62  ;;  %v8928_v62 = vld [vmem:[#allocation57_spill] sm:$0xff] }
 0x4a2   : > { %4016 = vmatprep.subr.msk.bf16.mxu1 %vm8899_vm7, %v8403_v24  ;;  %vm8911_vm7 = vnez %v8910_v30 }
 0x4a9   : > { %4018 = vmatpush1.bf16.xpose.msk.msra.mxu1 %vm8901_vm4, %v8403_v24  ;;  %vm8913_vm4 = vnez %v8912_v23 }
 0x4aa   : > { %4020 = vmatprep.subr.msk.bf16.mxu1 %vm8903_vm6, %v8403_v24  ;;  %vm8915_vm6 = vnez %v8914_v55 }
 0x4ab   : > { %v2608_v55 = vpop.f32.mrb[12].mxu0 }
 0x4ac   : > { %v2610_v23 = vpop.f32.mrb[13].mxu0 }
 0x4b1   : > { %4022 = vmatpush1.bf16.xpose.msk.msra.mxu1 %vm8905_vm12, %v8403_v24  ;;  %vm8917_vm12 = vnez %v8916_v47  ;;  %v8926_v47 = vld [vmem:[#allocation56_spill] sm:$0xff] }
 0x4b2   : > { %4024 = vmatprep.subr.msk.bf16.mxu1 %vm8907_vm11, %v8403_v24  ;;  %vm8919_vm11 = vnez %v8918_v7  ;;  %v2612_v7 = vpop.f32.mrb[14].mxu0 }
 0x4b3   : > { %v2613_v30 = vpop.f32.mrb[15].mxu0  ;;  %v8934_v7 = vld [vmem:[#allocation60_spill] sm:$0xff] }
 0x4b4   : > { %v8936_v30 = vld [vmem:[#allocation61_spill] sm:$0xff] }
 0x4b9   : > { %4026 = vmatpush1.bf16.xpose.msk.msra.mxu1 %vm8909_vm13, %v8403_v24  ;;  %vm8921_vm13 = vnez %v8920_v54  ;;  %v8930_v54 = vld [vmem:[#allocation58_spill] sm:$0xff] }
 0x4ba   : > { %4028 = vmatprep.subr.msk.bf16.mxu1 %vm8911_vm7, %v8403_v24  ;;  %vm8923_vm7 = vnez %v8922_v57  ;;  %v2616_v57 = vmax.f32 %v2610_v23, 1.0 }
 0x4bc   : > { %4741 = vrcp.f32 %v2616_v57 }
 0x4c1   : > { %4030 = vmatpush1.bf16.xpose.msk.msra.mxu1 %vm8913_vm4, %v8403_v24  ;;  %vm8925_vm4 = vnez %v8924_v45  ;;  %v2162_v45 = vmax.f32 %v7274_v50, 1.0 }
 0x4c2   : > { %4032 = vmatprep.subr.msk.bf16.mxu1 %vm8915_vm6, %v8403_v24 }
 0x4c3   : > { %4743 = vrcp.f32 %v2162_v45 }
 0x4c9   : > { %4034 = vmatpush1.bf16.xpose.msk.msra.mxu1 %vm8917_vm12, %v8403_v24  ;;  %vm8927_vm12 = vnez %v8926_v47 }
 0x4ca   : > { %4036 = vmatprep.subr.msk.bf16.mxu1 %vm8919_vm11, %v8403_v24  ;;  %vm8929_vm11 = vnez %v8928_v62  ;;  %v4742_v62 = vpop.eup %4741 }
 0x4cb   : > { %v2626_v45 = vrot.slane %v4742_v62, %v7131_v29  ;;  %v8944_v62 = vld [vmem:[#allocation66_spill] sm:$0xff] }
 0x4cd   : > { %v4744_v47 = vpop.eup %4743 }
 0x4ce   : > { %v2169_v57 = vrot.slane %v4744_v47, %v7131_v29  ;;  %v8956_v47 = vld [vmem:[#allocation72_spill] sm:$0xff] }
 0x4d1   : > { %4038 = vmatpush1.bf16.xpose.msk.msra.mxu1 %vm8921_vm13, %v8403_v24  ;;  %vm8931_vm13 = vnez %v8930_v54  ;;  %v8942_v54 = vld [vmem:[#allocation65_spill] sm:$0xff] }
 0x4d2   : > { %4040 = vmatprep.subr.msk.bf16.mxu1 %vm8923_vm7, %v8403_v24 }
 0x4d9   : > { %4042 = vmatpush1.bf16.xpose.msk.msra.mxu1 %vm8925_vm4, %v8403_v24  ;;  %vm8933_vm4 = vnez %v8932_v42  ;;  %v2174_v42 = vmul.f32 %v2169_v57, %v7274_v50  ;;  %v8948_v50 = vld [vmem:[#allocation68_spill] sm:$0xff]  ;;  %v8962_v57 = vld [vmem:[#allocation75_spill] sm:$0xff] }
 0x4da   : > { %4044 = vmatprep.subr.msk.bf16.mxu1 %vm8927_vm12, %v8403_v24  ;;  %vm8935_vm12 = vnez %v8934_v7  ;;  %v2628_v7 = vmul.f32 %v2626_v45, %v2610_v23  ;;  %v8946_v23 = vld [vmem:[#allocation67_spill] sm:$0xff]  ;;  %v8960_v45 = vld [vmem:[#allocation74_spill] sm:$0xff] }
 0x4db   : > { %v2176_v53 = vpack.c.bf16 %v2174_v42, %v2174_v42  ;;  %v8950_v42 = vld [vmem:[#allocation69_spill] sm:$0xff] }
 0x4dc   : > { %v2630_v25 = vpack.c.bf16 %v2628_v7, %v2628_v7  ;;  %v8958_v7 = vld [vmem:[#allocation73_spill] sm:$0xff] }
 0x4e1   : > { %4046 = vmatpush1.bf16.xpose.msk.msra.mxu1 %vm8929_vm11, %v8403_v24  ;;  %vm8937_vm11 = vnez %v8936_v30  ;;  %v8940_v30 = vld [vmem:[#allocation64_spill] sm:$0xff] }
 0x4e2   : > { %4048 = vmatprep.subr.msk.bf16.mxu1 %vm8931_vm13, %v8403_v24  ;;  %vm8949_vm13 = vnez %v8948_v50  ;;  %v8997_v50 = vld [vmem:[#allocation19_spill] sm:$0xff] }
 0x4e9   : > { %4050 = vmatpush1.bf16.xpose.msk.msra.mxu1 %vm8933_vm4, %v8403_v24  ;;  %vm8939_vm4 = vnez %v8710_v1 }
 0x4ea   : > { %4052 = vmatprep.subr.msk.bf16.mxu1 %vm8935_vm12, %v8403_v24  ;;  %vm8945_vm12 = vnez %v8944_v62  ;;  %v8998_v62 = vld [vmem:[#allocation18_spill] sm:$0xff] }
 0x4f1   : > { %4054 = vmatpush1.bf16.xpose.msk.msra.mxu1 %vm8937_vm11, %v8403_v24  ;;  %vm8941_vm11 = vnez %v8940_v30  ;;  %v8999_v30 = vld [vmem:[#allocation14_spill] sm:$0xff] }
 0x4f2   : > { %4056 = vmatprep.subr.msk.bf16.mxu1 %vm6780_vm10, %v8403_v24  ;;  %vm8943_vm10 = vnez %v8942_v54 }
 0x4f9   : > { %4058 = vmatpush1.bf16.xpose.msk.msra.mxu1 %vm8939_vm4, %v8403_v24  ;;  %vm8947_vm4 = vnez %v8946_v23 }
 0x4fa   : > { %4220 = vmatprep.subr.msk.bf16.mxu1 %vm8941_vm11, %v8403_v24  ;;  %vm8951_vm11 = vnez %v8950_v42 }
 0x500   : > { %2211 = vmatmul.mubr.bf16.vlgmr.msra.gmra.mrb[0].mxu1 %v2176_v53  ;;  %v8952_v53 = vld [vmem:[#allocation70_spill] sm:$0xff] }
 0x501   : > { %4222 = vmatpush1.bf16.xpose.msk.msra.mxu1 %vm8943_vm10, %v8403_v24  ;;  %2663 = vmatprep.mubr.bf16.mxu1 %v2630_v25  ;;  %vm8953_vm10 = vnez %v8952_v53  ;;  %v8954_v25 = vld [vmem:[#allocation71_spill] sm:$0xff]  ;;  %v8964_v53 = vld [vmem:[#allocation76_spill] sm:$0xff] }
 0x502   : > { %4224 = vmatprep.subr.msk.bf16.mxu1 %vm8945_vm12, %v8403_v24  ;;  %vm8955_vm7 = vnez %v8954_v25  ;;  %vm8957_vm12 = vnez %v8956_v47  ;;  %v8966_v25 = vld [vmem:[#allocation77_spill] sm:$0xff]  ;;  %v8968_v47 = vld [vmem:[#allocation78_spill] sm:$0xff] }
 0x509   : > { %4226 = vmatpush1.bf16.xpose.msk.msra.mxu1 %vm8947_vm4, %v8403_v24  ;;  %vm8959_vm4 = vnez %v8958_v7  ;;  %v8970_v7 = vld [vmem:[#allocation79_spill] sm:$0xff] }
 0x50a   : > { %4228 = vmatprep.subr.msk.bf16.mxu1 %vm8949_vm13, %v8403_v24  ;;  %vm8961_vm13 = vnez %v8960_v45  ;;  %v8972_v45 = vld [vmem:[#allocation80_spill] sm:$0xff] }
 0x511   : > { %4230 = vmatpush1.bf16.xpose.msk.msra.mxu1 %vm8951_vm11, %v8403_v24  ;;  %vm8963_vm11 = vnez %v8962_v57  ;;  %v8974_v57 = vld [vmem:[#allocation81_spill] sm:$0xff] }
 0x512   : > { %4232 = vmatprep.subr.msk.bf16.mxu1 %vm8953_vm10, %v8403_v24  ;;  %vm8965_vm10 = vnez %v8964_v53  ;;  %v8976_v53 = vld [vmem:[#allocation82_spill] sm:$0xff] }
 0x519   : > { %4234 = vmatpush1.bf16.xpose.msk.msra.mxu1 %vm8955_vm7, %v8403_v24  ;;  %vm8967_vm7 = vnez %v8966_v25  ;;  %v8978_v25 = vld [vmem:[#allocation83_spill] sm:$0xff] }
 0x51a   : > { %4236 = vmatprep.subr.msk.bf16.mxu1 %vm8957_vm12, %v8403_v24  ;;  %vm8969_vm12 = vnez %v8968_v47  ;;  %v8980_v47 = vld [vmem:[#allocation84_spill] sm:$0xff] }
 0x521   : > { %4238 = vmatpush1.bf16.xpose.msk.msra.mxu1 %vm8959_vm4, %v8403_v24  ;;  %vm8971_vm4 = vnez %v8970_v7  ;;  %v8982_v7 = vld [vmem:[#allocation85_spill] sm:$0xff] }
 0x522   : > { %4240 = vmatprep.subr.msk.bf16.mxu1 %vm8961_vm13, %v8403_v24  ;;  %vm8973_vm13 = vnez %v8972_v45  ;;  %v8984_v45 = vld [vmem:[#allocation86_spill] sm:$0xff] }
 0x529   : > { %4242 = vmatpush1.bf16.xpose.msk.msra.mxu1 %vm8963_vm11, %v8403_v24  ;;  %vm8975_vm11 = vnez %v8974_v57  ;;  %v8986_v57 = vld [vmem:[#allocation87_spill] sm:$0xff] }
 0x52a   : > { %4244 = vmatprep.subr.msk.bf16.mxu1 %vm8965_vm10, %v8403_v24  ;;  %vm8977_vm10 = vnez %v8976_v53 }
 0x531   : > { %4246 = vmatpush1.bf16.xpose.msk.msra.mxu1 %vm8967_vm7, %v8403_v24  ;;  %vm8979_vm7 = vnez %v8978_v25  ;;  %v8989_v25 = vld [vmem:[#allocation89_spill] sm:$0xff] }
 0x532   : > { %4248 = vmatprep.subr.msk.bf16.mxu1 %vm8969_vm12, %v8403_v24  ;;  %vm8981_vm12 = vnez %v8980_v47  ;;  %v8991_v47 = vld [vmem:[#allocation90_spill] sm:$0xff] }
 0x539   : > { %4250 = vmatpush1.bf16.xpose.msk.msra.mxu1 %vm8971_vm4, %v8403_v24  ;;  %vm8983_vm4 = vnez %v8982_v7  ;;  %v2615_v7 = vmax.f32 %v2608_v55, 1.0 }
 0x53a   : > { %4252 = vmatprep.subr.msk.bf16.mxu1 %vm8973_vm13, %v8403_v24  ;;  %vm8985_vm13 = vnez %v8984_v45  ;;  %v8993_v45 = vld [vmem:[#allocation91_spill] sm:$0xff] }
 0x53b   : > { %4745 = vrcp.f32 %v2615_v7 }
 0x541   : > { %4254 = vmatpush1.bf16.xpose.msk.msra.mxu1 %vm8975_vm11, %v8403_v24  ;;  %vm8987_vm11 = vnez %v8986_v57 }
 0x542   : > { %4256 = vmatprep.subr.msk.bf16.mxu1 %vm8977_vm10, %v8403_v24  ;;  %vm8988_vm10 = vnez %v8785_v56 }
 0x549   : > { %4258 = vmatpush1.bf16.xpose.msk.msra.mxu1 %vm8979_vm7, %v8403_v24  ;;  %vm8990_vm7 = vnez %v8989_v25  ;;  %v8995_v25 = vmov 0.0  }
 0x54a   : > { %4260 = vmatprep.subr.msk.bf16.mxu1 %vm8981_vm12, %v8403_v24  ;;  %vm8992_vm12 = vnez %v8991_v47  ;;  %v4746_v47 = vpop.eup %4745 }
 0x54b   : > { %v2622_v7 = vrot.slane %v4746_v47, %v7131_v29  ;;  %v2686_v29 = vld [vmem:[%s8022_s2 + $0x10] sm:$0xff] }
 0x54c   : > { %2700 = vperm.xlu1 %4730, %v2686_v29  }
 0x551   : > { %4262 = vmatpush1.bf16.xpose.msk.msra.mxu1 %vm8983_vm4, %v8403_v24 }
 0x552   : > { %4264 = vmatprep.subr.msk.bf16.mxu1 %vm8985_vm13, %v8403_v24  ;;  %vm8994_vm13 = vnez %v8993_v45  ;;  %v2627_v45 = vmul.f32 %v2622_v7, %v2608_v55  ;;  %v4765_v55 = vld [vmem:[%s5044_s14] sm:$0xff] }
 0x553   : > { %v860_v47 = vmul.f32 0.0, %v4765_v55  ;;  %v2678_v29 = vmul.f32 %v4765_v55, %v8999_v30 }
 0x554   : > { %v2629_v51 = vpack.c.bf16 %v2627_v45, %v2627_v45  ;;  %v4766_v45 = vld [vmem:[%s5044_s14 + $0x8] sm:$0xff]  ;;  %s4801_s14 = sshll.u32 %s4905_s13, 4  ;;  %s4802_s14 = int_to_ptr.vmem [resolvable:$false] %s4801_s14 }
 0x555   : > { %v861_v7 = vmul.f32 0.0, %v4766_v45  ;;  %v2679_v54 = vmul.f32 %v4766_v45, %v8998_v62  ;;  %s4803_s26 = scalar_lea.vmem %s4802_s14, 2048  ;;  %p4804_p4 = scmp.lt.s32.totalorder %s7912_s25, %s4802_s14 }
 0x556   : > { %p4805_p9 = scmp.lt.s32.totalorder %s4803_s26, %s4797_s9 }
 0x558   : > { %p4806_p1 = por %p4805_p9, %p4804_p4 }
 0x559   : > { %4266 = vmatpush1.bf16.xpose.msk.msra.mxu1 %vm8987_vm11, %v8403_v24 }
 0x55a   : > { %4268 = vmatprep.subr.msk.bf16.mxu1 %vm8988_vm10, %v8403_v24  ;;  %p4807_p3 = pnand %p4806_p1, %p4800_p12 }
 0x561   : > { %4270 = vmatpush1.bf16.xpose.msk.msra.mxu1 %vm8990_vm7, %v8403_v24 }
 0x562   : > { %4272 = vmatprep.subr.msk.bf16.mxu1 %vm8992_vm12, %v8403_v24 }
 0x569   : > { %4274 = vmatpush1.bf16.xpose.msk.msra.mxu1 %vm8994_vm13, %v8403_v24 }
 0x56a   : > { %4276 = vmatprep.subr.msk.bf16.mxu1 %vm7052_vm8, %v8403_v24 }
 0x571   : > { %4278 = vmatpush1.bf16.xpose.msk.msra.mxu1 %vm7056_vm1, %v8403_v24 }
 0x572   : > { %4280 = vmatprep.subr.msk.bf16.mxu1 %vm7070_vm14, %v8403_v24 }
 0x579   : > { %4282 = vmatpush1.bf16.xpose.msk.msra.mxu1 %vm7074_vm9, %v8403_v24  ;;  %vm2708_vm9 = vcmask 195584  }
 0x580   : > { %2664 = vmatmul.mubr.bf16.vlgmr.msra.gmra.mrb[0].mxu1 %v2629_v51  ;;  %v2687_v51 = vld [vmem:[%s8022_s2 + $0x18] sm:$0xff] }
 0x581   : > { %2785 = vmatprep.mubr.f32.mxu1 %v8995_v25  ;;  %2705 = vperm.xlu0 %4729, %v2687_v51  }
 0x653   : > { %v2665_v24 = vpop.f32.mrb[0].mxu1 }
 0x654   : > { %v4585_v2 = vadd.f32 %v2665_v24, %v860_v47  ;;  %v2667_v56 = vpop.f32.mrb[1].mxu1  ;;  %v2680_v24 = vld [vmem:[%s8021_s1] sm:$0xff] }
 0x655   : > { %v4586_v57 = vadd.f32 %v2667_v56, %v861_v7  ;;  %v2669_v14 = vpop.f32.mrb[2].mxu1  ;;  %v2681_v56 = vld [vmem:[%s8021_s1 + $0x8] sm:$0xff] }
 0x656   : > { %v2674_v53 = vsub.f32 %v8996_v13, %v4585_v2  ;;  %v2670_v42 = vpop.f32.mrb[3].mxu1  ;;  %v2683_v2 = vld [vmem:[%s8021_s1 + $0x18] sm:$0xff] }
 0x657   : > { %v2675_v23 = vsub.f32 %v8997_v50, %v4586_v57  ;;  %v2696_v42 = vpop.permute.xlu1 %2695 }
 0x658   : > { %v2676_v1 = vmul.f32 %v2674_v53, %v8999_v30 }
 0x659   : > { %v2677_v51 = vmul.f32 %v2675_v23, %v8998_v62 }
 0x65a   : > { %v4583_v9 = vpack.c.bf16 %v2676_v1, %v2678_v29  ;;  %v2682_v1 = vld [vmem:[%s8021_s1 + $0x10] sm:$0xff] }
 0x65b   : > { %v4581_v40 = vpack.c.bf16 %v2677_v51, %v2679_v54  ;;  %v2701_v51 = vpop.permute.xlu1 %2700 }
 0x65d   : > { %4582 = vmatprep.subr.bf16.mxu1 %v4581_v40 }
 0x65e   : > { %4584 = vmatpush1.bf16.msra.mxu1 %v4583_v9  ;;  %v2691_v9 = vpop.permute.xlu0 %2690 }
 0x65f   : > { %2725 = vmatprep.subr.mxu1 %v8997_v50 }
 0x662   : > { %2726 = vmatpush1.msra.mxu1 %v8996_v13 }
 0x663   : > { %4283 = vmatmul.mubr.msk.f32.vlgmr.msra.gmra.mrb[4].mxu1 %vm2708_vm9, %v2680_v24 }
 0x664   : > { %2791 = vmatprep.mubr.f32.mxu1 %v8995_v25 }
 0x667   : > { %4284 = vmatmul.mubr.msk.f32.gmra.mrb[6].mxu1 %vm2708_vm9, %v2681_v56 }
 0x668   : > { %2797 = vmatprep.mubr.f32.mxu1 %v8995_v25 }
 0x66b   : > { %4285 = vmatmul.mubr.msk.f32.gmra.mrb[8].mxu1 %vm2708_vm9, %v2682_v1 }
 0x66c   : > { %2803 = vmatprep.mubr.f32.mxu1 %v8995_v25 }
 0x66f   : > { %4286 = vmatmul.mubr.msk.f32.gmra.mrb[10].mxu1 %vm2708_vm9, %v2683_v2  ;;  %vm9005_vm9 = vnez %v8569_v32  ;;  %v9047_v32 = vld [vmem:[#allocation46_spill] sm:$0xff] }
 0x736   : > { %v2787_v40 = vpop.f32.mrb[4].mxu1 }
 0x737   : > { %v2788_v54 = vadd.f32 %v2787_v40, %v2691_v9  ;;  %v2789_v23 = vpop.f32.mrb[5].mxu1 }
 0x738   : > { %v2790_v50 = vadd.f32 %v2789_v23, %v2691_v9 }
 0x739   : > { %v2810_v53 = vmax.f32 %v2788_v54, 0.0 }
 0x73a   : > { %v2811_v57 = vmax.f32 %v2790_v50, 0.0  ;;  %v2793_v55 = vpop.f32.mrb[6].mxu1 }
 0x73b   : > { %v2818_v47 = vmul.f32 %v2810_v53, %v8999_v30  ;;  %v2794_v45 = vadd.f32 %v2793_v55, %v2696_v42  ;;  %v2795_v7 = vpop.f32.mrb[7].mxu1 }
 0x73c   : > { %v2819_v25 = vmul.f32 %v2811_v57, %v8998_v62  ;;  %v2796_v14 = vadd.f32 %v2795_v7, %v2696_v42  ;;  %v2706_v42 = vpop.permute.xlu0 %2705 }
 0x73d   : > { %2826 = vst [vmem:[%s7525_s12] sm:$0xff] %v2818_v47  ;;  %v2812_v13 = vmax.f32 %v2794_v45, 0.0 }
 0x73e   : > { %2827 = vst [vmem:[%s7525_s12 + $0x8] sm:$0xff] %v2819_v25  ;;  %v2813_v29 = vmax.f32 %v2796_v14, 0.0  ;;  %v2799_v24 = vpop.f32.mrb[8].mxu1 }
 0x73f   : > { %v2820_v56 = vmul.f32 %v2812_v13, %v8999_v30  ;;  %v2800_v1 = vadd.f32 %v2799_v24, %v2701_v51  ;;  %v2801_v2 = vpop.f32.mrb[9].mxu1 }
 0x740   : > { %v2821_v9 = vmul.f32 %v2813_v29, %v8998_v62  ;;  %v2802_v40 = vadd.f32 %v2801_v2, %v2701_v51  ;;  %v9000_v29 = vmov 1.0|1.0   ;;  %v7562_v2 = vpack.c.bf16 %v9001_v49, %v9001_v49 }
 0x741   : > { %2828 = vst [vmem:[%s7525_s12 + $0x10] sm:$0xff] %v2820_v56  ;;  %v7532_v54 = vpack.c.bf16 %v2820_v56, %v2818_v47  ;;  %v2814_v23 = vmax.f32 %v2800_v1, 0.0 }
 0x742   : > { %2829 = vst [vmem:[%s7525_s12 + $0x18] sm:$0xff] %v2821_v9  ;;  %v7535_v50 = vpack.c.bf16 %v2821_v9, %v2819_v25  ;;  %v2815_v53 = vmax.f32 %v2802_v40, 0.0  ;;  %v2805_v57 = vpop.f32.mrb[10].mxu1  ;;  %v9118_v9 = vld [vmem:[#allocation82_spill] sm:$0xff]  ;;  %v9120_v40 = vld [vmem:[#allocation83_spill] sm:$0xff] }
 0x743   : > { %v2822_v55 = vmul.f32 %v2814_v23, %v8999_v30  ;;  %v2806_v45 = vadd.f32 %v2805_v57, %v2706_v42  ;;  %v2807_v7 = vpop.f32.mrb[11].mxu1  ;;  %v9122_v23 = vld [vmem:[#allocation84_spill] sm:$0xff] }
 0x744   : > { %v2823_v14 = vmul.f32 %v2815_v53, %v8998_v62  ;;  %v2808_v13 = vadd.f32 %v2807_v7, %v2706_v42  ;;  %2876 = vmatprep.mubr.bf16.mxu0 %v7535_v50  ;;  %v9125_v42 = vld [vmem:[#allocation86_spill] sm:$0xff] }
 0x745   : > { %2830 = vst [vmem:[%s7525_s12 + $0x20] sm:$0xff] %v2822_v55  ;;  %v2816_v47 = vmax.f32 %v2806_v45, 0.0  ;;  %2877 = vmatmul.mubr.bf16.vlgmr.msra.gmra.mrb[16].mxu0 %v7532_v54 }
 0x746   : > { %2831 = vst [vmem:[%s7525_s12 + $0x28] sm:$0xff] %v2823_v14  ;;  %v2817_v25 = vmax.f32 %v2808_v13, 0.0  ;;  %4354 = vmatpush1.bf16.msk.msra.mxu0 %vm6169_vm3, %v9000_v29  ;;  %vm9002_vm3 = vnez %v8565_v15  ;;  %v9043_v15 = vld [vmem:[#allocation44_spill] sm:$0xff] }
 0x747   : > { %v2824_v51 = vmul.f32 %v2816_v47, %v8999_v30  ;;  %4356 = vmatprep.subr.msk.bf16.mxu0 %vm6191_vm0, %v9000_v29  ;;  %vm9004_vm0 = vnez %v8567_v27  ;;  %v9045_v27 = vld [vmem:[#allocation45_spill] sm:$0xff]  ;;  %v9114_v30 = vld [vmem:[#allocation80_spill] sm:$0xff] }
 0x748   : > { %v2825_v24 = vmul.f32 %v2817_v25, %v8998_v62  ;;  %v9116_v62 = vld [vmem:[#allocation81_spill] sm:$0xff]  ;;  %v9135_v25 = vld [vmem:[#allocation95_spill] sm:$0xff] }
 0x749   : > { %2832 = vst [vmem:[%s7525_s12 + $0x30] sm:$0xff] %v2824_v51  ;;  %v7552_v56 = vpack.c.bf16 %v2824_v51, %v2822_v55 }
 0x74a   : > { %2833 = vst [vmem:[%s7525_s12 + $0x38] sm:$0xff] %v2825_v24  ;;  %v7555_v1 = vpack.c.bf16 %v2825_v24, %v2823_v14  ;;  %4358 = vmatpush1.bf16.msk.msra.mxu0 %vm8844_vm5, %v9000_v29  ;;  %vm9007_vm5 = vnez %v8573_v48  ;;  %v9051_v48 = vld [vmem:[#allocation48_spill] sm:$0xff] }
 0x74b   : > { %4360 = vmatprep.subr.msk.bf16.mxu0 %vm8846_vm15, %v9000_v29  ;;  %vm9008_vm15 = vnez %v8575_v36  ;;  %v9053_v36 = vld [vmem:[#allocation49_spill] sm:$0xff] }
 0x74c   : > { %2886 = vmatprep.mubr.bf16.mxu0 %v7555_v1 }
 0x74d   : > { %2887 = vmatmul.mubr.bf16.gmra.mrb[20].mxu0 %v7552_v56 }
 0x74e   : > { %4362 = vmatpush1.bf16.msk.msra.mxu0 %vm6221_vm2, %v9000_v29  ;;  %2896 = vmatprep.mubr.bf16.mxu0 %v7562_v2  ;;  %vm9006_vm2 = vnez %v8571_v33  ;;  %v9049_v33 = vld [vmem:[#allocation47_spill] sm:$0xff] }
 0x74f   : > { %4364 = vmatprep.subr.msk.bf16.mxu0 %vm9002_vm3, %v9000_v29  ;;  %vm9009_vm3 = vnez %v8577_v20  ;;  %v9138_v20 = vld [vmem:[#allocation12_spill] sm:$0xff] }
 0x752   : > { %4366 = vmatpush1.bf16.msk.msra.mxu0 %vm9004_vm0, %v9000_v29  ;;  %vm9010_vm0 = vnez %v8579_v3  ;;  %v9056_v3 = vld [vmem:[#allocation51_spill] sm:$0xff] }
 0x753   : > { %4368 = vmatprep.subr.msk.bf16.mxu0 %vm9005_vm9, %v9000_v29  ;;  %vm9011_vm9 = vnez %v8581_v18  ;;  %v9058_v18 = vld [vmem:[#allocation52_spill] sm:$0xff] }
 0x755   : > { %2897 = vmatmul.mubr.bf16.gmra.mrb[24].mxu0 %v7578_v43 }
 0x756   : > { %4370 = vmatpush1.bf16.msk.msra.mxu0 %vm9006_vm2, %v9000_v29  ;;  %2984 = vmatprep.mubr.bf16.mxu0 %v7535_v50  ;;  %vm9012_vm2 = vnez %v8583_v63  ;;  %v9060_v63 = vld [vmem:[#allocation53_spill] sm:$0xff] }
 0x757   : > { %4372 = vmatprep.subr.msk.bf16.mxu0 %vm9007_vm5, %v9000_v29  ;;  %vm9013_vm5 = vnez %v8585_v59  ;;  %v9062_v59 = vld [vmem:[#allocation54_spill] sm:$0xff] }
 0x75a   : > { %4374 = vmatpush1.bf16.msk.msra.mxu0 %vm9008_vm15, %v9000_v29  ;;  %vm9014_vm15 = vnez %v8587_v16  ;;  %v9064_v16 = vld [vmem:[#allocation55_spill] sm:$0xff] }
 0x75b   : > { %4376 = vmatprep.subr.msk.bf16.mxu0 %vm9009_vm3, %v9000_v29  ;;  %vm9015_vm3 = vnez %v8589_v11  ;;  %v9066_v11 = vld [vmem:[#allocation56_spill] sm:$0xff] }
 0x75e   : > { %4378 = vmatpush1.bf16.msk.msra.mxu0 %vm9010_vm0, %v9000_v29  ;;  %vm9016_vm0 = vnez %v8591_v28  ;;  %v9068_v28 = vld [vmem:[#allocation57_spill] sm:$0xff] }
 0x75f   : > { %4380 = vmatprep.subr.msk.bf16.mxu0 %vm9011_vm9, %v9000_v29  ;;  %vm9017_vm9 = vnez %v8593_v39  ;;  %v9070_v39 = vld [vmem:[#allocation58_spill] sm:$0xff] }
 0x762   : > { %4382 = vmatpush1.bf16.msk.msra.mxu0 %vm9012_vm2, %v9000_v29  ;;  %vm9018_vm2 = vnez %v8595_v34  ;;  %v9072_v34 = vld [vmem:[#allocation59_spill] sm:$0xff] }
 0x763   : > { %4384 = vmatprep.subr.msk.bf16.mxu0 %vm9013_vm5, %v9000_v29  ;;  %vm9019_vm5 = vnez %v8597_v0  ;;  %v9074_v0 = vld [vmem:[#allocation60_spill] sm:$0xff] }
 0x766   : > { %4386 = vmatpush1.bf16.msk.msra.mxu0 %vm9014_vm15, %v9000_v29  ;;  %vm9020_vm15 = vnez %v8599_v41  ;;  %v9076_v41 = vld [vmem:[#allocation61_spill] sm:$0xff] }
 0x767   : > { %4388 = vmatprep.subr.msk.bf16.mxu0 %vm9015_vm3, %v9000_v29  ;;  %vm9021_vm3 = vnez %v8601_v31  ;;  %v9078_v31 = vld [vmem:[#allocation62_spill] sm:$0xff] }
 0x76a   : > { %4390 = vmatpush1.bf16.msk.msra.mxu0 %vm9016_vm0, %v9000_v29  ;;  %vm9022_vm0 = vnez %v8603_v26  ;;  %v9080_v26 = vld [vmem:[#allocation63_spill] sm:$0xff] }
 0x76b   : > { %4392 = vmatprep.subr.msk.bf16.mxu0 %vm9017_vm9, %v9000_v29  ;;  %vm9023_vm9 = vnez %v8605_v52  ;;  %v9082_v52 = vld [vmem:[#allocation64_spill] sm:$0xff] }
 0x76e   : > { %4394 = vmatpush1.bf16.msk.msra.mxu0 %vm9018_vm2, %v9000_v29  ;;  %vm9024_vm2 = vnez %v8607_v44  ;;  %v9084_v44 = vld [vmem:[#allocation65_spill] sm:$0xff] }
 0x76f   : > { %4396 = vmatprep.subr.msk.bf16.mxu0 %vm9019_vm5, %v9000_v29  ;;  %vm9025_vm5 = vnez %v8609_v19  ;;  %v9086_v19 = vld [vmem:[#allocation66_spill] sm:$0xff] }
 0x772   : > { %4398 = vmatpush1.bf16.msk.msra.mxu0 %vm9020_vm15, %v9000_v29  ;;  %vm9026_vm15 = vnez %v8611_v10  ;;  %v9088_v10 = vld [vmem:[#allocation67_spill] sm:$0xff] }
 0x773   : > { %4400 = vmatprep.subr.msk.bf16.mxu0 %vm9021_vm3, %v9000_v29  ;;  %vm9027_vm3 = vnez %v8613_v17  ;;  %v9090_v17 = vld [vmem:[#allocation68_spill] sm:$0xff] }
 0x776   : > { %4402 = vmatpush1.bf16.msk.msra.mxu0 %vm9022_vm0, %v9000_v29  ;;  %vm9028_vm0 = vnez %v8616_v35  ;;  %v9092_v35 = vld [vmem:[#allocation69_spill] sm:$0xff] }
 0x777   : > { %4404 = vmatprep.subr.msk.bf16.mxu0 %vm9023_vm9, %v9000_v29  ;;  %vm9029_vm9 = vnez %v8618_v60  ;;  %v9094_v60 = vld [vmem:[#allocation70_spill] sm:$0xff] }
 0x77a   : > { %4406 = vmatpush1.bf16.msk.msra.mxu0 %vm9024_vm2, %v9000_v29  ;;  %vm9030_vm2 = vnez %v8880_v37  ;;  %v9096_v37 = vld [vmem:[#allocation71_spill] sm:$0xff] }
 0x77b   : > { %4408 = vmatprep.subr.msk.bf16.mxu0 %vm9025_vm5, %v9000_v29  ;;  %vm9031_vm5 = vnez %v8882_v6  ;;  %v9098_v6 = vld [vmem:[#allocation72_spill] sm:$0xff] }
 0x77e   : > { %4410 = vmatpush1.bf16.msk.msra.mxu0 %vm9026_vm15, %v9000_v29  ;;  %vm9032_vm15 = vnez %v8884_v38  ;;  %v9100_v38 = vld [vmem:[#allocation73_spill] sm:$0xff] }
 0x77f   : > { %4412 = vmatprep.subr.msk.bf16.mxu0 %vm9027_vm3, %v9000_v29  ;;  %vm9033_vm3 = vnez %v8886_v12  ;;  %v9102_v12 = vld [vmem:[#allocation74_spill] sm:$0xff] }
 0x782   : > { %4414 = vmatpush1.bf16.msk.msra.mxu0 %vm9028_vm0, %v9000_v29  ;;  %vm9034_vm0 = vnez %v8888_v61  ;;  %v9104_v61 = vld [vmem:[#allocation75_spill] sm:$0xff] }
 0x783   : > { %4426 = vmatprep.subr.msk.bf16.mxu0 %vm9029_vm9, %v9000_v29  ;;  %vm9035_vm9 = vnez %v8890_v21  ;;  %v9106_v21 = vld [vmem:[#allocation76_spill] sm:$0xff] }
 0x785   : > { %2985 = vmatmul.mubr.bf16.vlgmr.msra.gmra.mrb[28].mxu0 %v7532_v54 }
 0x786   : > { %2994 = vmatprep.mubr.bf16.mxu0 %v7555_v1  ;;  %4428 = vmatpush1.bf16.msk.msra.mxu0 %vm9030_vm2, %v9000_v29  ;;  %vm9036_vm2 = vnez %v8892_v46  ;;  %v9108_v46 = vld [vmem:[#allocation77_spill] sm:$0xff] }
 0x787   : > { %4430 = vmatprep.subr.msk.bf16.mxu0 %vm9031_vm5, %v9000_v29  ;;  %vm9037_vm5 = vnez %v8894_v58  ;;  %v9110_v58 = vld [vmem:[#allocation78_spill] sm:$0xff] }
 0x78a   : > { %4432 = vmatpush1.bf16.msk.msra.mxu0 %vm9032_vm15, %v9000_v29  ;;  %vm9038_vm15 = vnez %v8896_v8  ;;  %v9112_v8 = vld [vmem:[#allocation79_spill] sm:$0xff] }
 0x78b   : > { %4434 = vmatprep.subr.msk.bf16.mxu0 %vm9033_vm3, %v9000_v29  ;;  %vm9040_vm3 = vnez %v9039_v22 }
 0x78d   : > { %2995 = vmatmul.mubr.bf16.gmra.mrb[32].mxu0 %v7552_v56 }
 0x78e   : > { %4436 = vmatpush1.bf16.msk.msra.mxu0 %vm9034_vm0, %v9000_v29  ;;  %3004 = vmatprep.mubr.bf16.mxu0 %v7562_v2  ;;  %vm9042_vm0 = vnez %v9041_v4 }
 0x78f   : > { %4438 = vmatprep.subr.msk.bf16.mxu0 %vm9035_vm9, %v9000_v29  ;;  %vm9044_vm9 = vnez %v9043_v15 }
 0x792   : > { %4440 = vmatpush1.bf16.msk.msra.mxu0 %vm9036_vm2, %v9000_v29  ;;  %vm9046_vm2 = vnez %v9045_v27 }
 0x793   : > { %4442 = vmatprep.subr.msk.bf16.mxu0 %vm9037_vm5, %v9000_v29  ;;  %vm9048_vm5 = vnez %v9047_v32 }
 0x795   : > { %3005 = vmatmul.mubr.bf16.gmra.mrb[36].mxu0 %v7578_v43 }
 0x796   : > { %4444 = vmatpush1.bf16.msk.msra.mxu0 %vm9038_vm15, %v9000_v29  ;;  %3088 = vmatprep.mubr.bf16.mxu0 %v7535_v50  ;;  %vm9050_vm15 = vnez %v9049_v33 }
 0x797   : > { %4446 = vmatprep.subr.msk.bf16.mxu0 %vm9040_vm3, %v9000_v29  ;;  %vm9052_vm3 = vnez %v9051_v48 }
 0x79a   : > { %4448 = vmatpush1.bf16.msk.msra.mxu0 %vm9042_vm0, %v9000_v29  ;;  %vm9054_vm0 = vnez %v9053_v36 }
 0x79b   : > { %4450 = vmatprep.subr.msk.bf16.mxu0 %vm9044_vm9, %v9000_v29  ;;  %vm9057_vm9 = vnez %v9056_v3 }
 0x79e   : > { %4452 = vmatpush1.bf16.msk.msra.mxu0 %vm9046_vm2, %v9000_v29  ;;  %vm9059_vm2 = vnez %v9058_v18 }
 0x79f   : > { %4454 = vmatprep.subr.msk.bf16.mxu0 %vm9048_vm5, %v9000_v29  ;;  %vm9061_vm5 = vnez %v9060_v63 }
 0x7a2   : > { %4456 = vmatpush1.bf16.msk.msra.mxu0 %vm9050_vm15, %v9000_v29  ;;  %vm9063_vm15 = vnez %v9062_v59 }
 0x7a3   : > { %4458 = vmatprep.subr.msk.bf16.mxu0 %vm9052_vm3, %v9000_v29  ;;  %vm9065_vm3 = vnez %v9064_v16 }
 0x7a6   : > { %4460 = vmatpush1.bf16.msk.msra.mxu0 %vm9054_vm0, %v9000_v29  ;;  %vm9069_vm0 = vnez %v9068_v28 }
 0x7a7   : > { %4462 = vmatprep.subr.msk.bf16.mxu0 %vm8915_vm6, %v9000_v29  ;;  %vm9067_vm6 = vnez %v9066_v11 }
 0x7aa   : > { %4464 = vmatpush1.bf16.msk.msra.mxu0 %vm9057_vm9, %v9000_v29  ;;  %vm9071_vm9 = vnez %v9070_v39 }
 0x7ab   : > { %4466 = vmatprep.subr.msk.bf16.mxu0 %vm9059_vm2, %v9000_v29  ;;  %vm9073_vm2 = vnez %v9072_v34 }
 0x7ae   : > { %4468 = vmatpush1.bf16.msk.msra.mxu0 %vm9061_vm5, %v9000_v29  ;;  %vm9075_vm5 = vnez %v9074_v0 }
 0x7af   : > { %4470 = vmatprep.subr.msk.bf16.mxu0 %vm9063_vm15, %v9000_v29  ;;  %vm9077_vm15 = vnez %v9076_v41 }
 0x7b2   : > { %4472 = vmatpush1.bf16.msk.msra.mxu0 %vm9065_vm3, %v9000_v29  ;;  %vm9079_vm3 = vnez %v9078_v31 }
 0x7b3   : > { %4474 = vmatprep.subr.msk.bf16.mxu0 %vm9067_vm6, %v9000_v29  ;;  %vm9081_vm6 = vnez %v9080_v26 }
 0x7b6   : > { %4476 = vmatpush1.bf16.msk.msra.mxu0 %vm9069_vm0, %v9000_v29  ;;  %vm9083_vm0 = vnez %v9082_v52 }
 0x7b7   : > { %4478 = vmatprep.subr.msk.bf16.mxu0 %vm9071_vm9, %v9000_v29  ;;  %vm9085_vm9 = vnez %v9084_v44 }
 0x7ba   : > { %4480 = vmatpush1.bf16.msk.msra.mxu0 %vm9073_vm2, %v9000_v29  ;;  %vm9087_vm2 = vnez %v9086_v19 }
 0x7bb   : > { %4482 = vmatprep.subr.msk.bf16.mxu0 %vm9075_vm5, %v9000_v29  ;;  %vm9089_vm5 = vnez %v9088_v10 }
 0x7be   : > { %4484 = vmatpush1.bf16.msk.msra.mxu0 %vm9077_vm15, %v9000_v29  ;;  %vm9091_vm15 = vnez %v9090_v17 }
 0x7bf   : > { %4486 = vmatprep.subr.msk.bf16.mxu0 %vm9079_vm3, %v9000_v29  ;;  %vm9093_vm3 = vnez %v9092_v35 }
 0x7c2   : > { %4488 = vmatpush1.bf16.msk.msra.mxu0 %vm9081_vm6, %v9000_v29  ;;  %vm9095_vm6 = vnez %v9094_v60 }
 0x7c3   : > { %4500 = vmatprep.subr.msk.bf16.mxu0 %vm9083_vm0, %v9000_v29  ;;  %vm9097_vm0 = vnez %v9096_v37 }
 0x7c5   : > { %3089 = vmatmul.mubr.bf16.vlgmr.msra.gmra.mrb[40].mxu0 %v7532_v54 }
 0x7c6   : > { %3098 = vmatprep.mubr.bf16.mxu0 %v7555_v1  ;;  %4502 = vmatpush1.bf16.msk.msra.mxu0 %vm9085_vm9, %v9000_v29  ;;  %vm9099_vm9 = vnez %v9098_v6 }
 0x7c7   : > { %4504 = vmatprep.subr.msk.bf16.mxu0 %vm9087_vm2, %v9000_v29  ;;  %vm9101_vm2 = vnez %v9100_v38 }
 0x7ca   : > { %4506 = vmatpush1.bf16.msk.msra.mxu0 %vm9089_vm5, %v9000_v29  ;;  %vm9103_vm5 = vnez %v9102_v12 }
 0x7cb   : > { %4508 = vmatprep.subr.msk.bf16.mxu0 %vm9091_vm15, %v9000_v29  ;;  %vm9105_vm15 = vnez %v9104_v61 }
 0x7cd   : > { %3099 = vmatmul.mubr.bf16.gmra.mrb[44].mxu0 %v7552_v56 }
 0x7ce   : > { %4510 = vmatpush1.bf16.msk.msra.mxu0 %vm9093_vm3, %v9000_v29  ;;  %3108 = vmatprep.mubr.bf16.mxu0 %v7562_v2  ;;  %vm9107_vm3 = vnez %v9106_v21 }
 0x7cf   : > { %4512 = vmatprep.subr.msk.bf16.mxu0 %vm9095_vm6, %v9000_v29  ;;  %vm9109_vm6 = vnez %v9108_v46 }
 0x7d2   : > { %4514 = vmatpush1.bf16.msk.msra.mxu0 %vm9097_vm0, %v9000_v29  ;;  %vm9111_vm0 = vnez %v9110_v58 }
 0x7d3   : > { %4516 = vmatprep.subr.msk.bf16.mxu0 %vm9099_vm9, %v9000_v29  ;;  %vm9113_vm9 = vnez %v9112_v8 }
 0x7d5   : > { %3109 = vmatmul.mubr.bf16.gmra.mrb[48].mxu0 %v7578_v43 }
 0x7d6   : > { %4518 = vmatpush1.bf16.msk.msra.mxu0 %vm9101_vm2, %v9000_v29  ;;  %3192 = vmatprep.mubr.bf16.mxu0 %v7535_v50  ;;  %vm9115_vm2 = vnez %v9114_v30 }
 0x7d7   : > { %4520 = vmatprep.subr.msk.bf16.mxu0 %vm9103_vm5, %v9000_v29  ;;  %vm9117_vm5 = vnez %v9116_v62 }
 0x7da   : > { %4522 = vmatpush1.bf16.msk.msra.mxu0 %vm9105_vm15, %v9000_v29  ;;  %vm9119_vm15 = vnez %v9118_v9 }
 0x7db   : > { %4524 = vmatprep.subr.msk.bf16.mxu0 %vm9107_vm3, %v9000_v29  ;;  %vm9121_vm3 = vnez %v9120_v40 }
 0x7de   : > { %4526 = vmatpush1.bf16.msk.msra.mxu0 %vm9109_vm6, %v9000_v29  ;;  %vm9123_vm6 = vnez %v9122_v23 }
 0x7df   : > { %4528 = vmatprep.subr.msk.bf16.mxu0 %vm9111_vm0, %v9000_v29  ;;  %vm9126_vm0 = vnez %v9125_v42 }
 0x7e2   : > { %4530 = vmatpush1.bf16.msk.msra.mxu0 %vm9113_vm9, %v9000_v29 }
 0x7e3   : > { %4532 = vmatprep.subr.msk.bf16.mxu0 %vm9115_vm2, %v9000_v29 }
 0x7e6   : > { %4534 = vmatpush1.bf16.msk.msra.mxu0 %vm9117_vm5, %v9000_v29 }
 0x7e7   : > { %4536 = vmatprep.subr.msk.bf16.mxu0 %vm9119_vm15, %v9000_v29 }
 0x7ea   : > { %4538 = vmatpush1.bf16.msk.msra.mxu0 %vm9121_vm3, %v9000_v29 }
 0x7eb   : > { %4540 = vmatprep.subr.msk.bf16.mxu0 %vm9123_vm6, %v9000_v29 }
 0x7ee   : > { %4542 = vmatpush1.bf16.msk.msra.mxu0 %vm8983_vm4, %v9000_v29 }
 0x7ef   : > { %4544 = vmatprep.subr.msk.bf16.mxu0 %vm9126_vm0, %v9000_v29 }
 0x7f2   : > { %4546 = vmatpush1.bf16.msk.msra.mxu0 %vm8987_vm11, %v9000_v29 }
 0x7f3   : > { %4548 = vmatprep.subr.msk.bf16.mxu0 %vm8988_vm10, %v9000_v29  ;;  %vm9136_vm10 = vnez %v9135_v25 }
 0x7f6   : > { %4550 = vmatpush1.bf16.msk.msra.mxu0 %vm8990_vm7, %v9000_v29 }
 0x7f7   : > { %4552 = vmatprep.subr.msk.bf16.mxu0 %vm8992_vm12, %v9000_v29 }
 0x7fa   : > { %4554 = vmatpush1.bf16.msk.msra.mxu0 %vm8994_vm13, %v9000_v29 }
 0x7fb   : > { %4556 = vmatprep.subr.msk.bf16.mxu0 %vm7052_vm8, %v9000_v29 }
 0x7fe   : > { %4558 = vmatpush1.bf16.msk.msra.mxu0 %vm7056_vm1, %v9000_v29 }
 0x7ff   : > { %4560 = vmatprep.subr.msk.bf16.mxu0 %vm7070_vm14, %v9000_v29 }
 0x802   : > { %4562 = vmatpush1.bf16.msk.msra.mxu0 %vm9136_vm10, %v9000_v29 }
 0x805   : > { %3193 = vmatmul.mubr.bf16.vlgmr.msra.gmra.mrb[52].mxu0 %v7532_v54 }
 0x806   : > { %3202 = vmatprep.mubr.bf16.mxu0 %v7555_v1 }
 0x80d   : > { %3203 = vmatmul.mubr.bf16.gmra.mrb[56].mxu0 %v7552_v56 }
 0x80e   : > { %3212 = vmatprep.mubr.bf16.mxu0 %v7562_v2  ;;  %v9137_v2 = vld [vmem:[#allocation11_spill] sm:$0xff] }
 0x815   : > { %3213 = vmatmul.mubr.bf16.gmra.mrb[60].mxu0 %v7578_v43  ;;  %v7868_v43 = vadd.s32 32, %v9137_v2 }
 0x817   : > { %vm2913_vm1 = vcmp.eq.s32.totalorder %v7868_v43, 32 }
 0x818   : > { %v2878_v51 = vpop.f32.mrb[16].mxu0 }
 0x819   : > { %v2880_v24 = vpop.f32.mrb[17].mxu0 }
 0x81a   : > { %v2882_v49 = vpop.f32.mrb[18].mxu0 }
 0x81b   : > { %v2884_v5 = vpop.f32.mrb[19].mxu0 }
 0x820   : > { %v2888_v22 = vpop.f32.mrb[20].mxu0 }
 0x821   : > { %v2890_v4 = vpop.f32.mrb[21].mxu0 }
 0x822   : > { %v2892_v15 = vpop.f32.mrb[22].mxu0 }
 0x823   : > { %v2894_v27 = vpop.f32.mrb[23].mxu0 }
 0x828   : > { %v2898_v29 = vpop.f32.mrb[24].mxu0 }
 0x829   : > { %v2905_v32 = vmax.f32 %v2898_v29, 1.0  ;;  %v2900_v54 = vpop.f32.mrb[25].mxu0 }
 0x82a   : > { %v2906_v33 = vmax.f32 %v2900_v54, 1.0  ;;  %v2902_v1 = vpop.f32.mrb[26].mxu0 }
 0x82b   : > { %4747 = vrcp.f32 %v2905_v32  ;;  %v2903_v56 = vpop.f32.mrb[27].mxu0 }
 0x82c   : > { %4749 = vrcp.f32 %v2906_v33 }
 0x835   : > { %v4748_v48 = vpop.eup %4747 }
 0x836   : > { %v4750_v36 = vpop.eup %4749  ;;  %v2917_v3 = vrot.slane %v4748_v48, %v9138_v20 }
 0x837   : > { %v2921_v18 = vrot.slane %v4750_v36, %v9138_v20 }
 0x838   : > { %v2922_v63 = vmul.f32 %v2917_v3, %v2878_v51  ;;  %v2924_v59 = vmul.f32 %v2917_v3, %v2882_v49  ;;  %v2926_v16 = vmul.f32 %v2917_v3, %v2888_v22  ;;  %v2928_v11 = vmul.f32 %v2917_v3, %v2892_v15 }
 0x839   : > { %v2930_v28 = vmul.f32 %v2917_v3, %v2898_v29  ;;  %v2923_v39 = vmul.f32 %v2921_v18, %v2880_v24  ;;  %v2925_v34 = vmul.f32 %v2921_v18, %v2884_v5  ;;  %v2927_v0 = vmul.f32 %v2921_v18, %v2890_v4 }
 0x83a   : > { %2942 = vst [vmem:[%s7873_s22] sm:$0xff] %v2922_v63  ;;  %2944 = vst [vmem:[%s7873_s22 + $0x40] sm:$0xff] %v2924_v59  ;;  %v2929_v41 = vmul.f32 %v2921_v18, %v2894_v27  ;;  %v2931_v31 = vmul.f32 %v2921_v18, %v2900_v54 }
 0x83b   : > { %2946 = vst [vmem:[%s7873_s22 + $0x80] sm:$0xff] %v2926_v16  ;;  %2948 = vst [vmem:[%s7873_s22 + $0xc0] sm:$0xff] %v2928_v11  ;;  %v2940_v26 = vsel %vm2913_vm1, %v2898_v29, %v2930_v28 }
 0x83c   : > { %2943 = vst [vmem:[%s7873_s22 + $0x8] sm:$0xff] %v2923_v39  ;;  %2945 = vst [vmem:[%s7873_s22 + $0x48] sm:$0xff] %v2925_v34  ;;  %v2941_v52 = vsel %vm2913_vm1, %v2900_v54, %v2931_v31 }
 0x83d   : > { %2947 = vst [vmem:[%s7873_s22 + $0x88] sm:$0xff] %v2927_v0  ;;  %2950 = vst [vmem:[%s7873_s22 + $0x100] sm:$0x1] %v2940_v26 }
 0x83e   : > { %2949 = vst [vmem:[%s7873_s22 + $0xc8] sm:$0xff] %v2929_v41  ;;  %2951 = vst [vmem:[%s7873_s22 + $0x108] sm:$0x1] %v2941_v52 }
 0x858   : > { %v2986_v44 = vpop.f32.mrb[28].mxu0 }
 0x859   : > { %v2988_v19 = vpop.f32.mrb[29].mxu0 }
 0x85a   : > { %v2990_v10 = vpop.f32.mrb[30].mxu0 }
 0x85b   : > { %v2992_v17 = vpop.f32.mrb[31].mxu0 }
 0x860   : > { %v2996_v35 = vpop.f32.mrb[32].mxu0 }
 0x861   : > { %v2998_v60 = vpop.f32.mrb[33].mxu0 }
 0x862   : > { %v3000_v37 = vpop.f32.mrb[34].mxu0 }
 0x863   : > { %v3002_v6 = vpop.f32.mrb[35].mxu0 }
 0x868   : > { %v3006_v38 = vpop.f32.mrb[36].mxu0 }
 0x869   : > { %v3013_v12 = vmax.f32 %v3006_v38, 1.0  ;;  %v3008_v61 = vpop.f32.mrb[37].mxu0 }
 0x86a   : > { %v3014_v21 = vmax.f32 %v3008_v61, 1.0  ;;  %v3010_v46 = vpop.f32.mrb[38].mxu0 }
 0x86b   : > { %4751 = vrcp.f32 %v3013_v12  ;;  %v3011_v58 = vpop.f32.mrb[39].mxu0 }
 0x86c   : > { %4753 = vrcp.f32 %v3014_v21 }
 0x875   : > { %v4752_v8 = vpop.eup %4751 }
 0x876   : > { %v4754_v30 = vpop.eup %4753  ;;  %v3020_v62 = vrot.slane %v4752_v8, %v9138_v20 }
 0x877   : > { %v3024_v9 = vrot.slane %v4754_v30, %v9138_v20 }
 0x878   : > { %v3025_v40 = vmul.f32 %v3020_v62, %v2986_v44  ;;  %v3027_v23 = vmul.f32 %v3020_v62, %v2990_v10  ;;  %v3029_v50 = vmul.f32 %v3020_v62, %v2996_v35  ;;  %v3031_v42 = vmul.f32 %v3020_v62, %v3000_v37 }
 0x879   : > { %v3033_v53 = vmul.f32 %v3020_v62, %v3006_v38  ;;  %v3026_v57 = vmul.f32 %v3024_v9, %v2988_v19  ;;  %v3028_v55 = vmul.f32 %v3024_v9, %v2992_v17  ;;  %v3030_v45 = vmul.f32 %v3024_v9, %v2998_v60 }
 0x87a   : > { %4415 = vst [vmem:[%s7873_s22 + $0x10] sm:$0xff] %v3025_v40  ;;  %4417 = vst [vmem:[%s7873_s22 + $0x50] sm:$0xff] %v3027_v23  ;;  %v3032_v7 = vmul.f32 %v3024_v9, %v3002_v6  ;;  %v3034_v14 = vmul.f32 %v3024_v9, %v3008_v61 }
 0x87b   : > { %4419 = vst [vmem:[%s7873_s22 + $0x90] sm:$0xff] %v3029_v50  ;;  %4421 = vst [vmem:[%s7873_s22 + $0xd0] sm:$0xff] %v3031_v42  ;;  %v3043_v13 = vsel %vm2913_vm1, %v3006_v38, %v3033_v53 }
 0x87c   : > { %4416 = vst [vmem:[%s7873_s22 + $0x18] sm:$0xff] %v3026_v57  ;;  %4418 = vst [vmem:[%s7873_s22 + $0x58] sm:$0xff] %v3028_v55  ;;  %v3044_v47 = vsel %vm2913_vm1, %v3008_v61, %v3034_v14 }
 0x87d   : > { %4420 = vst [vmem:[%s7873_s22 + $0x98] sm:$0xff] %v3030_v45  ;;  %4423 = vst [vmem:[%s7873_s22 + $0x110] sm:$0x1] %v3043_v13 }
 0x87e   : > { %4422 = vst [vmem:[%s7873_s22 + $0xd8] sm:$0xff] %v3032_v7  ;;  %4424 = vst [vmem:[%s7873_s22 + $0x118] sm:$0x1] %v3044_v47 }
 0x87f   : > { %4810 = shalt.err (!%p4807_p3)
}
 0x880   : > { %s4811_s8 = scalar_lea.hbm %s7910_s5, 1024  ;;  %s4815_s12 = scalar_lea.hbm %s8023_s3, 6144 }
 0x881   : > { %p4812_p5 = scmp.ne.s32.totalorder %s7910_s5, %s4811_s8  ;;  %p4816_p13 = scmp.lt.u32.totalorder %s7910_s5, %s8023_s3 }
 0x882   : > { %p4817_p0 = scmp.lt.u32.totalorder %s4815_s12, %s4811_s8  ;;  %p4819_p6 = scmp.lt.u32.totalorder %s4811_s8, %s7910_s5 }
 0x883   : > { %p4813_p7 = pnand %p4812_p5, %p9139_p10 }
 0x884   : > { %p4818_p2 = por %p4817_p0, %p4816_p13 }
 0x885   : > { %p4814_p8 = pneg %p4813_p7 }
 0x886   : > { %p4820_p11 = por %p4819_p6, %p4818_p2 }
 0x888   : > { %p4821_p12 = pnand %p4820_p11, %p4814_p8 }
 0x88a   : > { %4824 = shalt.err (!%p4821_p12)
}
 0x88b   : > { %s4906_s29 = smov 256   ;;  %s4907_s30 = smov 16  }
 0x88c   : > { %4667 = dma.vmem_to_hbm [thread:$0]  (%p9139_p10), %s7912_s25, 1024, %s7910_s5, %s3265_s6, %s4906_s29, %s4906_s29, %s4907_s30  }
 0x88d   : > { %s4664_s25 = smul.u32 5120, %s4957_s19  ;;  %s3299_s5 = sshll.u32 %s7873_s22, 4  ;;  %s7967_s5 = int_to_ptr.vmem [resolvable:$true] %s3299_s5 }
 0x88e   : > { %s3270_s13 = scalar_lea.sflag [#allocation7], %s5040_s7  ;;  %s4825_s14 = scalar_lea.vmem %s7967_s5, 5120 }
 0x88f   : > { %s7965_s9 = scalar_lea.hbm %s8024_s4, %s4664_s25  ;;  %p4826_p4 = scmp.ne.s32.totalorder %s7967_s5, %s4825_s14 }
 0x890   : > { %s4908_s26 = smov [#allocation6]  }
 0x891   : > { %p4827_p9 = pnand %p4826_p4, %p9139_p10  ;;  %s4829_s8 = sshll.u32 %s4908_s26, 4  ;;  %s4830_s8 = int_to_ptr.vmem [resolvable:$false] %s4829_s8 }
 0x892   : > { %s4831_s10 = scalar_lea.vmem %s4830_s8, 10240  ;;  %p4832_p3 = scmp.lt.s32.totalorder %s7967_s5, %s4830_s8 }
 0x893   : > { %p4828_p1 = pneg %p4827_p9  ;;  %p4833_p5 = scmp.lt.s32.totalorder %s4831_s10, %s4825_s14 }
 0x895   : > { %p4834_p7 = por %p4833_p5, %p4832_p3 }
 0x897   : > { %p4835_p8 = pnand %p4834_p7, %p4828_p1 }
 0x898   : > { %v3090_v25 = vpop.f32.mrb[40].mxu0 }
 0x899   : > { %v3092_v51 = vpop.f32.mrb[41].mxu0 }
 0x89a   : > { %v3094_v24 = vpop.f32.mrb[42].mxu0 }
 0x89b   : > { %v3096_v49 = vpop.f32.mrb[43].mxu0 }
 0x8a0   : > { %v3100_v5 = vpop.f32.mrb[44].mxu0 }
 0x8a1   : > { %v3102_v22 = vpop.f32.mrb[45].mxu0 }
 0x8a2   : > { %v3104_v4 = vpop.f32.mrb[46].mxu0 }
 0x8a3   : > { %v3106_v15 = vpop.f32.mrb[47].mxu0 }
 0x8a8   : > { %v3110_v27 = vpop.f32.mrb[48].mxu0 }
 0x8a9   : > { %v3117_v29 = vmax.f32 %v3110_v27, 1.0  ;;  %v3112_v32 = vpop.f32.mrb[49].mxu0 }
 0x8aa   : > { %v3118_v54 = vmax.f32 %v3112_v32, 1.0  ;;  %v3114_v33 = vpop.f32.mrb[50].mxu0 }
 0x8ab   : > { %4755 = vrcp.f32 %v3117_v29  ;;  %v3115_v1 = vpop.f32.mrb[51].mxu0 }
 0x8ac   : > { %4757 = vrcp.f32 %v3118_v54 }
 0x8b5   : > { %v4756_v56 = vpop.eup %4755 }
 0x8b6   : > { %v4758_v2 = vpop.eup %4757  ;;  %v3124_v48 = vrot.slane %v4756_v56, %v9138_v20 }
 0x8b7   : > { %v3128_v36 = vrot.slane %v4758_v2, %v9138_v20 }
 0x8b8   : > { %v3129_v3 = vmul.f32 %v3124_v48, %v3090_v25  ;;  %v3131_v18 = vmul.f32 %v3124_v48, %v3094_v24  ;;  %v3133_v63 = vmul.f32 %v3124_v48, %v3100_v5  ;;  %v3135_v59 = vmul.f32 %v3124_v48, %v3104_v4 }
 0x8b9   : > { %v3137_v16 = vmul.f32 %v3124_v48, %v3110_v27  ;;  %v3130_v11 = vmul.f32 %v3128_v36, %v3092_v51  ;;  %v3132_v28 = vmul.f32 %v3128_v36, %v3096_v49  ;;  %v3134_v39 = vmul.f32 %v3128_v36, %v3102_v22 }
 0x8ba   : > { %4489 = vst [vmem:[%s7873_s22 + $0x20] sm:$0xff] %v3129_v3  ;;  %4491 = vst [vmem:[%s7873_s22 + $0x60] sm:$0xff] %v3131_v18  ;;  %v3136_v34 = vmul.f32 %v3128_v36, %v3106_v15  ;;  %v3138_v0 = vmul.f32 %v3128_v36, %v3112_v32 }
 0x8bb   : > { %4493 = vst [vmem:[%s7873_s22 + $0xa0] sm:$0xff] %v3133_v63  ;;  %4495 = vst [vmem:[%s7873_s22 + $0xe0] sm:$0xff] %v3135_v59  ;;  %v3147_v41 = vsel %vm2913_vm1, %v3110_v27, %v3137_v16 }
 0x8bc   : > { %4490 = vst [vmem:[%s7873_s22 + $0x28] sm:$0xff] %v3130_v11  ;;  %4492 = vst [vmem:[%s7873_s22 + $0x68] sm:$0xff] %v3132_v28  ;;  %v3148_v31 = vsel %vm2913_vm1, %v3112_v32, %v3138_v0 }
 0x8bd   : > { %4494 = vst [vmem:[%s7873_s22 + $0xa8] sm:$0xff] %v3134_v39  ;;  %4497 = vst [vmem:[%s7873_s22 + $0x120] sm:$0x1] %v3147_v41 }
 0x8be   : > { %4496 = vst [vmem:[%s7873_s22 + $0xe8] sm:$0xff] %v3136_v34  ;;  %4498 = vst [vmem:[%s7873_s22 + $0x128] sm:$0x1] %v3148_v31 }
 0x8d8   : > { %v3194_v26 = vpop.f32.mrb[52].mxu0 }
 0x8d9   : > { %v3196_v52 = vpop.f32.mrb[53].mxu0 }
 0x8da   : > { %v3198_v44 = vpop.f32.mrb[54].mxu0 }
 0x8db   : > { %v3200_v19 = vpop.f32.mrb[55].mxu0 }
 0x8e0   : > { %v3204_v10 = vpop.f32.mrb[56].mxu0 }
 0x8e1   : > { %v3206_v17 = vpop.f32.mrb[57].mxu0 }
 0x8e2   : > { %v3208_v35 = vpop.f32.mrb[58].mxu0 }
 0x8e3   : > { %v3210_v60 = vpop.f32.mrb[59].mxu0 }
 0x8e8   : > { %v3214_v37 = vpop.f32.mrb[60].mxu0 }
 0x8e9   : > { %v3221_v6 = vmax.f32 %v3214_v37, 1.0  ;;  %v3216_v38 = vpop.f32.mrb[61].mxu0 }
 0x8ea   : > { %v3222_v12 = vmax.f32 %v3216_v38, 1.0  ;;  %v3218_v61 = vpop.f32.mrb[62].mxu0 }
 0x8eb   : > { %4759 = vrcp.f32 %v3221_v6  ;;  %v3219_v21 = vpop.f32.mrb[63].mxu0 }
 0x8ec   : > { %4761 = vrcp.f32 %v3222_v12 }
 0x8f5   : > { %v4760_v46 = vpop.eup %4759 }
 0x8f6   : > { %v4762_v58 = vpop.eup %4761  ;;  %v3228_v8 = vrot.slane %v4760_v46, %v9138_v20 }
 0x8f7   : > { %v3232_v30 = vrot.slane %v4762_v58, %v9138_v20 }
 0x8f8   : > { %v3233_v62 = vmul.f32 %v3228_v8, %v3194_v26  ;;  %v3235_v9 = vmul.f32 %v3228_v8, %v3198_v44  ;;  %v3237_v40 = vmul.f32 %v3228_v8, %v3204_v10  ;;  %v3239_v23 = vmul.f32 %v3228_v8, %v3208_v35 }
 0x8f9   : > { %v3241_v50 = vmul.f32 %v3228_v8, %v3214_v37  ;;  %v3234_v42 = vmul.f32 %v3232_v30, %v3196_v52  ;;  %v3236_v53 = vmul.f32 %v3232_v30, %v3200_v19  ;;  %v3238_v57 = vmul.f32 %v3232_v30, %v3206_v17 }
 0x8fa   : > { %4563 = vst [vmem:[%s7873_s22 + $0x30] sm:$0xff] %v3233_v62  ;;  %4565 = vst [vmem:[%s7873_s22 + $0x70] sm:$0xff] %v3235_v9  ;;  %v3240_v20 = vmul.f32 %v3232_v30, %v3210_v60  ;;  %v3242_v55 = vmul.f32 %v3232_v30, %v3216_v38 }
 0x8fb   : > { %4567 = vst [vmem:[%s7873_s22 + $0xb0] sm:$0xff] %v3237_v40  ;;  %4569 = vst [vmem:[%s7873_s22 + $0xf0] sm:$0xff] %v3239_v23  ;;  %v3251_v45 = vsel %vm2913_vm1, %v3214_v37, %v3241_v50 }
 0x8fc   : > { %4564 = vst [vmem:[%s7873_s22 + $0x38] sm:$0xff] %v3234_v42  ;;  %4566 = vst [vmem:[%s7873_s22 + $0x78] sm:$0xff] %v3236_v53  ;;  %v3252_v7 = vsel %vm2913_vm1, %v3216_v38, %v3242_v55 }
 0x8fd   : > { %4568 = vst [vmem:[%s7873_s22 + $0xb8] sm:$0xff] %v3238_v57  ;;  %4571 = vst [vmem:[%s7873_s22 + $0x130] sm:$0x1] %v3251_v45 }
 0x8fe   : > { %4570 = vst [vmem:[%s7873_s22 + $0xf8] sm:$0xff] %v3240_v20  ;;  %4572 = vst [vmem:[%s7873_s22 + $0x138] sm:$0x1] %v3252_v7 }
 0x8ff   : > { %4838 = shalt.err (!%p4835_p8)
}
 0x900   : > { %s4839_s22 = scalar_lea.hbm %s7965_s9, 5120  ;;  %s4843_s20 = scalar_lea.hbm %s8024_s4, 30720 }
 0x901   : > { %p4840_p13 = scmp.ne.s32.totalorder %s7965_s9, %s4839_s22  ;;  %p4844_p6 = scmp.lt.u32.totalorder %s7965_s9, %s8024_s4 }
 0x902   : > { %p4845_p11 = scmp.lt.u32.totalorder %s4843_s20, %s4839_s22  ;;  %p4847_p4 = scmp.lt.u32.totalorder %s4839_s22, %s7965_s9 }
 0x903   : > { %p4841_p0 = pnand %p4840_p13, %p9139_p10 }
 0x904   : > { %p4846_p12 = por %p4845_p11, %p4844_p6 }
 0x905   : > { %p4842_p2 = pneg %p4841_p0 }
 0x906   : > { %p4848_p9 = por %p4847_p4, %p4846_p12 }
 0x908   : > { %p4849_p1 = pnand %p4848_p9, %p4842_p2 }
 0x90a   : > { %4852 = shalt.err (!%p4849_p1)
}
 0x90b   : > { %s4909_s30 = smov 1024   ;;  %s4910_s25 = smov 64  }
 0x90c   : > { %4668 = dma.vmem_to_hbm [thread:$0]  (%p9139_p10), %s7967_s5, 5120, %s7965_s9, %s3270_s13, %s4909_s30, %s4909_s30, %s4910_s25  }
 0x90d PF: > { %p4683_p3 = scmp.ge.s32.totalorder %s4895_s18, 2  ;;  %s3314_s19 = sand.u32 1, %s4883_s15  }
 0x90e   : > { %p9140_p5 = scmp.ne.s32.totalorder %s8412_s28, 0  ;;  %s3315_s6 = scalar_lea.sflag [#allocation4], %s3314_s19 }
 0x910   : > { %p4676_p7 = pnand %p4683_p3, %p9140_p5 }
 0x912   : > { %4874 = dma.done.wait (!%p4676_p7), %s3315_s6, 1024  }
 0x913   : > { %4876 = vsyncadd (!%p4676_p7), %s3315_s6, 4294966272  ;;  %s3324_s14 = scalar_lea.sflag [#allocation7], %s3314_s19 }
 0x914   : > { %4878 = dma.done.wait (!%p4676_p7), %s3324_s14, 5120  }
 0x915   : > { %4880 = vsyncadd (!%p4676_p7), %s3324_s14, 4294962176  ;;  %p21_p10 = scmp.ge.s32.totalorder %s4961_s21, 8   ;;  %s9141_s15 = smov %s4887_s16 }
 0x916   : > { %s9142_s16 = smov %s4891_s17  ;;  %s9143_s17 = smov %s4973_s24 }
 0x917   : > { %s9144_s18 = smov %s4961_s21  ;;  %23 = sbr.rel (!%p21_p10) target bundleno = 7 (0x7), region = 97 }
 0x91e   :  { %3329 = vsyncpa [#allocation3], 1 }
 0x91f   :  { %3331 = vsyncpa [#allocation3 + $0x1], 1 }
 0x920   :  { %3332 = vsyncpa [#allocation4], 1 }
 0x921   :  { %3334 = vsyncpa [#allocation4 + $0x1], 1 }
 0x922   :  { %3335 = vsyncpa [#allocation7], 1 }
 0x923   :  { %3337 = vsyncpa [#allocation7 + $0x1], 1 }

</bundles_post_ra>
